<compile_context>
chip_gen: v5e
topology: v5e:2x2
jax: 0.10.0
libtpu: 0.0.40
codegen_flags: <defaults>
</compile_context>

<pallas_src>
import jax
import jax.numpy as jnp
from jax import lax
from jax.experimental import pallas as pl
from jax.experimental.pallas import tpu as pltpu

K = 3          # depthwise kernel size (K, K, K), stride 1, padding (K-1)//2
EPS = 1e-5     # BatchNorm eps (PyTorch default)


def conv_bn_depthwise(x_ndhwc, params):
    """x_ndhwc: (N, D, H, W, Cin) float32 -> (N, D, H, W, Cout) float32."""
    N, D, H, W, Cin = x_ndhwc.shape
    Cout = params["pw_w"].shape[1]
    pad = (K - 1) // 2
    Dp, Hp, Wp = D + 2 * pad, H + 2 * pad, W + 2 * pad

    f32 = lambda a: a.astype(jnp.float32)

    # ---- fold eval-mode BN into the conv weights / shifts (tiny XLA-side work) ----
    dw_s = f32(params["dw_gamma"]) / jnp.sqrt(f32(params["dw_var"]) + EPS)   # (Cin,)
    dw_t = f32(params["dw_beta"]) - f32(params["dw_mean"]) * dw_s
    pw_s = f32(params["pw_gamma"]) / jnp.sqrt(f32(params["pw_var"]) + EPS)   # (Cout,)
    pw_t = f32(params["pw_beta"]) - f32(params["pw_mean"]) * pw_s

    dw_w = f32(params["dw_w"]) * dw_s[None, :]            # (K^3, Cin)  conv*scale folded
    dw_sh = f32(params["dw_b"]) * dw_s + dw_t             # (Cin,)      b*s + t
    pw_w = f32(params["pw_w"]) * pw_s[None, :]            # (Cin, Cout) cols scaled
    pw_sh = f32(params["pw_b"]) * pw_s + pw_t             # (Cout,)

    # ---- lane packing: fold W into the lane dimension ----
    dww = jnp.tile(dw_w, (1, W))                          # (K^3, W*Cin)
    dwt = jnp.tile(dw_sh, W).reshape(1, W * Cin)          # (1, W*Cin)
    pww = jnp.kron(jnp.eye(W, dtype=jnp.float32), pw_w)   # (W*Cin, W*Cout) block-diag
    pwt = jnp.tile(pw_sh, W).reshape(1, W * Cout)         # (1, W*Cout)

    xpad = jnp.pad(f32(x_ndhwc),
                   ((0, 0), (pad, pad), (pad, pad), (pad, pad), (0, 0)))
    xp = xpad.reshape(N, Dp, Hp, Wp * Cin)                # lane-packed padded input

    def kernel(xp_ref, dww_ref, dwt_ref, pww_ref, pwt_ref, out_ref):
        xp_v = xp_ref[...]                                # (N, Dp, Hp, Wp*Cin)

        # ---- depthwise KxKxK conv: 27 shifted MACs, W*Cin lanes per VPU op ----
        acc = jnp.zeros((N, D, H, W * Cin), jnp.float32)
        for kd in range(K):
            for kh in range(K):
                plane = xp_v[:, kd:kd + D, kh:kh + H, :]  # hoisted (kd, kh) slice
                for kw in range(K):
                    tap = (kd * K + kh) * K + kw
                    acc = acc + (plane[:, :, :, kw * Cin:kw * Cin + W * Cin]
                                 * dww_ref[tap, :])
        y = jnp.maximum(acc + dwt_ref[0, :], 0.0)         # folded BN + ReLU

        # ---- pointwise 1x1x1 conv: one block-diagonal MXU matmul, lane-packed ----
        y2 = y.reshape(N * D * H, W * Cin)                # (N*D*H, W*Cin)
        z = jnp.dot(y2, pww_ref[...], preferred_element_type=jnp.float32)
        z = jnp.maximum(z + pwt_ref[0, :], 0.0)           # folded BN + ReLU (activation=True)

        out_ref[...] = z.reshape(N, D * H, W * Cout)      # full 128-lane stores

    args = (xp, dww, dwt, pww, pwt)

    def full_spec(a):
        nd = a.ndim
        return pl.BlockSpec(a.shape, lambda i, _nd=nd: (0,) * _nd)

    out_packed = pl.pallas_call(
        kernel,
        out_shape=jax.ShapeDtypeStruct((N, D * H, W * Cout), jnp.float32),
        grid_spec=pltpu.PrefetchScalarGridSpec(
            num_scalar_prefetch=0,
            grid=(1,),                                    # whole batch in one fat step
            in_specs=[full_spec(a) for a in args],
            out_specs=pl.BlockSpec((N, D * H, W * Cout), lambda i: (0, 0, 0)),
        ),
        compiler_params=pltpu.CompilerParams(
            dimension_semantics=("arbitrary",)),
    )(*args)

    # lane-dense (N, D*H, W*Cout) -> NDHWC: wrapper-side plumbing only
    return out_packed.reshape(N, D, H, W, Cout)


def reference_ncdhw(x_ncdhw, params):
    """Pure-JAX reference with PyTorch NCDHW conventions (eval-mode BN)."""
    Cin = x_ncdhw.shape[1]
    dw_w = jnp.transpose(params["dw_w"].reshape(K, K, K, Cin), (3, 0, 1, 2))[:, None]
    y = lax.conv_general_dilated(
        x_ncdhw, dw_w, window_strides=(1, 1, 1), padding=[(1, 1)] * 3,
        dimension_numbers=("NCDHW", "OIDHW", "NCDHW"),
        feature_group_count=Cin, precision=lax.Precision.HIGHEST)
    bc = lambda v: v[None, :, None, None, None]
    dw_s = params["dw_gamma"] / jnp.sqrt(params["dw_var"] + EPS)
    dw_t = params["dw_beta"] - params["dw_mean"] * dw_s
    y = jnp.maximum((y + bc(params["dw_b"])) * bc(dw_s) + bc(dw_t), 0.0)

    pw_w = jnp.transpose(params["pw_w"], (1, 0))[:, :, None, None, None]
    z = lax.conv_general_dilated(
        y, pw_w, window_strides=(1, 1, 1), padding=[(0, 0)] * 3,
        dimension_numbers=("NCDHW", "OIDHW", "NCDHW"),
        precision=lax.Precision.HIGHEST)
    pw_s = params["pw_gamma"] / jnp.sqrt(params["pw_var"] + EPS)
    pw_t = params["pw_beta"] - params["pw_mean"] * pw_s
    return jnp.maximum((z + bc(params["pw_b"])) * bc(pw_s) + bc(pw_t), 0.0)


if __name__ == "__main__":
    N, Cin, Cout, D, H, W = 2, 8, 16, 8, 8, 8
    key = jax.random.PRNGKey(0)
    ks = jax.random.split(key, 13)

    x_ncdhw = jax.random.normal(ks[0], (N, Cin, D, H, W), jnp.float32)
    params = dict(
        dw_w=0.1 * jax.random.normal(ks[1], (K * K * K, Cin), jnp.float32),
        dw_b=0.1 * jax.random.normal(ks[2], (Cin,), jnp.float32),
        dw_gamma=1.0 + 0.1 * jax.random.normal(ks[3], (Cin,), jnp.float32),
        dw_beta=0.1 * jax.random.normal(ks[4], (Cin,), jnp.float32),
        dw_mean=0.1 * jax.random.normal(ks[5], (Cin,), jnp.float32),
        dw_var=jnp.abs(1.0 + 0.1 * jax.random.normal(ks[6], (Cin,), jnp.float32)),
        pw_w=0.1 * jax.random.normal(ks[7], (Cin, Cout), jnp.float32),
        pw_b=0.1 * jax.random.normal(ks[8], (Cout,), jnp.float32),
        pw_gamma=1.0 + 0.1 * jax.random.normal(ks[9], (Cout,), jnp.float32),
        pw_beta=0.1 * jax.random.normal(ks[10], (Cout,), jnp.float32),
        pw_mean=0.1 * jax.random.normal(ks[11], (Cout,), jnp.float32),
        pw_var=jnp.abs(1.0 + 0.1 * jax.random.normal(ks[12], (Cout,), jnp.float32)),
    )

    # NCDHW -> NDHWC for the kernel
    x_ndhwc = jnp.transpose(x_ncdhw, (0, 2, 3, 4, 1))
    out = jax.block_until_ready(conv_bn_depthwise(x_ndhwc, params))

    ref = jnp.transpose(reference_ncdhw(x_ncdhw, params), (0, 2, 3, 4, 1))
    assert out.shape == (N, D, H, W, Cout), out.shape
    assert jnp.allclose(out, ref, atol=1e-2, rtol=1e-2), float(jnp.max(jnp.abs(out - ref)))

    print("KERNEL_OK")
</pallas_src>

<mosaic_0001>
module attributes {stable_mosaic.version = 11 : i64} {
  func.func @kernel(%arg0: i32, %arg1: memref<2x10x10x80xf32, #tpu.memory_space<vmem>>, %arg2: memref<27x64xf32, #tpu.memory_space<vmem>>, %arg3: memref<1x64xf32, #tpu.memory_space<vmem>>, %arg4: memref<64x128xf32, #tpu.memory_space<vmem>>, %arg5: memref<1x128xf32, #tpu.memory_space<vmem>>, %arg6: memref<2x64x128xf32, #tpu.memory_space<vmem>>) attributes {dimension_semantics = [#tpu.dimension_semantics<arbitrary>], iteration_bounds = array<i64: 1>, scalar_prefetch = 0 : i64, scratch_operands = 0 : i64, tpu.core_type = #tpu.core_type<tc>, window_params = [{pipeline_mode = #tpu.pipeline_mode<synchronous>, transform_indices = @transform_0, window_bounds = array<i64: 2, 10, 10, 80>}, {pipeline_mode = #tpu.pipeline_mode<synchronous>, transform_indices = @transform_1, window_bounds = array<i64: 27, 64>}, {pipeline_mode = #tpu.pipeline_mode<synchronous>, transform_indices = @transform_2, window_bounds = array<i64: 1, 64>}, {pipeline_mode = #tpu.pipeline_mode<synchronous>, transform_indices = @transform_3, window_bounds = array<i64: 64, 128>}, {pipeline_mode = #tpu.pipeline_mode<synchronous>, transform_indices = @transform_4, window_bounds = array<i64: 1, 128>}, {pipeline_mode = #tpu.pipeline_mode<synchronous>, transform_indices = @transform_5, window_bounds = array<i64: 2, 64, 128>}]} {
    %c0 = arith.constant 0 : index
    %c0_0 = arith.constant 0 : index
    %c0_1 = arith.constant 0 : index
    %c0_2 = arith.constant 0 : index
    %0 = vector.load %arg1[%c0, %c0_0, %c0_1, %c0_2] : memref<2x10x10x80xf32, #tpu.memory_space<vmem>>, vector<2x10x10x80xf32>
    %cst = arith.constant 0.000000e+00 : f32
    %1 = vector.broadcast %cst : f32 to vector<2x8x8x64xf32>
    %2 = vector.extract_strided_slice %0 {offsets = [0, 0, 0, 0], sizes = [2, 8, 8, 80], strides = [1, 1, 1, 1]} : vector<2x10x10x80xf32> to vector<2x8x8x80xf32>
    %3 = vector.extract_strided_slice %2 {offsets = [0, 0, 0, 0], sizes = [2, 8, 8, 64], strides = [1, 1, 1, 1]} : vector<2x8x8x80xf32> to vector<2x8x8x64xf32>
    %c0_3 = arith.constant 0 : index
    %c0_4 = arith.constant 0 : index
    %4 = vector.load %arg2[%c0_3, %c0_4] : memref<27x64xf32, #tpu.memory_space<vmem>>, vector<1x64xf32>
    %5 = vector.shape_cast %4 : vector<1x64xf32> to vector<64xf32>
    %6 = vector.shape_cast %5 : vector<64xf32> to vector<1x1x1x64xf32>
    %7 = vector.broadcast %6 : vector<1x1x1x64xf32> to vector<2x8x8x64xf32>
    %8 = arith.mulf %3, %7 : vector<2x8x8x64xf32>
    %9 = arith.addf %1, %8 : vector<2x8x8x64xf32>
    %10 = vector.extract_strided_slice %2 {offsets = [0, 0, 0, 8], sizes = [2, 8, 8, 64], strides = [1, 1, 1, 1]} : vector<2x8x8x80xf32> to vector<2x8x8x64xf32>
    %c1 = arith.constant 1 : index
    %c0_5 = arith.constant 0 : index
    %11 = vector.load %arg2[%c1, %c0_5] : memref<27x64xf32, #tpu.memory_space<vmem>>, vector<1x64xf32>
    %12 = vector.shape_cast %11 : vector<1x64xf32> to vector<64xf32>
    %13 = vector.shape_cast %12 : vector<64xf32> to vector<1x1x1x64xf32>
    %14 = vector.broadcast %13 : vector<1x1x1x64xf32> to vector<2x8x8x64xf32>
    %15 = arith.mulf %10, %14 : vector<2x8x8x64xf32>
    %16 = arith.addf %9, %15 : vector<2x8x8x64xf32>
    %17 = vector.extract_strided_slice %2 {offsets = [0, 0, 0, 16], sizes = [2, 8, 8, 64], strides = [1, 1, 1, 1]} : vector<2x8x8x80xf32> to vector<2x8x8x64xf32>
    %c2 = arith.constant 2 : index
    %c0_6 = arith.constant 0 : index
    %18 = vector.load %arg2[%c2, %c0_6] : memref<27x64xf32, #tpu.memory_space<vmem>>, vector<1x64xf32>
    %19 = vector.shape_cast %18 : vector<1x64xf32> to vector<64xf32>
    %20 = vector.shape_cast %19 : vector<64xf32> to vector<1x1x1x64xf32>
    %21 = vector.broadcast %20 : vector<1x1x1x64xf32> to vector<2x8x8x64xf32>
    %22 = arith.mulf %17, %21 : vector<2x8x8x64xf32>
    %23 = arith.addf %16, %22 : vector<2x8x8x64xf32>
    %24 = vector.extract_strided_slice %0 {offsets = [0, 0, 1, 0], sizes = [2, 8, 8, 80], strides = [1, 1, 1, 1]} : vector<2x10x10x80xf32> to vector<2x8x8x80xf32>
    %25 = vector.extract_strided_slice %24 {offsets = [0, 0, 0, 0], sizes = [2, 8, 8, 64], strides = [1, 1, 1, 1]} : vector<2x8x8x80xf32> to vector<2x8x8x64xf32>
    %c3 = arith.constant 3 : index
    %c0_7 = arith.constant 0 : index
    %26 = vector.load %arg2[%c3, %c0_7] : memref<27x64xf32, #tpu.memory_space<vmem>>, vector<1x64xf32>
    %27 = vector.shape_cast %26 : vector<1x64xf32> to vector<64xf32>
    %28 = vector.shape_cast %27 : vector<64xf32> to vector<1x1x1x64xf32>
    %29 = vector.broadcast %28 : vector<1x1x1x64xf32> to vector<2x8x8x64xf32>
    %30 = arith.mulf %25, %29 : vector<2x8x8x64xf32>
    %31 = arith.addf %23, %30 : vector<2x8x8x64xf32>
    %32 = vector.extract_strided_slice %24 {offsets = [0, 0, 0, 8], sizes = [2, 8, 8, 64], strides = [1, 1, 1, 1]} : vector<2x8x8x80xf32> to vector<2x8x8x64xf32>
    %c4 = arith.constant 4 : index
    %c0_8 = arith.constant 0 : index
    %33 = vector.load %arg2[%c4, %c0_8] : memref<27x64xf32, #tpu.memory_space<vmem>>, vector<1x64xf32>
    %34 = vector.shape_cast %33 : vector<1x64xf32> to vector<64xf32>
    %35 = vector.shape_cast %34 : vector<64xf32> to vector<1x1x1x64xf32>
    %36 = vector.broadcast %35 : vector<1x1x1x64xf32> to vector<2x8x8x64xf32>
    %37 = arith.mulf %32, %36 : vector<2x8x8x64xf32>
    %38 = arith.addf %31, %37 : vector<2x8x8x64xf32>
    %39 = vector.extract_strided_slice %24 {offsets = [0, 0, 0, 16], sizes = [2, 8, 8, 64], strides = [1, 1, 1, 1]} : vector<2x8x8x80xf32> to vector<2x8x8x64xf32>
    %c5 = arith.constant 5 : index
    %c0_9 = arith.constant 0 : index
    %40 = vector.load %arg2[%c5, %c0_9] : memref<27x64xf32, #tpu.memory_space<vmem>>, vector<1x64xf32>
    %41 = vector.shape_cast %40 : vector<1x64xf32> to vector<64xf32>
    %42 = vector.shape_cast %41 : vector<64xf32> to vector<1x1x1x64xf32>
    %43 = vector.broadcast %42 : vector<1x1x1x64xf32> to vector<2x8x8x64xf32>
    %44 = arith.mulf %39, %43 : vector<2x8x8x64xf32>
    %45 = arith.addf %38, %44 : vector<2x8x8x64xf32>
    %46 = vector.extract_strided_slice %0 {offsets = [0, 0, 2, 0], sizes = [2, 8, 8, 80], strides = [1, 1, 1, 1]} : vector<2x10x10x80xf32> to vector<2x8x8x80xf32>
    %47 = vector.extract_strided_slice %46 {offsets = [0, 0, 0, 0], sizes = [2, 8, 8, 64], strides = [1, 1, 1, 1]} : vector<2x8x8x80xf32> to vector<2x8x8x64xf32>
    %c6 = arith.constant 6 : index
    %c0_10 = arith.constant 0 : index
    %48 = vector.load %arg2[%c6, %c0_10] : memref<27x64xf32, #tpu.memory_space<vmem>>, vector<1x64xf32>
    %49 = vector.shape_cast %48 : vector<1x64xf32> to vector<64xf32>
    %50 = vector.shape_cast %49 : vector<64xf32> to vector<1x1x1x64xf32>
    %51 = vector.broadcast %50 : vector<1x1x1x64xf32> to vector<2x8x8x64xf32>
    %52 = arith.mulf %47, %51 : vector<2x8x8x64xf32>
    %53 = arith.addf %45, %52 : vector<2x8x8x64xf32>
    %54 = vector.extract_strided_slice %46 {offsets = [0, 0, 0, 8], sizes = [2, 8, 8, 64], strides = [1, 1, 1, 1]} : vector<2x8x8x80xf32> to vector<2x8x8x64xf32>
    %c7 = arith.constant 7 : index
    %c0_11 = arith.constant 0 : index
    %55 = vector.load %arg2[%c7, %c0_11] : memref<27x64xf32, #tpu.memory_space<vmem>>, vector<1x64xf32>
    %56 = vector.shape_cast %55 : vector<1x64xf32> to vector<64xf32>
    %57 = vector.shape_cast %56 : vector<64xf32> to vector<1x1x1x64xf32>
    %58 = vector.broadcast %57 : vector<1x1x1x64xf32> to vector<2x8x8x64xf32>
    %59 = arith.mulf %54, %58 : vector<2x8x8x64xf32>
    %60 = arith.addf %53, %59 : vector<2x8x8x64xf32>
    %61 = vector.extract_strided_slice %46 {offsets = [0, 0, 0, 16], sizes = [2, 8, 8, 64], strides = [1, 1, 1, 1]} : vector<2x8x8x80xf32> to vector<2x8x8x64xf32>
    %c8 = arith.constant 8 : index
    %c0_12 = arith.constant 0 : index
    %62 = vector.load %arg2[%c8, %c0_12] : memref<27x64xf32, #tpu.memory_space<vmem>>, vector<1x64xf32>
    %63 = vector.shape_cast %62 : vector<1x64xf32> to vector<64xf32>
    %64 = vector.shape_cast %63 : vector<64xf32> to vector<1x1x1x64xf32>
    %65 = vector.broadcast %64 : vector<1x1x1x64xf32> to vector<2x8x8x64xf32>
    %66 = arith.mulf %61, %65 : vector<2x8x8x64xf32>
    %67 = arith.addf %60, %66 : vector<2x8x8x64xf32>
    %68 = vector.extract_strided_slice %0 {offsets = [0, 1, 0, 0], sizes = [2, 8, 8, 80], strides = [1, 1, 1, 1]} : vector<2x10x10x80xf32> to vector<2x8x8x80xf32>
    %69 = vector.extract_strided_slice %68 {offsets = [0, 0, 0, 0], sizes = [2, 8, 8, 64], strides = [1, 1, 1, 1]} : vector<2x8x8x80xf32> to vector<2x8x8x64xf32>
    %c9 = arith.constant 9 : index
    %c0_13 = arith.constant 0 : index
    %70 = vector.load %arg2[%c9, %c0_13] : memref<27x64xf32, #tpu.memory_space<vmem>>, vector<1x64xf32>
    %71 = vector.shape_cast %70 : vector<1x64xf32> to vector<64xf32>
    %72 = vector.shape_cast %71 : vector<64xf32> to vector<1x1x1x64xf32>
    %73 = vector.broadcast %72 : vector<1x1x1x64xf32> to vector<2x8x8x64xf32>
    %74 = arith.mulf %69, %73 : vector<2x8x8x64xf32>
    %75 = arith.addf %67, %74 : vector<2x8x8x64xf32>
    %76 = vector.extract_strided_slice %68 {offsets = [0, 0, 0, 8], sizes = [2, 8, 8, 64], strides = [1, 1, 1, 1]} : vector<2x8x8x80xf32> to vector<2x8x8x64xf32>
    %c10 = arith.constant 10 : index
    %c0_14 = arith.constant 0 : index
    %77 = vector.load %arg2[%c10, %c0_14] : memref<27x64xf32, #tpu.memory_space<vmem>>, vector<1x64xf32>
    %78 = vector.shape_cast %77 : vector<1x64xf32> to vector<64xf32>
    %79 = vector.shape_cast %78 : vector<64xf32> to vector<1x1x1x64xf32>
    %80 = vector.broadcast %79 : vector<1x1x1x64xf32> to vector<2x8x8x64xf32>
    %81 = arith.mulf %76, %80 : vector<2x8x8x64xf32>
    %82 = arith.addf %75, %81 : vector<2x8x8x64xf32>
    %83 = vector.extract_strided_slice %68 {offsets = [0, 0, 0, 16], sizes = [2, 8, 8, 64], strides = [1, 1, 1, 1]} : vector<2x8x8x80xf32> to vector<2x8x8x64xf32>
    %c11 = arith.constant 11 : index
    %c0_15 = arith.constant 0 : index
    %84 = vector.load %arg2[%c11, %c0_15] : memref<27x64xf32, #tpu.memory_space<vmem>>, vector<1x64xf32>
    %85 = vector.shape_cast %84 : vector<1x64xf32> to vector<64xf32>
    %86 = vector.shape_cast %85 : vector<64xf32> to vector<1x1x1x64xf32>
    %87 = vector.broadcast %86 : vector<1x1x1x64xf32> to vector<2x8x8x64xf32>
    %88 = arith.mulf %83, %87 : vector<2x8x8x64xf32>
    %89 = arith.addf %82, %88 : vector<2x8x8x64xf32>
    %90 = vector.extract_strided_slice %0 {offsets = [0, 1, 1, 0], sizes = [2, 8, 8, 80], strides = [1, 1, 1, 1]} : vector<2x10x10x80xf32> to vector<2x8x8x80xf32>
    %91 = vector.extract_strided_slice %90 {offsets = [0, 0, 0, 0], sizes = [2, 8, 8, 64], strides = [1, 1, 1, 1]} : vector<2x8x8x80xf32> to vector<2x8x8x64xf32>
    %c12 = arith.constant 12 : index
    %c0_16 = arith.constant 0 : index
    %92 = vector.load %arg2[%c12, %c0_16] : memref<27x64xf32, #tpu.memory_space<vmem>>, vector<1x64xf32>
    %93 = vector.shape_cast %92 : vector<1x64xf32> to vector<64xf32>
    %94 = vector.shape_cast %93 : vector<64xf32> to vector<1x1x1x64xf32>
    %95 = vector.broadcast %94 : vector<1x1x1x64xf32> to vector<2x8x8x64xf32>
    %96 = arith.mulf %91, %95 : vector<2x8x8x64xf32>
    %97 = arith.addf %89, %96 : vector<2x8x8x64xf32>
    %98 = vector.extract_strided_slice %90 {offsets = [0, 0, 0, 8], sizes = [2, 8, 8, 64], strides = [1, 1, 1, 1]} : vector<2x8x8x80xf32> to vector<2x8x8x64xf32>
    %c13 = arith.constant 13 : index
    %c0_17 = arith.constant 0 : index
    %99 = vector.load %arg2[%c13, %c0_17] : memref<27x64xf32, #tpu.memory_space<vmem>>, vector<1x64xf32>
    %100 = vector.shape_cast %99 : vector<1x64xf32> to vector<64xf32>
    %101 = vector.shape_cast %100 : vector<64xf32> to vector<1x1x1x64xf32>
    %102 = vector.broadcast %101 : vector<1x1x1x64xf32> to vector<2x8x8x64xf32>
    %103 = arith.mulf %98, %102 : vector<2x8x8x64xf32>
    %104 = arith.addf %97, %103 : vector<2x8x8x64xf32>
    %105 = vector.extract_strided_slice %90 {offsets = [0, 0, 0, 16], sizes = [2, 8, 8, 64], strides = [1, 1, 1, 1]} : vector<2x8x8x80xf32> to vector<2x8x8x64xf32>
    %c14 = arith.constant 14 : index
    %c0_18 = arith.constant 0 : index
    %106 = vector.load %arg2[%c14, %c0_18] : memref<27x64xf32, #tpu.memory_space<vmem>>, vector<1x64xf32>
    %107 = vector.shape_cast %106 : vector<1x64xf32> to vector<64xf32>
    %108 = vector.shape_cast %107 : vector<64xf32> to vector<1x1x1x64xf32>
    %109 = vector.broadcast %108 : vector<1x1x1x64xf32> to vector<2x8x8x64xf32>
    %110 = arith.mulf %105, %109 : vector<2x8x8x64xf32>
    %111 = arith.addf %104, %110 : vector<2x8x8x64xf32>
    %112 = vector.extract_strided_slice %0 {offsets = [0, 1, 2, 0], sizes = [2, 8, 8, 80], strides = [1, 1, 1, 1]} : vector<2x10x10x80xf32> to vector<2x8x8x80xf32>
    %113 = vector.extract_strided_slice %112 {offsets = [0, 0, 0, 0], sizes = [2, 8, 8, 64], strides = [1, 1, 1, 1]} : vector<2x8x8x80xf32> to vector<2x8x8x64xf32>
    %c15 = arith.constant 15 : index
    %c0_19 = arith.constant 0 : index
    %114 = vector.load %arg2[%c15, %c0_19] : memref<27x64xf32, #tpu.memory_space<vmem>>, vector<1x64xf32>
    %115 = vector.shape_cast %114 : vector<1x64xf32> to vector<64xf32>
    %116 = vector.shape_cast %115 : vector<64xf32> to vector<1x1x1x64xf32>
    %117 = vector.broadcast %116 : vector<1x1x1x64xf32> to vector<2x8x8x64xf32>
    %118 = arith.mulf %113, %117 : vector<2x8x8x64xf32>
    %119 = arith.addf %111, %118 : vector<2x8x8x64xf32>
    %120 = vector.extract_strided_slice %112 {offsets = [0, 0, 0, 8], sizes = [2, 8, 8, 64], strides = [1, 1, 1, 1]} : vector<2x8x8x80xf32> to vector<2x8x8x64xf32>
    %c16 = arith.constant 16 : index
    %c0_20 = arith.constant 0 : index
    %121 = vector.load %arg2[%c16, %c0_20] : memref<27x64xf32, #tpu.memory_space<vmem>>, vector<1x64xf32>
    %122 = vector.shape_cast %121 : vector<1x64xf32> to vector<64xf32>
    %123 = vector.shape_cast %122 : vector<64xf32> to vector<1x1x1x64xf32>
    %124 = vector.broadcast %123 : vector<1x1x1x64xf32> to vector<2x8x8x64xf32>
    %125 = arith.mulf %120, %124 : vector<2x8x8x64xf32>
    %126 = arith.addf %119, %125 : vector<2x8x8x64xf32>
    %127 = vector.extract_strided_slice %112 {offsets = [0, 0, 0, 16], sizes = [2, 8, 8, 64], strides = [1, 1, 1, 1]} : vector<2x8x8x80xf32> to vector<2x8x8x64xf32>
    %c17 = arith.constant 17 : index
    %c0_21 = arith.constant 0 : index
    %128 = vector.load %arg2[%c17, %c0_21] : memref<27x64xf32, #tpu.memory_space<vmem>>, vector<1x64xf32>
    %129 = vector.shape_cast %128 : vector<1x64xf32> to vector<64xf32>
    %130 = vector.shape_cast %129 : vector<64xf32> to vector<1x1x1x64xf32>
    %131 = vector.broadcast %130 : vector<1x1x1x64xf32> to vector<2x8x8x64xf32>
    %132 = arith.mulf %127, %131 : vector<2x8x8x64xf32>
    %133 = arith.addf %126, %132 : vector<2x8x8x64xf32>
    %134 = vector.extract_strided_slice %0 {offsets = [0, 2, 0, 0], sizes = [2, 8, 8, 80], strides = [1, 1, 1, 1]} : vector<2x10x10x80xf32> to vector<2x8x8x80xf32>
    %135 = vector.extract_strided_slice %134 {offsets = [0, 0, 0, 0], sizes = [2, 8, 8, 64], strides = [1, 1, 1, 1]} : vector<2x8x8x80xf32> to vector<2x8x8x64xf32>
    %c18 = arith.constant 18 : index
    %c0_22 = arith.constant 0 : index
    %136 = vector.load %arg2[%c18, %c0_22] : memref<27x64xf32, #tpu.memory_space<vmem>>, vector<1x64xf32>
    %137 = vector.shape_cast %136 : vector<1x64xf32> to vector<64xf32>
    %138 = vector.shape_cast %137 : vector<64xf32> to vector<1x1x1x64xf32>
    %139 = vector.broadcast %138 : vector<1x1x1x64xf32> to vector<2x8x8x64xf32>
    %140 = arith.mulf %135, %139 : vector<2x8x8x64xf32>
    %141 = arith.addf %133, %140 : vector<2x8x8x64xf32>
    %142 = vector.extract_strided_slice %134 {offsets = [0, 0, 0, 8], sizes = [2, 8, 8, 64], strides = [1, 1, 1, 1]} : vector<2x8x8x80xf32> to vector<2x8x8x64xf32>
    %c19 = arith.constant 19 : index
    %c0_23 = arith.constant 0 : index
    %143 = vector.load %arg2[%c19, %c0_23] : memref<27x64xf32, #tpu.memory_space<vmem>>, vector<1x64xf32>
    %144 = vector.shape_cast %143 : vector<1x64xf32> to vector<64xf32>
    %145 = vector.shape_cast %144 : vector<64xf32> to vector<1x1x1x64xf32>
    %146 = vector.broadcast %145 : vector<1x1x1x64xf32> to vector<2x8x8x64xf32>
    %147 = arith.mulf %142, %146 : vector<2x8x8x64xf32>
    %148 = arith.addf %141, %147 : vector<2x8x8x64xf32>
    %149 = vector.extract_strided_slice %134 {offsets = [0, 0, 0, 16], sizes = [2, 8, 8, 64], strides = [1, 1, 1, 1]} : vector<2x8x8x80xf32> to vector<2x8x8x64xf32>
    %c20 = arith.constant 20 : index
    %c0_24 = arith.constant 0 : index
    %150 = vector.load %arg2[%c20, %c0_24] : memref<27x64xf32, #tpu.memory_space<vmem>>, vector<1x64xf32>
    %151 = vector.shape_cast %150 : vector<1x64xf32> to vector<64xf32>
    %152 = vector.shape_cast %151 : vector<64xf32> to vector<1x1x1x64xf32>
    %153 = vector.broadcast %152 : vector<1x1x1x64xf32> to vector<2x8x8x64xf32>
    %154 = arith.mulf %149, %153 : vector<2x8x8x64xf32>
    %155 = arith.addf %148, %154 : vector<2x8x8x64xf32>
    %156 = vector.extract_strided_slice %0 {offsets = [0, 2, 1, 0], sizes = [2, 8, 8, 80], strides = [1, 1, 1, 1]} : vector<2x10x10x80xf32> to vector<2x8x8x80xf32>
    %157 = vector.extract_strided_slice %156 {offsets = [0, 0, 0, 0], sizes = [2, 8, 8, 64], strides = [1, 1, 1, 1]} : vector<2x8x8x80xf32> to vector<2x8x8x64xf32>
    %c21 = arith.constant 21 : index
    %c0_25 = arith.constant 0 : index
    %158 = vector.load %arg2[%c21, %c0_25] : memref<27x64xf32, #tpu.memory_space<vmem>>, vector<1x64xf32>
    %159 = vector.shape_cast %158 : vector<1x64xf32> to vector<64xf32>
    %160 = vector.shape_cast %159 : vector<64xf32> to vector<1x1x1x64xf32>
    %161 = vector.broadcast %160 : vector<1x1x1x64xf32> to vector<2x8x8x64xf32>
    %162 = arith.mulf %157, %161 : vector<2x8x8x64xf32>
    %163 = arith.addf %155, %162 : vector<2x8x8x64xf32>
    %164 = vector.extract_strided_slice %156 {offsets = [0, 0, 0, 8], sizes = [2, 8, 8, 64], strides = [1, 1, 1, 1]} : vector<2x8x8x80xf32> to vector<2x8x8x64xf32>
    %c22 = arith.constant 22 : index
    %c0_26 = arith.constant 0 : index
    %165 = vector.load %arg2[%c22, %c0_26] : memref<27x64xf32, #tpu.memory_space<vmem>>, vector<1x64xf32>
    %166 = vector.shape_cast %165 : vector<1x64xf32> to vector<64xf32>
    %167 = vector.shape_cast %166 : vector<64xf32> to vector<1x1x1x64xf32>
    %168 = vector.broadcast %167 : vector<1x1x1x64xf32> to vector<2x8x8x64xf32>
    %169 = arith.mulf %164, %168 : vector<2x8x8x64xf32>
    %170 = arith.addf %163, %169 : vector<2x8x8x64xf32>
    %171 = vector.extract_strided_slice %156 {offsets = [0, 0, 0, 16], sizes = [2, 8, 8, 64], strides = [1, 1, 1, 1]} : vector<2x8x8x80xf32> to vector<2x8x8x64xf32>
    %c23 = arith.constant 23 : index
    %c0_27 = arith.constant 0 : index
    %172 = vector.load %arg2[%c23, %c0_27] : memref<27x64xf32, #tpu.memory_space<vmem>>, vector<1x64xf32>
    %173 = vector.shape_cast %172 : vector<1x64xf32> to vector<64xf32>
    %174 = vector.shape_cast %173 : vector<64xf32> to vector<1x1x1x64xf32>
    %175 = vector.broadcast %174 : vector<1x1x1x64xf32> to vector<2x8x8x64xf32>
    %176 = arith.mulf %171, %175 : vector<2x8x8x64xf32>
    %177 = arith.addf %170, %176 : vector<2x8x8x64xf32>
    %178 = vector.extract_strided_slice %0 {offsets = [0, 2, 2, 0], sizes = [2, 8, 8, 80], strides = [1, 1, 1, 1]} : vector<2x10x10x80xf32> to vector<2x8x8x80xf32>
    %179 = vector.extract_strided_slice %178 {offsets = [0, 0, 0, 0], sizes = [2, 8, 8, 64], strides = [1, 1, 1, 1]} : vector<2x8x8x80xf32> to vector<2x8x8x64xf32>
    %c24 = arith.constant 24 : index
    %c0_28 = arith.constant 0 : index
    %180 = vector.load %arg2[%c24, %c0_28] : memref<27x64xf32, #tpu.memory_space<vmem>>, vector<1x64xf32>
    %181 = vector.shape_cast %180 : vector<1x64xf32> to vector<64xf32>
    %182 = vector.shape_cast %181 : vector<64xf32> to vector<1x1x1x64xf32>
    %183 = vector.broadcast %182 : vector<1x1x1x64xf32> to vector<2x8x8x64xf32>
    %184 = arith.mulf %179, %183 : vector<2x8x8x64xf32>
    %185 = arith.addf %177, %184 : vector<2x8x8x64xf32>
    %186 = vector.extract_strided_slice %178 {offsets = [0, 0, 0, 8], sizes = [2, 8, 8, 64], strides = [1, 1, 1, 1]} : vector<2x8x8x80xf32> to vector<2x8x8x64xf32>
    %c25 = arith.constant 25 : index
    %c0_29 = arith.constant 0 : index
    %187 = vector.load %arg2[%c25, %c0_29] : memref<27x64xf32, #tpu.memory_space<vmem>>, vector<1x64xf32>
    %188 = vector.shape_cast %187 : vector<1x64xf32> to vector<64xf32>
    %189 = vector.shape_cast %188 : vector<64xf32> to vector<1x1x1x64xf32>
    %190 = vector.broadcast %189 : vector<1x1x1x64xf32> to vector<2x8x8x64xf32>
    %191 = arith.mulf %186, %190 : vector<2x8x8x64xf32>
    %192 = arith.addf %185, %191 : vector<2x8x8x64xf32>
    %193 = vector.extract_strided_slice %178 {offsets = [0, 0, 0, 16], sizes = [2, 8, 8, 64], strides = [1, 1, 1, 1]} : vector<2x8x8x80xf32> to vector<2x8x8x64xf32>
    %c26 = arith.constant 26 : index
    %c0_30 = arith.constant 0 : index
    %194 = vector.load %arg2[%c26, %c0_30] : memref<27x64xf32, #tpu.memory_space<vmem>>, vector<1x64xf32>
    %195 = vector.shape_cast %194 : vector<1x64xf32> to vector<64xf32>
    %196 = vector.shape_cast %195 : vector<64xf32> to vector<1x1x1x64xf32>
    %197 = vector.broadcast %196 : vector<1x1x1x64xf32> to vector<2x8x8x64xf32>
    %198 = arith.mulf %193, %197 : vector<2x8x8x64xf32>
    %199 = arith.addf %192, %198 : vector<2x8x8x64xf32>
    %c0_31 = arith.constant 0 : index
    %c0_32 = arith.constant 0 : index
    %200 = vector.load %arg3[%c0_31, %c0_32] : memref<1x64xf32, #tpu.memory_space<vmem>>, vector<1x64xf32>
    %201 = vector.shape_cast %200 : vector<1x64xf32> to vector<64xf32>
    %202 = vector.shape_cast %201 : vector<64xf32> to vector<1x1x1x64xf32>
    %203 = vector.broadcast %202 : vector<1x1x1x64xf32> to vector<2x8x8x64xf32>
    %204 = arith.addf %199, %203 : vector<2x8x8x64xf32>
    %cst_33 = arith.constant 0.000000e+00 : f32
    %205 = vector.broadcast %cst_33 : f32 to vector<2x8x8x64xf32>
    %206 = arith.maximumf %204, %205 : vector<2x8x8x64xf32>
    %207 = vector.shape_cast %206 : vector<2x8x8x64xf32> to vector<128x64xf32>
    %c0_34 = arith.constant 0 : index
    %c0_35 = arith.constant 0 : index
    %208 = vector.load %arg4[%c0_34, %c0_35] : memref<64x128xf32, #tpu.memory_space<vmem>>, vector<64x128xf32>
    %cst_36 = arith.constant dense<0.000000e+00> : vector<128x128xf32>
    %209 = tpu.matmul %207, %208, %cst_36 {dimension_numbers = #tpu.dot_dimension_numbers<[1], [0], [0], [1], [0, 0, 1, 1], [], []>} : vector<128x64xf32>, vector<64x128xf32>, vector<128x128xf32> -> vector<128x128xf32>
    %c0_37 = arith.constant 0 : index
    %c0_38 = arith.constant 0 : index
    %210 = vector.load %arg5[%c0_37, %c0_38] : memref<1x128xf32, #tpu.memory_space<vmem>>, vector<1x128xf32>
    %211 = vector.shape_cast %210 : vector<1x128xf32> to vector<128xf32>
    %212 = vector.shape_cast %211 : vector<128xf32> to vector<1x128xf32>
    %213 = vector.broadcast %212 : vector<1x128xf32> to vector<128x128xf32>
    %214 = arith.addf %209, %213 : vector<128x128xf32>
    %cst_39 = arith.constant 0.000000e+00 : f32
    %215 = vector.broadcast %cst_39 : f32 to vector<128x128xf32>
    %216 = arith.maximumf %214, %215 : vector<128x128xf32>
    %217 = vector.shape_cast %216 : vector<128x128xf32> to vector<2x64x128xf32>
    %c0_40 = arith.constant 0 : index
    %c0_41 = arith.constant 0 : index
    %c0_42 = arith.constant 0 : index
    %218 = vector.load %arg6[%c0_40, %c0_41, %c0_42] : memref<2x64x128xf32, #tpu.memory_space<vmem>>, vector<2x64x128xf32>
    tpu.vector_store %arg6[%c0_40, %c0_41, %c0_42], %217 {strides = array<i32>} : memref<2x64x128xf32, #tpu.memory_space<vmem>>, vector<2x64x128xf32>,
    return
  }
  func.func @transform_0(%arg0: i32) -> (i32, i32, i32, i32) {
    %c0_i32 = arith.constant 0 : i32
    %c0_i32_0 = arith.constant 0 : i32
    %c0_i32_1 = arith.constant 0 : i32
    %c0_i32_2 = arith.constant 0 : i32
    %c0_i32_3 = arith.constant 0 : i32
    return %c0_i32, %c0_i32_0, %c0_i32_1, %c0_i32_2 : i32, i32, i32, i32
  }
  func.func @transform_1(%arg0: i32) -> (i32, i32) {
    %c0_i32 = arith.constant 0 : i32
    %c0_i32_0 = arith.constant 0 : i32
    %c0_i32_1 = arith.constant 0 : i32
    return %c0_i32, %c0_i32_0 : i32, i32
  }
  func.func @transform_2(%arg0: i32) -> (i32, i32) {
    %c0_i32 = arith.constant 0 : i32
    %c0_i32_0 = arith.constant 0 : i32
    %c0_i32_1 = arith.constant 0 : i32
    return %c0_i32, %c0_i32_0 : i32, i32
  }
  func.func @transform_3(%arg0: i32) -> (i32, i32) {
    %c0_i32 = arith.constant 0 : i32
    %c0_i32_0 = arith.constant 0 : i32
    %c0_i32_1 = arith.constant 0 : i32
    return %c0_i32, %c0_i32_0 : i32, i32
  }
  func.func @transform_4(%arg0: i32) -> (i32, i32) {
    %c0_i32 = arith.constant 0 : i32
    %c0_i32_0 = arith.constant 0 : i32
    %c0_i32_1 = arith.constant 0 : i32
    return %c0_i32, %c0_i32_0 : i32, i32
  }
  func.func @transform_5(%arg0: i32) -> (i32, i32, i32) {
    %c0_i32 = arith.constant 0 : i32
    %c0_i32_0 = arith.constant 0 : i32
    %c0_i32_1 = arith.constant 0 : i32
    %c0_i32_2 = arith.constant 0 : i32
    return %c0_i32, %c0_i32_0, %c0_i32_1 : i32, i32, i32
  }
}

</mosaic_0001>

<bundles_post_ra>
// kernel: tpu_custom_call.1
= control target key start
LH: loop header
LB: loop body
LE: loop exit
PB: predicated region body
PF: predicated region fallthrough
CT: control target
= control target key end

     0   :  { %s4268_s22 = smov 8   ;;  %s4269_s25 = smov 16   ;;  %s7906_s0 = inlined_call_operand.vmem [shape: f32[2,10,10,80], index: 0, kind: input, shape index: {}]   ;;  %s7907_s1 = inlined_call_operand.vmem [shape: f32[27,64], index: 1, kind: input, shape index: {}]   ;;  %s7908_s2 = inlined_call_operand.vmem [shape: f32[1,64], index: 2, kind: input, shape index: {}]   ;;  %s7909_s3 = inlined_call_operand.vmem [shape: f32[64,128], index: 3, kind: input, shape index: {}]   ;;  %s7910_s4 = inlined_call_operand.vmem [shape: f32[1,128], index: 4, kind: input, shape index: {}]   ;;  %s7911_s5 = inlined_call_operand.hbm [shape: f32[2,64,128], index: 5, kind: output, shape index: {}]  }
   0x1   :  { %v4095_v0 = vld [vmem:[%s7907_s1 + $0x1] ss:$0 sm:$0xff]  ;;  %v4096_v1 = vld [vmem:[%s7907_s1 + $0x2] ss:$0 sm:$0xff]  ;;  %v4097_v2 = vld [vmem:[%s7907_s1 + $0x4] ss:$0 sm:$0xff] }
   0x2   :  { %98 = vrot.lane.b32.xlu0 %v4095_v0, %s4268_s22  ;;  %200 = vrot.lane.b32.xlu2 %v4096_v1, %s4269_s25 }
   0x3   :  { %449 = vrot.lane.b32.xlu1 %v4097_v2, %s4268_s22 }
   0x4   :  { %10 = vsyncpa [#allocation3], 0  ;;  %v4319_v3 = vld [vmem:[%s7906_s0 + $0x30] sm:$0xff]  ;;  %v4329_v5 = vld [vmem:[%s7906_s0] sm:$0xff]  ;;  %s4270_s7 = smov 120   ;;  %s4271_s12 = smov 112  }
   0x5   :  { %v4324_v4 = vld [vmem:[%s7906_s0 + $0x10] sm:$0xff]  ;;  %v4340_v10 = vld [vmem:[%s7906_s0 + $0x40] sm:$0xff]  ;;  %v4455_v49 = vld [vmem:[%s7906_s0 + $0x8] sm:$0x3]  ;;  %vm365_vm0 = vcmask 1046528   ;;  %vm876_vm1 = vcmask 1045504  }
   0x6   :  { %v4345_v11 = vld [vmem:[%s7906_s0 + $0x20] sm:$0xff]  ;;  %v4350_v12 = vld [vmem:[%s7906_s0 + $0x50] sm:$0xff]  ;;  %v4470_v57 = vld [vmem:[%s7906_s0 + $0x28] sm:$0x3]  ;;  %vm3885_vm2 = vcmask 523264   ;;  %s4037_s16 = sshll.u32 %s7911_s5, 4  ;;  %s4038_s16 = int_to_ptr.hbm [resolvable:$true] %s4037_s16 }
   0x7   :  { %v4361_v16 = vld [vmem:[%s7906_s0 + $0x70] sm:$0xff]  ;;  %v4366_v17 = vld [vmem:[%s7906_s0 + $0x60] sm:$0xff]  ;;  %v4475_v58 = vld [vmem:[%s7906_s0 + $0x38] sm:$0x3]  ;;  %s4272_s17 = smov [#allocation2]   ;;  %s4273_s19 = smov 128  }
   0x8   :  { %v4371_v18 = vld [vmem:[%s7906_s0 + $0xa0] sm:$0xff]  ;;  %v4387_v23 = vld [vmem:[%s7906_s0 + $0xb0] sm:$0xff]  ;;  %v4480_v59 = vld [vmem:[%s7906_s0 + $0x18] sm:$0x3]  ;;  %s4035_s18 = sshll.u32 %s4272_s17, 4  ;;  %s4036_s18 = int_to_ptr.vmem [resolvable:$true] %s4035_s18 }
   0x9   :  { %v4382_v22 = vld [vmem:[%s7906_s0 + $0xc0] sm:$0xff]  ;;  %v4392_v24 = vld [vmem:[%s7906_s0 + $0xd0] sm:$0xff] }
   0xa   :  { %v4403_v28 = vld [vmem:[%s7906_s0 + $0xf0] sm:$0xff]  ;;  %v4408_v29 = vld [vmem:[%s7906_s0 + $0xe0] sm:$0xff] }
   0xb   :  { %v4413_v30 = vld [vmem:[%s7906_s0 + $0x100] sm:$0xff]  ;;  %v4424_v35 = vld [vmem:[%s7906_s0 + $0x110] sm:$0xff] }
  0x5c   :  { %v201_v34 = vpop.permute.xlu2 %200 }
  0x5d   :  { %v205_v36 = vmul.f32 %v201_v34, %v4345_v11  ;;  %v203_v37 = vmul.f32 %v201_v34, %v4329_v5  ;;  %v208_v39 = vmul.f32 %v201_v34, %v4350_v12  ;;  %v204_v40 = vmul.f32 %v201_v34, %v4324_v4 }
  0x5e   :  { %v206_v41 = vmul.f32 %v201_v34, %v4319_v3  ;;  %v211_v42 = vmul.f32 %v201_v34, %v4371_v18  ;;  %v207_v43 = vmul.f32 %v201_v34, %v4340_v10  ;;  %v209_v44 = vmul.f32 %v201_v34, %v4366_v17 }
  0x5f   :  { %v214_v45 = vmul.f32 %v201_v34, %v4392_v24  ;;  %v210_v46 = vmul.f32 %v201_v34, %v4361_v16  ;;  %v212_v47 = vmul.f32 %v201_v34, %v4387_v23  ;;  %v217_v52 = vmul.f32 %v201_v34, %v4413_v30 }
  0x60   :  { %v213_v53 = vmul.f32 %v201_v34, %v4382_v22  ;;  %v215_v54 = vmul.f32 %v201_v34, %v4408_v29  ;;  %v216_v1 = vmul.f32 %v201_v34, %v4403_v28 }
  0x74   :  { %v99_v6 = vpop.permute.xlu0 %98 }
  0x75   :  { %v104_v7 = vmul.f32 %v99_v6, %v4319_v3  ;;  %v102_v8 = vmul.f32 %v99_v6, %v4324_v4  ;;  %v101_v9 = vmul.f32 %v99_v6, %v4329_v5  ;;  %v105_v13 = vmul.f32 %v99_v6, %v4340_v10  ;;  %v4450_v48 = vpop.permute.xlu1 %449 }
  0x76   :  { %v103_v14 = vmul.f32 %v99_v6, %v4345_v11  ;;  %v106_v15 = vmul.f32 %v99_v6, %v4350_v12  ;;  %v108_v19 = vmul.f32 %v99_v6, %v4361_v16  ;;  %v107_v20 = vmul.f32 %v99_v6, %v4366_v17 }
  0x77   :  { %139 = vrot.lane.b32.xlu2 %v104_v7, %s4270_s7  ;;  %135 = vrot.lane.b32.xlu1 %v102_v8, %s4270_s7  ;;  %v109_v21 = vmul.f32 %v99_v6, %v4371_v18  ;;  %v111_v25 = vmul.f32 %v99_v6, %v4382_v22  ;;  %v110_v26 = vmul.f32 %v99_v6, %v4387_v23 }
  0x78   :  { %133 = vrot.lane.b32.xlu0 %v101_v9, %s4270_s7  ;;  %v112_v27 = vmul.f32 %v99_v6, %v4392_v24  ;;  %v114_v31 = vmul.f32 %v99_v6, %v4403_v28  ;;  %v113_v32 = vmul.f32 %v99_v6, %v4408_v29  ;;  %v115_v33 = vmul.f32 %v99_v6, %v4413_v30 }
  0x79   :  { %v116_v38 = vmul.f32 %v99_v6, %v4424_v35  ;;  %v452_v50 = vmul.f32 %v4450_v48, %v4329_v5  ;;  %v453_v51 = vmul.f32 %v4450_v48, %v4455_v49  ;;  %v456_v60 = vmul.f32 %v4450_v48, %v4345_v11 }
  0x7a   :  { %v457_v62 = vmul.f32 %v4450_v48, %v4470_v57  ;;  %v458_v63 = vmul.f32 %v4450_v48, %v4319_v3  ;;  %v459_v0 = vmul.f32 %v4450_v48, %v4475_v58  ;;  %v454_v2 = vmul.f32 %v4450_v48, %v4324_v4 }
  0x7b   :  { %v516_v55 = vrot.slane %v452_v50, 1  ;;  %v517_v56 = vrot.slane %v453_v51, 1  ;;  %v455_v6 = vmul.f32 %v4450_v48, %v4480_v59  ;;  %v218_v7 = vmul.f32 %v201_v34, %v4424_v35 }
  0x7c   :  { %v522_v8 = vrot.slane %v456_v60, 1  ;;  %v523_v9 = vrot.slane %v457_v62, 1  ;;  %v464_v34 = vmul.f32 %v4450_v48, %v4366_v17  ;;  %v468_v51 = vmul.f32 %v4450_v48, %v4371_v18 }
  0x7d   :  { %v518_v61 = vsel %vm365_vm0, %v516_v55, %v517_v56  ;;  %v466_v60 = vmul.f32 %v4450_v48, %v4361_v16 }
  0x7e   :  { %v540_v62 = vrot.slane %v468_v51, 1 }
  0x7f   :  { %141 = vrot.lane.b32.xlu2 %v105_v13, %s4270_s7  ;;  %137 = vrot.lane.b32.xlu1 %v103_v14, %s4270_s7  ;;  %v525_v13 = vrot.slane %v458_v63, 1  ;;  %v526_v14 = vrot.slane %v459_v0, 1 }
  0x80   :  { %143 = vrot.lane.b32.xlu0 %v106_v15, %s4270_s7  ;;  %v519_v15 = vrot.slane %v454_v2, 1  ;;  %v4569_v2 = vld [vmem:[%s7906_s0 + $0xd8] sm:$0x3] }
  0x87   :  { %147 = vrot.lane.b32.xlu2 %v108_v19, %s4270_s7  ;;  %145 = vrot.lane.b32.xlu1 %v107_v20, %s4270_s7  ;;  %v520_v19 = vrot.slane %v455_v6, 1  ;;  %v4503_v20 = vld [vmem:[%s7906_s0 + $0x58] sm:$0x3]  ;;  %v537_v6 = vrot.slane %v466_v60, 1 }
  0x88   :  { %149 = vrot.lane.b32.xlu0 %v109_v21, %s4270_s7  ;;  %v4508_v21 = vld [vmem:[%s7906_s0 + $0x68] sm:$0x3] }
  0x8f   :  { %153 = vrot.lane.b32.xlu2 %v111_v25, %s4270_s7  ;;  %151 = vrot.lane.b32.xlu1 %v110_v26, %s4270_s7  ;;  %v524_v25 = vsel %vm365_vm0, %v522_v8, %v523_v9  ;;  %v527_v26 = vsel %vm365_vm0, %v525_v13, %v526_v14  ;;  %v4574_v8 = vld [vmem:[%s7906_s0 + $0xe8] sm:$0x3]  ;;  %v474_v13 = vmul.f32 %v4450_v48, %v4392_v24 }
  0x90   :  { %155 = vrot.lane.b32.xlu0 %v112_v27, %s4270_s7  ;;  %v4515_v27 = vld [vmem:[%s7906_s0 + $0x48] sm:$0x3]  ;;  %v475_v14 = vmul.f32 %v4450_v48, %v4569_v2 }
  0x91   :  { %v4579_v9 = vld [vmem:[%s7906_s0 + $0xc8] sm:$0x3] }
  0x97   :  { %159 = vrot.lane.b32.xlu2 %v114_v31, %s4270_s7  ;;  %157 = vrot.lane.b32.xlu1 %v113_v32, %s4270_s7  ;;  %v521_v31 = vsel %vm365_vm0, %v519_v15, %v520_v19  ;;  %v462_v32 = vmul.f32 %v4450_v48, %v4350_v12 }
  0x98   :  { %161 = vrot.lane.b32.xlu0 %v115_v33, %s4270_s7  ;;  %v463_v33 = vmul.f32 %v4450_v48, %v4503_v20 }
  0x9f   :  { %239 = vrot.lane.b32.xlu2 %v205_v36, %s4271_s12  ;;  %163 = vrot.lane.b32.xlu1 %v116_v38, %s4270_s7  ;;  %v465_v36 = vmul.f32 %v4450_v48, %v4508_v21  ;;  %v461_v38 = vmul.f32 %v4450_v48, %v4515_v27 }
  0xa0   :  { %235 = vrot.lane.b32.xlu0 %v203_v37, %s4271_s12  ;;  %v460_v37 = vmul.f32 %v4450_v48, %v4340_v10 }
  0xa7   :  { %245 = vrot.lane.b32.xlu2 %v208_v39, %s4271_s12  ;;  %237 = vrot.lane.b32.xlu1 %v204_v40, %s4271_s12  ;;  %v531_v39 = vrot.slane %v462_v32, 1  ;;  %v532_v40 = vrot.slane %v463_v33, 1  ;;  %v472_v32 = vmul.f32 %v4450_v48, %v4382_v22  ;;  %v473_v33 = vmul.f32 %v4450_v48, %v4579_v9 }
  0xa8   :  { %241 = vrot.lane.b32.xlu0 %v206_v41, %s4271_s12  ;;  %v534_v41 = vrot.slane %v464_v34, 1  ;;  %v549_v34 = vrot.slane %v474_v13, 1 }
  0xa9   :  { %v533_v50 = vsel %vm365_vm0, %v531_v39, %v532_v40  ;;  %v546_v39 = vrot.slane %v472_v32, 1  ;;  %v547_v40 = vrot.slane %v473_v33, 1 }
  0xaf   :  { %251 = vrot.lane.b32.xlu2 %v211_v42, %s4271_s12  ;;  %243 = vrot.lane.b32.xlu1 %v207_v43, %s4271_s12  ;;  %v535_v42 = vrot.slane %v465_v36, 1  ;;  %v528_v43 = vrot.slane %v460_v37, 1  ;;  %v550_v36 = vrot.slane %v475_v14, 1 }
  0xb0   :  { %247 = vrot.lane.b32.xlu0 %v209_v44, %s4271_s12  ;;  %v529_v44 = vrot.slane %v461_v38, 1 }
  0xb2   :  { %v530_v56 = vsel %vm365_vm0, %v528_v43, %v529_v44  ;;  %v4612_v43 = vld [vmem:[%s7906_s0 + $0xf8] sm:$0x3]  ;;  %v551_v44 = vsel %vm365_vm0, %v549_v34, %v550_v36 }
  0xb3   :  { %v479_v60 = vmul.f32 %v4450_v48, %v4612_v43 }
  0xb7   :  { %257 = vrot.lane.b32.xlu2 %v214_v45, %s4271_s12  ;;  %249 = vrot.lane.b32.xlu1 %v210_v46, %s4271_s12  ;;  %v4536_v45 = vld [vmem:[%s7906_s0 + $0xa8] sm:$0x3]  ;;  %v4541_v46 = vld [vmem:[%s7906_s0 + $0xb8] sm:$0x3] }
  0xb8   :  { %253 = vrot.lane.b32.xlu0 %v212_v47, %s4271_s12  ;;  %v4546_v47 = vld [vmem:[%s7906_s0 + $0x78] sm:$0x3]  ;;  %v471_v55 = vmul.f32 %v4450_v48, %v4541_v46 }
  0xbf   :  { %263 = vrot.lane.b32.xlu2 %v217_v52, %s4271_s12  ;;  %255 = vrot.lane.b32.xlu1 %v213_v53, %s4271_s12  ;;  %v536_v52 = vsel %vm365_vm0, %v534_v41, %v535_v42  ;;  %v469_v53 = vmul.f32 %v4450_v48, %v4536_v45  ;;  %v4602_v41 = vld [vmem:[%s7906_s0 + $0x108] sm:$0x3]  ;;  %v4607_v42 = vld [vmem:[%s7906_s0 + $0x118] sm:$0x3] }
  0xc0   :  { %259 = vrot.lane.b32.xlu0 %v215_v54, %s4271_s12  ;;  %v470_v54 = vmul.f32 %v4450_v48, %v4387_v23 }
  0xc1   :  { %v541_v63 = vrot.slane %v469_v53, 1  ;;  %v482_v53 = vmul.f32 %v4450_v48, %v4424_v35 }
  0xc2   :  { %v543_v0 = vrot.slane %v470_v54, 1  ;;  %v483_v54 = vmul.f32 %v4450_v48, %v4607_v42 }
  0xc3   :  { %v542_v15 = vsel %vm365_vm0, %v540_v62, %v541_v63 }
  0xc7   :  { %261 = vrot.lane.b32.xlu1 %v216_v1, %s4271_s12  ;;  %564 = vrot.lane.b32.xlu2 %v518_v61, %s4270_s7  ;;  %v467_v61 = vmul.f32 %v4450_v48, %v4546_v47  ;;  %v544_v1 = vrot.slane %v471_v55, 1  ;;  %v548_v55 = vsel %vm365_vm0, %v546_v39, %v547_v40 }
  0xc8   :  { %265 = vrot.lane.b32.xlu0 %v218_v7, %s4271_s12 }
  0xc9   :  { %v538_v7 = vrot.slane %v467_v61, 1  ;;  %v545_v19 = vsel %vm365_vm0, %v543_v0, %v544_v1  ;;  %v561_v0 = vrot.slane %v482_v53, 1  ;;  %v562_v1 = vrot.slane %v483_v54, 1 }
  0xcb   :  { %v563_v14 = vsel %vm365_vm0, %v561_v0, %v562_v1 }
  0xcf   :  { %568 = vrot.lane.b32.xlu1 %v524_v25, %s4270_s7  ;;  %570 = vrot.lane.b32.xlu2 %v527_v26, %s4270_s7  ;;  %v476_v25 = vmul.f32 %v4450_v48, %v4408_v29  ;;  %v477_v26 = vmul.f32 %v4450_v48, %v4574_v8 }
  0xd0   :  { %566 = vrot.lane.b32.xlu0 %v521_v31, %s4270_s7  ;;  %v539_v31 = vsel %vm365_vm0, %v537_v6, %v538_v7  ;;  %v556_v7 = vrot.slane %v479_v60, 1 }
  0xd1   :  { %v552_v37 = vrot.slane %v476_v25, 1  ;;  %v553_v38 = vrot.slane %v477_v26, 1 }
  0xd3   :  { %v554_v51 = vsel %vm365_vm0, %v552_v37, %v553_v38  ;;  %v4660_v37 = vpop.permute.xlu2 %139 }
  0xd7   :  { %574 = vrot.lane.b32.xlu1 %v533_v50, %s4270_s7  ;;  %576 = vrot.lane.b32.xlu2 %v536_v52, %s4270_s7  ;;  %v480_v50 = vmul.f32 %v4450_v48, %v4413_v30  ;;  %v481_v52 = vmul.f32 %v4450_v48, %v4602_v41 }
  0xd8   :  { %572 = vrot.lane.b32.xlu0 %v530_v56, %s4270_s7  ;;  %v478_v56 = vmul.f32 %v4450_v48, %v4403_v28 }
  0xd9   :  { %v558_v62 = vrot.slane %v480_v50, 1  ;;  %v559_v63 = vrot.slane %v481_v52, 1 }
  0xda   :  { %v555_v6 = vrot.slane %v478_v56, 1 }
  0xdb   :  { %v560_v13 = vsel %vm365_vm0, %v558_v62, %v559_v63  ;;  %v4664_v39 = vpop.permute.xlu2 %141 }
  0xdc   :  { %v557_v48 = vsel %vm365_vm0, %v555_v6, %v556_v7  ;;  %7956 = vst [vmem:[#allocation12_spill] sm:$0xff] %v4664_v39 }
  0xdf   :  { %580 = vrot.lane.b32.xlu1 %v542_v15, %s4270_s7  ;;  %582 = vrot.lane.b32.xlu2 %v545_v19, %s4270_s7  ;;  %v4099_v19 = vld [vmem:[%s7907_s1 + $0x5] ss:$0 sm:$0xff] }
  0xe0   :  { %578 = vrot.lane.b32.xlu0 %v539_v31, %s4270_s7 }
  0xe7   :  { %586 = vrot.lane.b32.xlu1 %v551_v44, %s4270_s7  ;;  %588 = vrot.lane.b32.xlu2 %v554_v51, %s4270_s7  ;;  %v4668_v44 = vpop.permute.xlu2 %147 }
  0xe8   :  { %584 = vrot.lane.b32.xlu0 %v548_v55, %s4270_s7 }
  0xea   :  { %v4632_v61 = vpop.permute.xlu0 %133 }
  0xeb   :  { %7949 = vst [vmem:[#allocation5_spill] sm:$0xff] %v4632_v61 }
  0xef   :  { %592 = vrot.lane.b32.xlu1 %v560_v13, %s4270_s7  ;;  %594 = vrot.lane.b32.xlu2 %v563_v14, %s4270_s7  ;;  %v4672_v51 = vpop.permute.xlu2 %153 }
  0xf0   :  { %590 = vrot.lane.b32.xlu0 %v557_v48, %s4270_s7 }
  0xf2   :  { %v4640_v15 = vpop.permute.xlu0 %143 }
  0xf7   :  { %v4678_v54 = vpop.permute.xlu2 %159 }
  0xf8   :  { %631 = vrot.lane.b32.xlu0 %v4099_v19, %s4269_s25  ;;  %7961 = vst [vmem:[#allocation17_spill] sm:$0xff] %v4678_v54 }
  0xfa   :  { %v4646_v25 = vpop.permute.xlu0 %149 }
  0xfb   :  { %7950 = vst [vmem:[#allocation6_spill] sm:$0xff] %v4646_v25 }
  0xff   :  { %v4682_v56 = vpop.permute.xlu2 %239 }
 0x102   :  { %v4648_v26 = vpop.permute.xlu0 %155 }
 0x103   :  { %7951 = vst [vmem:[#allocation7_spill] sm:$0xff] %v4648_v26 }
 0x107   :  { %v4686_v62 = vpop.permute.xlu2 %245 }
 0x108   :  { %7964 = vst [vmem:[#allocation20_spill] sm:$0xff] %v4686_v62 }
 0x10a   :  { %v4650_v31 = vpop.permute.xlu0 %161 }
 0x10b   :  { %7952 = vst [vmem:[#allocation8_spill] sm:$0xff] %v4650_v31 }
 0x112   :  { %v4652_v32 = vpop.permute.xlu0 %235 }
 0x113   :  { %7953 = vst [vmem:[#allocation9_spill] sm:$0xff] %v4652_v32 }
 0x11a   :  { %v4654_v33 = vpop.permute.xlu0 %241 }
 0x122   :  { %v4656_v34 = vpop.permute.xlu0 %247 }
 0x12a   :  { %v4658_v36 = vpop.permute.xlu0 %253 }
 0x12b   :  { %7954 = vst [vmem:[#allocation10_spill] sm:$0xff] %v4658_v36 }
 0x132   :  { %v4662_v38 = vpop.permute.xlu0 %259 }
 0x133   :  { %7955 = vst [vmem:[#allocation11_spill] sm:$0xff] %v4662_v38 }
 0x13a   :  { %v4666_v40 = vpop.permute.xlu0 %265 }
 0x13b   :  { %7957 = vst [vmem:[#allocation13_spill] sm:$0xff] %v4666_v40 }
 0x142   :  { %v4670_v50 = vpop.permute.xlu0 %566 }
 0x143   :  { %7958 = vst [vmem:[#allocation14_spill] sm:$0xff] %v4670_v50 }
 0x14a   :  { %v4674_v52 = vpop.permute.xlu0 %572 }
 0x14b   :  { %7959 = vst [vmem:[#allocation15_spill] sm:$0xff] %v4674_v52 }
 0x152   :  { %v4676_v53 = vpop.permute.xlu0 %578 }
 0x153   :  { %7960 = vst [vmem:[#allocation16_spill] sm:$0xff] %v4676_v53 }
 0x15a   :  { %v4680_v55 = vpop.permute.xlu0 %584 }
 0x15b   :  { %7962 = vst [vmem:[#allocation18_spill] sm:$0xff] %v4680_v55 }
 0x162   :  { %v4684_v60 = vpop.permute.xlu0 %590 }
 0x163   :  { %7963 = vst [vmem:[#allocation19_spill] sm:$0xff] %v4684_v60 }
 0x16a   :  { %v4688_v63 = vpop.permute.xlu0 %631 }
 0x16b   :  { %v638_v0 = vmul.f32 %v4688_v63, %v4345_v11  ;;  %v639_v1 = vmul.f32 %v4688_v63, %v4470_v57  ;;  %v636_v6 = vmul.f32 %v4688_v63, %v4324_v4  ;;  %v637_v7 = vmul.f32 %v4688_v63, %v4480_v59 }
 0x16c   :  { %v634_v13 = vmul.f32 %v4688_v63, %v4329_v5  ;;  %v635_v14 = vmul.f32 %v4688_v63, %v4455_v49  ;;  %v644_v60 = vmul.f32 %v4688_v63, %v4350_v12  ;;  %v645_v38 = vmul.f32 %v4688_v63, %v4503_v20 }
 0x16d   :  { %v704_v48 = vrot.slane %v638_v0, 1  ;;  %v705_v19 = vrot.slane %v639_v1, 1  ;;  %v701_v52 = vrot.slane %v636_v6, 1  ;;  %v702_v39 = vrot.slane %v637_v7, 1 }
 0x16e   :  { %v698_v32 = vrot.slane %v634_v13, 1  ;;  %v699_v61 = vrot.slane %v635_v14, 1  ;;  %v642_v55 = vmul.f32 %v4688_v63, %v4340_v10  ;;  %v643_v0 = vmul.f32 %v4688_v63, %v4515_v27 }
 0x16f   :  { %v706_v54 = vsel %vm365_vm0, %v704_v48, %v705_v19  ;;  %v703_v25 = vsel %vm365_vm0, %v701_v52, %v702_v39  ;;  %v640_v6 = vmul.f32 %v4688_v63, %v4319_v3  ;;  %v641_v39 = vmul.f32 %v4688_v63, %v4475_v58  ;;  %v4720_v52 = vpop.permute.xlu2 %251 }
 0x170   :  { %750 = vrot.lane.b32.xlu0 %v706_v54, %s4271_s12  ;;  %748 = vrot.lane.b32.xlu2 %v703_v25, %s4271_s12  ;;  %v700_v1 = vsel %vm365_vm0, %v698_v32, %v699_v61  ;;  %7965 = vst [vmem:[#allocation21_spill] sm:$0xff] %v4720_v52  ;;  %v713_v7 = vrot.slane %v644_v60, 1  ;;  %v714_v13 = vrot.slane %v645_v38, 1  ;;  %v710_v14 = vrot.slane %v642_v55, 1 }
 0x171   :  { %746 = vrot.lane.b32.xlu1 %v700_v1, %s4271_s12  ;;  %v711_v48 = vrot.slane %v643_v0, 1  ;;  %v707_v19 = vrot.slane %v640_v6, 1  ;;  %v708_v54 = vrot.slane %v641_v39, 1  ;;  %v650_v61 = vmul.f32 %v4688_v63, %v4371_v18 }
 0x172   :  { %v715_v25 = vsel %vm365_vm0, %v713_v7, %v714_v13  ;;  %v651_v1 = vmul.f32 %v4688_v63, %v4536_v45  ;;  %v648_v31 = vmul.f32 %v4688_v63, %v4361_v16  ;;  %v649_v38 = vmul.f32 %v4688_v63, %v4546_v47 }
 0x173   :  { %v712_v32 = vsel %vm365_vm0, %v710_v14, %v711_v48  ;;  %v709_v55 = vsel %vm365_vm0, %v707_v19, %v708_v54  ;;  %v646_v60 = vmul.f32 %v4688_v63, %v4366_v17  ;;  %v647_v0 = vmul.f32 %v4688_v63, %v4508_v21 }
 0x174   :  { %v722_v6 = vrot.slane %v650_v61, 1  ;;  %v723_v39 = vrot.slane %v651_v1, 1  ;;  %v719_v7 = vrot.slane %v648_v31, 1  ;;  %v720_v13 = vrot.slane %v649_v38, 1 }
 0x175   :  { %v716_v48 = vrot.slane %v646_v60, 1  ;;  %v657_v19 = vmul.f32 %v4688_v63, %v4569_v2  ;;  %v654_v61 = vmul.f32 %v4688_v63, %v4382_v22  ;;  %v655_v31 = vmul.f32 %v4688_v63, %v4579_v9 }
 0x176   :  { %v724_v54 = vsel %vm365_vm0, %v722_v6, %v723_v39  ;;  %v721_v52 = vsel %vm365_vm0, %v719_v7, %v720_v13  ;;  %v652_v38 = vmul.f32 %v4688_v63, %v4387_v23 }
 0x177   :  { %v4740_v14 = vpop.permute.xlu2 %257  ;;  %v728_v6 = vrot.slane %v654_v61, 1  ;;  %v729_v39 = vrot.slane %v655_v31, 1  ;;  %v658_v31 = vmul.f32 %v4688_v63, %v4408_v29 }
 0x178   :  { %756 = vrot.lane.b32.xlu0 %v715_v25, %s4271_s12  ;;  %754 = vrot.lane.b32.xlu2 %v712_v32, %s4271_s12  ;;  %7966 = vst [vmem:[#allocation22_spill] sm:$0xff] %v4740_v14  ;;  %v717_v25 = vrot.slane %v647_v0, 1  ;;  %v656_v32 = vmul.f32 %v4688_v63, %v4392_v24  ;;  %v732_v0 = vrot.slane %v657_v19, 1  ;;  %v725_v7 = vrot.slane %v652_v38, 1 }
 0x179   :  { %752 = vrot.lane.b32.xlu1 %v709_v55, %s4271_s12  ;;  %v653_v55 = vmul.f32 %v4688_v63, %v4541_v46  ;;  %v661_v19 = vmul.f32 %v4688_v63, %v4612_v43 }
 0x17a   :  { %v718_v1 = vsel %vm365_vm0, %v716_v48, %v717_v25  ;;  %v731_v60 = vrot.slane %v656_v32, 1  ;;  %v662_v48 = vmul.f32 %v4688_v63, %v4413_v30  ;;  %v730_v25 = vsel %vm365_vm0, %v728_v6, %v729_v39 }
 0x17b   :  { %v726_v13 = vrot.slane %v653_v55, 1  ;;  %v660_v32 = vmul.f32 %v4688_v63, %v4403_v28  ;;  %v734_v6 = vrot.slane %v658_v31, 1 }
 0x17c   :  { %v740_v38 = vrot.slane %v662_v48, 1  ;;  %v665_v48 = vmul.f32 %v4688_v63, %v4607_v42 }
 0x17d   :  { %v727_v61 = vsel %vm365_vm0, %v725_v7, %v726_v13  ;;  %v664_v13 = vmul.f32 %v4688_v63, %v4424_v35 }
 0x17f   :  { %v4760_v53 = vpop.permute.xlu2 %263 }
 0x180   :  { %762 = vrot.lane.b32.xlu0 %v724_v54, %s4271_s12  ;;  %760 = vrot.lane.b32.xlu2 %v721_v52, %s4271_s12  ;;  %7967 = vst [vmem:[#allocation23_spill] sm:$0xff] %v4760_v53  ;;  %v733_v52 = vsel %vm365_vm0, %v731_v60, %v732_v0  ;;  %v663_v54 = vmul.f32 %v4688_v63, %v4602_v41  ;;  %v737_v60 = vrot.slane %v660_v32, 1  ;;  %v738_v0 = vrot.slane %v661_v19, 1  ;;  %v4101_v32 = vld [vmem:[%s7907_s1 + $0x7] ss:$0 sm:$0xff] }
 0x181   :  { %758 = vrot.lane.b32.xlu1 %v718_v1, %s4271_s12  ;;  %v659_v1 = vmul.f32 %v4688_v63, %v4574_v8  ;;  %v743_v19 = vrot.slane %v664_v13, 1 }
 0x182   :  { %v741_v55 = vrot.slane %v663_v54, 1  ;;  %v4792_v54 = vpop.permute.xlu1 %135 }
 0x183   :  { %v735_v39 = vrot.slane %v659_v1, 1 }
 0x185   :  { %v736_v7 = vsel %vm365_vm0, %v734_v6, %v735_v39 }
 0x187   :  { %v4782_v53 = vpop.permute.xlu2 %564 }
 0x188   :  { %768 = vrot.lane.b32.xlu0 %v733_v52, %s4271_s12  ;;  %766 = vrot.lane.b32.xlu2 %v730_v25, %s4271_s12  ;;  %v742_v52 = vsel %vm365_vm0, %v740_v38, %v741_v55  ;;  %v739_v25 = vsel %vm365_vm0, %v737_v60, %v738_v0  ;;  %7968 = vst [vmem:[#allocation24_spill] sm:$0xff] %v4782_v53 }
 0x189   :  { %764 = vrot.lane.b32.xlu1 %v727_v61, %s4271_s12  ;;  %v744_v61 = vrot.slane %v665_v48, 1 }
 0x18a   :  { %v4802_v38 = vpop.permute.xlu1 %137 }
 0x18b   :  { %v745_v31 = vsel %vm365_vm0, %v743_v19, %v744_v61 }
 0x18f   :  { %v4800_v1 = vpop.permute.xlu2 %570 }
 0x190   :  { %774 = vrot.lane.b32.xlu0 %v742_v52, %s4271_s12  ;;  %772 = vrot.lane.b32.xlu2 %v739_v25, %s4271_s12 }
 0x191   :  { %770 = vrot.lane.b32.xlu1 %v736_v7, %s4271_s12 }
 0x192   :  { %v4806_v55 = vpop.permute.xlu1 %145 }
 0x197   :  { %v4804_v63 = vpop.permute.xlu2 %576 }
 0x198   :  { %960 = vrot.lane.b32.xlu2 %v4101_v32, %s4268_s22  ;;  %7969 = vst [vmem:[#allocation25_spill] sm:$0xff] %v4804_v63 }
 0x199   :  { %776 = vrot.lane.b32.xlu1 %v745_v31, %s4271_s12 }
 0x19a   :  { %v4810_v0 = vpop.permute.xlu1 %151 }
 0x19f   :  { %v4808_v60 = vpop.permute.xlu2 %582 }
 0x1a0   :  { %7970 = vst [vmem:[#allocation26_spill] sm:$0xff] %v4808_v60 }
 0x1a2   :  { %v4814_v39 = vpop.permute.xlu1 %157 }
 0x1a3   :  { %7972 = vst [vmem:[#allocation28_spill] sm:$0xff] %v4814_v39 }
 0x1a7   :  { %v4812_v6 = vpop.permute.xlu2 %588 }
 0x1a8   :  { %7971 = vst [vmem:[#allocation27_spill] sm:$0xff] %v4812_v6 }
 0x1aa   :  { %v4818_v25 = vpop.permute.xlu1 %163 }
 0x1ab   :  { %7974 = vst [vmem:[#allocation30_spill] sm:$0xff] %v4818_v25 }
 0x1af   :  { %v4816_v52 = vpop.permute.xlu2 %594 }
 0x1b0   :  { %7973 = vst [vmem:[#allocation29_spill] sm:$0xff] %v4816_v52 }
 0x1b2   :  { %v4822_v13 = vpop.permute.xlu1 %237 }
 0x1ba   :  { %v4826_v32 = vpop.permute.xlu1 %243 }
 0x1bb   :  { %7977 = vst [vmem:[#allocation33_spill] sm:$0xff] %v4826_v32 }
 0x1c2   :  { %v4832_v31 = vpop.permute.xlu1 %249 }
 0x1c3   :  { %7980 = vst [vmem:[#allocation36_spill] sm:$0xff] %v4832_v31 }
 0x1ca   :  { %v4820_v7 = vpop.permute.xlu2 %748  ;;  %v4836_v6 = vpop.permute.xlu1 %255 }
 0x1cb   :  { %7975 = vst [vmem:[#allocation31_spill] sm:$0xff] %v4820_v7 }
 0x1cc   :  { %7982 = vst [vmem:[#allocation38_spill] sm:$0xff] %v4836_v6 }
 0x1d2   :  { %v4824_v48 = vpop.permute.xlu2 %754  ;;  %v4854_v60 = vpop.permute.xlu1 %261 }
 0x1d3   :  { %7976 = vst [vmem:[#allocation32_spill] sm:$0xff] %v4824_v48 }
 0x1d4   :  { %7983 = vst [vmem:[#allocation39_spill] sm:$0xff] %v4854_v60 }
 0x1da   :  { %v4828_v19 = vpop.permute.xlu2 %760 }
 0x1db   :  { %7978 = vst [vmem:[#allocation34_spill] sm:$0xff] %v4828_v19 }
 0x1e2   :  { %v4830_v61 = vpop.permute.xlu2 %766 }
 0x1e3   :  { %7979 = vst [vmem:[#allocation35_spill] sm:$0xff] %v4830_v61 }
 0x1ea   :  { %v4834_v53 = vpop.permute.xlu2 %772 }
 0x1eb   :  { %7981 = vst [vmem:[#allocation37_spill] sm:$0xff] %v4834_v53 }
 0x1f2   :  { %v4838_v39 = vpop.permute.xlu2 %960 }
 0x1f3   :  { %v967_v52 = vmul.f32 %v4838_v39, %v4345_v11  ;;  %v968_v48 = vmul.f32 %v4838_v39, %v4470_v57  ;;  %v963_v32 = vmul.f32 %v4838_v39, %v4329_v5  ;;  %v964_v61 = vmul.f32 %v4838_v39, %v4455_v49 }
 0x1f4   :  { %v965_v19 = vmul.f32 %v4838_v39, %v4324_v4  ;;  %v966_v53 = vmul.f32 %v4838_v39, %v4480_v59  ;;  %v973_v7 = vmul.f32 %v4838_v39, %v4350_v12  ;;  %v974_v62 = vmul.f32 %v4838_v39, %v4503_v20 }
 0x1f5   :  { %v1033_v6 = vrot.slane %v967_v52, 2  ;;  %v1034_v14 = vrot.slane %v968_v48, 2  ;;  %v1027_v26 = vrot.slane %v963_v32, 2  ;;  %v1028_v40 = vrot.slane %v964_v61, 2 }
 0x1f6   :  { %v1030_v31 = vrot.slane %v965_v19, 2  ;;  %v1031_v25 = vrot.slane %v966_v53, 2  ;;  %v969_v36 = vmul.f32 %v4838_v39, %v4319_v3  ;;  %v970_v52 = vmul.f32 %v4838_v39, %v4475_v58 }
 0x1f7   :  { %v1035_v50 = vsel %vm876_vm1, %v1033_v6, %v1034_v14  ;;  %v1029_v53 = vsel %vm876_vm1, %v1027_v26, %v1028_v40  ;;  %v971_v32 = vmul.f32 %v4838_v39, %v4340_v10  ;;  %v972_v14 = vmul.f32 %v4838_v39, %v4515_v27 }
 0x1f8   :  { %1079 = vrot.lane.b32.xlu2 %v1035_v50, %s4270_s7  ;;  %v1032_v48 = vsel %vm876_vm1, %v1030_v31, %v1031_v25  ;;  %1075 = vrot.lane.b32.xlu0 %v1029_v53, %s4270_s7  ;;  %v1042_v6 = vrot.slane %v973_v7, 2  ;;  %v1043_v19 = vrot.slane %v974_v62, 2  ;;  %v1036_v61 = vrot.slane %v969_v36, 2 }
 0x1f9   :  { %1077 = vrot.lane.b32.xlu1 %v1032_v48, %s4270_s7  ;;  %v1037_v60 = vrot.slane %v970_v52, 2  ;;  %v1039_v63 = vrot.slane %v971_v32, 2  ;;  %v1040_v50 = vrot.slane %v972_v14, 2  ;;  %v979_v26 = vmul.f32 %v4838_v39, %v4371_v18 }
 0x1fa   :  { %v1044_v40 = vsel %vm876_vm1, %v1042_v6, %v1043_v19  ;;  %v980_v31 = vmul.f32 %v4838_v39, %v4536_v45  ;;  %v975_v53 = vmul.f32 %v4838_v39, %v4366_v17  ;;  %v976_v62 = vmul.f32 %v4838_v39, %v4508_v21 }
 0x1fb   :  { %v1038_v25 = vsel %vm876_vm1, %v1036_v61, %v1037_v60  ;;  %v1041_v36 = vsel %vm876_vm1, %v1039_v63, %v1040_v50  ;;  %v977_v7 = vmul.f32 %v4838_v39, %v4361_v16  ;;  %v978_v52 = vmul.f32 %v4838_v39, %v4546_v47  ;;  %v4888_v60 = vpop.permute.xlu1 %568 }
 0x1fc   :  { %7984 = vst [vmem:[#allocation40_spill] sm:$0xff] %v4888_v60  ;;  %v1051_v48 = vrot.slane %v979_v26, 2  ;;  %v1052_v32 = vrot.slane %v980_v31, 2  ;;  %v1045_v14 = vrot.slane %v975_v53, 2  ;;  %v1046_v6 = vrot.slane %v976_v62, 2 }
 0x1fd   :  { %v1048_v63 = vrot.slane %v977_v7, 2  ;;  %v1049_v19 = vrot.slane %v978_v52, 2  ;;  %v985_v61 = vmul.f32 %v4838_v39, %v4392_v24  ;;  %v981_v60 = vmul.f32 %v4838_v39, %v4387_v23 }
 0x1fe   :  { %v1053_v50 = vsel %vm876_vm1, %v1051_v48, %v1052_v32  ;;  %v1047_v26 = vsel %vm876_vm1, %v1045_v14, %v1046_v6  ;;  %v983_v53 = vmul.f32 %v4838_v39, %v4382_v22  ;;  %v991_v6 = vmul.f32 %v4838_v39, %v4413_v30 }
 0x1ff   :  { %v1050_v31 = vsel %vm876_vm1, %v1048_v63, %v1049_v19  ;;  %v1060_v7 = vrot.slane %v985_v61, 2  ;;  %v1054_v48 = vrot.slane %v981_v60, 2  ;;  %v988_v61 = vmul.f32 %v4838_v39, %v4574_v8 }
 0x200   :  { %1085 = vrot.lane.b32.xlu2 %v1044_v40, %s4270_s7  ;;  %1081 = vrot.lane.b32.xlu0 %v1038_v25, %s4270_s7  ;;  %v986_v40 = vmul.f32 %v4838_v39, %v4569_v2  ;;  %v982_v25 = vmul.f32 %v4838_v39, %v4541_v46 }
 0x201   :  { %1083 = vrot.lane.b32.xlu1 %v1041_v36, %s4270_s7  ;;  %v984_v36 = vmul.f32 %v4838_v39, %v4579_v9 }
 0x202   :  { %v1061_v52 = vrot.slane %v986_v40, 2  ;;  %v1055_v32 = vrot.slane %v982_v25, 2  ;;  %v989_v40 = vmul.f32 %v4838_v39, %v4403_v28  ;;  %v990_v25 = vmul.f32 %v4838_v39, %v4612_v43 }
 0x203   :  { %v4910_v62 = vpop.permute.xlu1 %574  ;;  %v1058_v14 = vrot.slane %v984_v36, 2 }
 0x204   :  { %7985 = vst [vmem:[#allocation41_spill] sm:$0xff] %v4910_v62  ;;  %v1062_v63 = vsel %vm876_vm1, %v1060_v7, %v1061_v52  ;;  %v1056_v19 = vsel %vm876_vm1, %v1054_v48, %v1055_v32  ;;  %v1064_v52 = vrot.slane %v988_v61, 2  ;;  %v1066_v48 = vrot.slane %v989_v40, 2 }
 0x205   :  { %v1067_v32 = vrot.slane %v990_v25, 2 }
 0x207   :  { %v1068_v62 = vsel %vm876_vm1, %v1066_v48, %v1067_v32 }
 0x208   :  { %1091 = vrot.lane.b32.xlu2 %v1053_v50, %s4270_s7  ;;  %1087 = vrot.lane.b32.xlu0 %v1047_v26, %s4270_s7  ;;  %v1057_v50 = vrot.slane %v983_v53, 2  ;;  %v992_v26 = vmul.f32 %v4838_v39, %v4602_v41  ;;  %v1069_v53 = vrot.slane %v991_v6, 2  ;;  %v994_v6 = vmul.f32 %v4838_v39, %v4607_v42 }
 0x209   :  { %1089 = vrot.lane.b32.xlu1 %v1050_v31, %s4270_s7  ;;  %v987_v31 = vmul.f32 %v4838_v39, %v4408_v29 }
 0x20a   :  { %v1059_v60 = vsel %vm876_vm1, %v1057_v50, %v1058_v14  ;;  %v1070_v36 = vrot.slane %v992_v26, 2 }
 0x20b   :  { %v1063_v7 = vrot.slane %v987_v31, 2  ;;  %v4930_v50 = vpop.permute.xlu1 %580  ;;  %v1073_v31 = vrot.slane %v994_v6, 2 }
 0x20c   :  { %7986 = vst [vmem:[#allocation42_spill] sm:$0xff] %v4930_v50  ;;  %v1071_v14 = vsel %vm876_vm1, %v1069_v53, %v1070_v36 }
 0x210   :  { %1097 = vrot.lane.b32.xlu2 %v1062_v63, %s4270_s7  ;;  %1093 = vrot.lane.b32.xlu0 %v1056_v19, %s4270_s7  ;;  %v1065_v63 = vsel %vm876_vm1, %v1063_v7, %v1064_v52  ;;  %v993_v19 = vmul.f32 %v4838_v39, %v4424_v35 }
 0x211   :  { %1095 = vrot.lane.b32.xlu1 %v1059_v60, %s4270_s7  ;;  %v4102_v60 = vld [vmem:[%s7907_s1 + $0x8] ss:$0 sm:$0xff] }
 0x212   :  { %v1072_v26 = vrot.slane %v993_v19, 2 }
 0x213   :  { %v4945_v61 = vpop.permute.xlu1 %586 }
 0x214   :  { %7987 = vst [vmem:[#allocation43_spill] sm:$0xff] %v4945_v61  ;;  %v1074_v40 = vsel %vm876_vm1, %v1072_v26, %v1073_v31 }
 0x218   :  { %1103 = vrot.lane.b32.xlu2 %v1071_v14, %s4270_s7  ;;  %1099 = vrot.lane.b32.xlu0 %v1065_v63, %s4270_s7 }
 0x219   :  { %1101 = vrot.lane.b32.xlu1 %v1068_v62, %s4270_s7 }
 0x21b   :  { %v4950_v25 = vpop.permute.xlu1 %592 }
 0x21c   :  { %7988 = vst [vmem:[#allocation44_spill] sm:$0xff] %v4950_v25 }
 0x220   :  { %1105 = vrot.lane.b32.xlu0 %v1074_v40, %s4270_s7 }
 0x221   :  { %1142 = vrot.lane.b32.xlu1 %v4102_v60, %s4269_s25 }
 0x223   :  { %v4952_v39 = vpop.permute.xlu1 %746 }
 0x224   :  { %7989 = vst [vmem:[#allocation45_spill] sm:$0xff] %v4952_v39 }
 0x22b   :  { %v4954_v53 = vpop.permute.xlu1 %752 }
 0x233   :  { %v4956_v62 = vpop.permute.xlu1 %758 }
 0x23b   :  { %v4958_v36 = vpop.permute.xlu1 %764 }
 0x243   :  { %v4960_v7 = vpop.permute.xlu1 %770 }
 0x244   :  { %7990 = vst [vmem:[#allocation46_spill] sm:$0xff] %v4960_v7 }
 0x24b   :  { %v4962_v52 = vpop.permute.xlu1 %776 }
 0x24c   :  { %7991 = vst [vmem:[#allocation47_spill] sm:$0xff] %v4962_v52 }
 0x26b   :  { %v4964_v48 = vpop.permute.xlu1 %1077 }
 0x273   :  { %v4966_v32 = vpop.permute.xlu1 %1083 }
 0x274   :  { %7992 = vst [vmem:[#allocation48_spill] sm:$0xff] %v4966_v32 }
 0x27b   :  { %v4968_v14 = vpop.permute.xlu1 %1089 }
 0x27c   :  { %7993 = vst [vmem:[#allocation49_spill] sm:$0xff] %v4968_v14 }
 0x283   :  { %v4970_v63 = vpop.permute.xlu1 %1095 }
 0x284   :  { %7994 = vst [vmem:[#allocation50_spill] sm:$0xff] %v4970_v63 }
 0x28b   :  { %v4972_v19 = vpop.permute.xlu1 %1101 }
 0x28c   :  { %7995 = vst [vmem:[#allocation51_spill] sm:$0xff] %v4972_v19 }
 0x293   :  { %v4974_v6 = vpop.permute.xlu1 %1142 }
 0x294   :  { %v1149_v26 = vmul.f32 %v4974_v6, %v4345_v11  ;;  %v1150_v31 = vmul.f32 %v4974_v6, %v4470_v57  ;;  %v1147_v60 = vmul.f32 %v4974_v6, %v4324_v4  ;;  %v1148_v40 = vmul.f32 %v4974_v6, %v4480_v59 }
 0x295   :  { %v1145_v32 = vmul.f32 %v4974_v6, %v4329_v5  ;;  %v1146_v39 = vmul.f32 %v4974_v6, %v4455_v49  ;;  %v1155_v11 = vmul.f32 %v4974_v6, %v4350_v12  ;;  %v1156_v4 = vmul.f32 %v4974_v6, %v4503_v20 }
 0x296   :  { %v1215_v19 = vrot.slane %v1149_v26, 2  ;;  %v1216_v7 = vrot.slane %v1150_v31, 2  ;;  %v1212_v50 = vrot.slane %v1147_v60, 2  ;;  %v1213_v63 = vrot.slane %v1148_v40, 2 }
 0x297   :  { %v1209_v25 = vrot.slane %v1145_v32, 2  ;;  %v1210_v14 = vrot.slane %v1146_v39, 2  ;;  %v1153_v5 = vmul.f32 %v4974_v6, %v4340_v10  ;;  %v1154_v49 = vmul.f32 %v4974_v6, %v4515_v27 }
 0x298   :  { %v1217_v59 = vsel %vm876_vm1, %v1215_v19, %v1216_v7  ;;  %v1214_v26 = vsel %vm876_vm1, %v1212_v50, %v1213_v63  ;;  %v1151_v39 = vmul.f32 %v4974_v6, %v4319_v3  ;;  %v1152_v32 = vmul.f32 %v4974_v6, %v4475_v58 }
 0x299   :  { %1261 = vrot.lane.b32.xlu1 %v1217_v59, %s4271_s12  ;;  %v1211_v12 = vsel %vm876_vm1, %v1209_v25, %v1210_v14  ;;  %1259 = vrot.lane.b32.xlu0 %v1214_v26, %s4271_s12  ;;  %v1224_v10 = vrot.slane %v1155_v11, 2  ;;  %v1225_v7 = vrot.slane %v1156_v4, 2  ;;  %v1221_v19 = vrot.slane %v1153_v5, 2 }
 0x29a   :  { %1257 = vrot.lane.b32.xlu2 %v1211_v12, %s4271_s12  ;;  %v1222_v27 = vrot.slane %v1154_v49, 2  ;;  %v1218_v31 = vrot.slane %v1151_v39, 2  ;;  %v1219_v60 = vrot.slane %v1152_v32, 2  ;;  %v1161_v3 = vmul.f32 %v4974_v6, %v4371_v18  ;;  %v5022_v18 = vpop.permute.xlu0 %750 }
 0x29b   :  { %v1226_v50 = vsel %vm876_vm1, %v1224_v10, %v1225_v7  ;;  %v1162_v14 = vmul.f32 %v4974_v6, %v4536_v45  ;;  %v1159_v63 = vmul.f32 %v4974_v6, %v4361_v16  ;;  %v1160_v11 = vmul.f32 %v4974_v6, %v4546_v47 }
 0x29c   :  { %v1223_v25 = vsel %vm876_vm1, %v1221_v19, %v1222_v27  ;;  %v1220_v40 = vsel %vm876_vm1, %v1218_v31, %v1219_v60  ;;  %v1157_v4 = vmul.f32 %v4974_v6, %v4366_v17  ;;  %v1158_v59 = vmul.f32 %v4974_v6, %v4508_v21 }
 0x29d   :  { %v1233_v16 = vrot.slane %v1161_v3, 2  ;;  %v1234_v45 = vrot.slane %v1162_v14, 2  ;;  %v1230_v5 = vrot.slane %v1159_v63, 2  ;;  %v1231_v49 = vrot.slane %v1160_v11, 2 }
 0x29e   :  { %v1227_v26 = vrot.slane %v1157_v4, 2  ;;  %v1228_v12 = vrot.slane %v1158_v59, 2  ;;  %v1167_v47 = vmul.f32 %v4974_v6, %v4392_v24  ;;  %v1168_v17 = vmul.f32 %v4974_v6, %v4569_v2 }
 0x29f   :  { %v1235_v39 = vsel %vm876_vm1, %v1233_v16, %v1234_v45  ;;  %v1165_v32 = vmul.f32 %v4974_v6, %v4382_v22  ;;  %v1166_v10 = vmul.f32 %v4974_v6, %v4579_v9  ;;  %v1232_v7 = vsel %vm876_vm1, %v1230_v5, %v1231_v49 }
 0x2a0   :  { %v1229_v19 = vsel %vm876_vm1, %v1227_v26, %v1228_v12  ;;  %v1163_v24 = vmul.f32 %v4974_v6, %v4387_v23  ;;  %v1164_v27 = vmul.f32 %v4974_v6, %v4541_v46  ;;  %v1242_v22 = vrot.slane %v1167_v47, 2 }
 0x2a1   :  { %1267 = vrot.lane.b32.xlu1 %v1226_v50, %s4271_s12  ;;  %1265 = vrot.lane.b32.xlu0 %v1223_v25, %s4271_s12  ;;  %v1243_v31 = vrot.slane %v1168_v17, 2  ;;  %v1239_v9 = vrot.slane %v1165_v32, 2  ;;  %v1240_v50 = vrot.slane %v1166_v10, 2  ;;  %v1173_v23 = vmul.f32 %v4974_v6, %v4413_v30  ;;  %v4104_v10 = vld [vmem:[%s7907_s1 + $0xa] ss:$0 sm:$0xff] }
 0x2a2   :  { %1263 = vrot.lane.b32.xlu2 %v1220_v40, %s4271_s12  ;;  %v5044_v60 = vpop.permute.xlu0 %756  ;;  %v1236_v25 = vrot.slane %v1163_v24, 2  ;;  %v1237_v3 = vrot.slane %v1164_v27, 2  ;;  %v1174_v40 = vmul.f32 %v4974_v6, %v4602_v41  ;;  %v1171_v11 = vmul.f32 %v4974_v6, %v4403_v28 }
 0x2a3   :  { %v1244_v14 = vsel %vm876_vm1, %v1242_v22, %v1243_v31  ;;  %v1241_v63 = vsel %vm876_vm1, %v1239_v9, %v1240_v50  ;;  %v1172_v59 = vmul.f32 %v4974_v6, %v4612_v43  ;;  %v1169_v16 = vmul.f32 %v4974_v6, %v4408_v29  ;;  %v5099_v31 = vld [vmem:[%s7907_s1] ss:$0 sm:$0xff]  ;;  %v5106_v50 = vld [vmem:[%s7907_s1 + $0x3] ss:$0 sm:$0xff] }
 0x2a4   :  { %v1238_v4 = vsel %vm876_vm1, %v1236_v25, %v1237_v3  ;;  %v1170_v45 = vmul.f32 %v4974_v6, %v4574_v8  ;;  %v1251_v30 = vrot.slane %v1173_v23, 2  ;;  %v1252_v41 = vrot.slane %v1174_v40, 2  ;;  %v5111_v25 = vld [vmem:[%s7906_s0 + $0x30] sm:$0xff]  ;;  %v5124_v40 = vld [vmem:[%s7906_s0 + $0x20] sm:$0xff] }
 0x2a5   :  { %v1248_v28 = vrot.slane %v1171_v11, 2  ;;  %v1249_v5 = vrot.slane %v1172_v59, 2  ;;  %v1245_v49 = vrot.slane %v1169_v16, 2  ;;  %v1175_v47 = vmul.f32 %v4974_v6, %v4424_v35  ;;  %v5084_v35 = vpop.permute.xlu2 %1079 }
 0x2a6   :  { %v1246_v26 = vrot.slane %v1170_v45, 2  ;;  %v1253_v43 = vsel %vm876_vm1, %v1251_v30, %v1252_v41  ;;  %v1176_v17 = vmul.f32 %v4974_v6, %v4607_v42  ;;  %v307_v3 = vmul.f32 %v5111_v25, %v5106_v50  ;;  %v5134_v41 = vld [vmem:[%s7906_s0 + $0x50] sm:$0xff] }
 0x2a7   :  { %v1250_v29 = vsel %vm876_vm1, %v1248_v28, %v1249_v5  ;;  %v305_v11 = vmul.f32 %v5124_v40, %v5106_v50  ;;  %v311_v28 = vmul.f32 %v5134_v41, %v5106_v50  ;;  %v312_v5 = vmul.f32 %v5106_v50, %v4503_v20  ;;  %v5157_v20 = vld [vmem:[%s7906_s0 + $0x10] sm:$0xff] }
 0x2a8   :  { %v1247_v8 = vsel %vm876_vm1, %v1245_v49, %v1246_v26  ;;  %v1255_v32 = vrot.slane %v1176_v17, 2  ;;  %v375_v59 = vrot.slane %v307_v3, 1  ;;  %v5150_v49 = vld [vmem:[%s7906_s0 + $0xc0] sm:$0xff]  ;;  %8002 = vst [vmem:[#allocation58_spill] sm:$0xff] %v5157_v20  ;;  %v68_v17 = vmul.f32 %v5134_v41, %v5099_v31 }
 0x2a9   :  { %1273 = vrot.lane.b32.xlu1 %v1235_v39, %s4271_s12  ;;  %1271 = vrot.lane.b32.xlu0 %v1232_v7, %s4271_s12  ;;  %v1254_v39 = vrot.slane %v1175_v47, 2  ;;  %v372_v45 = vrot.slane %v305_v11, 1  ;;  %v73_v26 = vmul.f32 %v5150_v49, %v5099_v31  ;;  %v65_v47 = vmul.f32 %v5124_v40, %v5099_v31 }
 0x2aa   :  { %1269 = vrot.lane.b32.xlu2 %v1229_v19, %s4271_s12  ;;  %v5064_v12 = vpop.permute.xlu0 %762  ;;  %v314_v3 = vmul.f32 %v5106_v50, %v4508_v21 }
 0x2ab   :  { %7996 = vst [vmem:[#allocation52_spill] sm:$0xff] %v5064_v12  ;;  %v1256_v19 = vsel %vm876_vm1, %v1254_v39, %v1255_v32  ;;  %v5227_v12 = vld [vmem:[%s7906_s0 + $0x18] sm:$0x3] }
 0x2ac   :  { %8007 = vst [vmem:[#allocation63_spill] sm:$0xff] %v5227_v12 }
 0x2ad   :  { %v5088_v6 = vpop.permute.xlu2 %1085 }
 0x2b1   :  { %1279 = vrot.lane.b32.xlu1 %v1244_v14, %s4271_s12  ;;  %1277 = vrot.lane.b32.xlu0 %v1241_v63, %s4271_s12  ;;  %v308_v14 = vmul.f32 %v5106_v50, %v4475_v58  ;;  %v66_v63 = vmul.f32 %v5111_v25, %v5099_v31 }
 0x2b2   :  { %1275 = vrot.lane.b32.xlu2 %v1238_v4, %s4271_s12  ;;  %v5079_v7 = vpop.permute.xlu0 %768  ;;  %v306_v4 = vmul.f32 %v5106_v50, %v4470_v57  ;;  %v5143_v57 = vld [vmem:[%s7906_s0 + $0x70] sm:$0xff] }
 0x2b3   :  { %7997 = vst [vmem:[#allocation53_spill] sm:$0xff] %v5079_v7  ;;  %v376_v16 = vrot.slane %v308_v14, 1  ;;  %v184_v58 = vadd.f32 %v4660_v37, %v66_v63  ;;  %v70_v37 = vmul.f32 %v5143_v57, %v5099_v31  ;;  %v5232_v7 = vadd.f32 %v4672_v51, %v73_v26 }
 0x2b4   :  { %v373_v30 = vrot.slane %v306_v4, 1 }
 0x2b5   :  { %v5092_v27 = vpop.permute.xlu2 %1091  ;;  %v286_v39 = vadd.f32 %v4654_v33, %v184_v58  ;;  %v377_v32 = vsel %vm365_vm0, %v375_v59, %v376_v16  ;;  %v5188_v33 = vld [vmem:[%s7906_s0 + $0x38] sm:$0x3]  ;;  %v381_v59 = vrot.slane %v311_v28, 1  ;;  %v382_v16 = vrot.slane %v312_v5, 1  ;;  %v5203_v58 = vld [vmem:[%s7906_s0 + $0xb0] sm:$0xff] }
 0x2b6   :  { %8000 = vst [vmem:[#allocation56_spill] sm:$0xff] %v5092_v27  ;;  %v5195_v4 = vsel %vm365_vm0, %v372_v45, %v373_v30  ;;  %v5198_v21 = vadd.f32 %v4668_v44, %v70_v37  ;;  %v5210_v27 = vld [vmem:[%s7906_s0 + $0xd0] sm:$0xff]  ;;  %v324_v44 = vmul.f32 %v5106_v50, %v4569_v2  ;;  %v303_v37 = vmul.f32 %v5157_v20, %v5106_v50 }
 0x2b7   :  { %8004 = vst [vmem:[#allocation60_spill] sm:$0xff] %v5188_v33  ;;  %v323_v45 = vmul.f32 %v5210_v27, %v5106_v50  ;;  %v5220_v28 = vmul.f32 %v5210_v27, %v5099_v31  ;;  %v433_v5 = vadd.f32 %v377_v32, %v286_v39  ;;  %v385_v2 = vrot.slane %v314_v3, 1 }
 0x2b8   :  { %8005 = vst [vmem:[#allocation61_spill] sm:$0xff] %v5203_v58  ;;  %v5237_v61 = vsel %vm365_vm0, %v381_v59, %v382_v16  ;;  %v319_v52 = vmul.f32 %v5203_v58, %v5106_v50  ;;  %v400_v3 = vrot.slane %v324_v44, 1  ;;  %v369_v26 = vrot.slane %v303_v37, 1 }
 0x2b9   :  { %1285 = vrot.lane.b32.xlu1 %v1253_v43, %s4271_s12  ;;  %1283 = vrot.lane.b32.xlu0 %v1250_v29, %s4271_s12  ;;  %v64_v43 = vmul.f32 %v5157_v20, %v5099_v31  ;;  %v5164_v29 = vld [vmem:[%s7907_s1 + $0x6] ss:$0 sm:$0xff]  ;;  %8006 = vst [vmem:[#allocation62_spill] sm:$0xff] %v5210_v27  ;;  %v615_v32 = vadd.f32 %v4800_v1, %v433_v5 }
 0x2ba   :  { %1281 = vrot.lane.b32.xlu2 %v1247_v8, %s4271_s12  ;;  %v5086_v42 = vpop.permute.xlu0 %774  ;;  %v818_v14 = vmul.f32 %v5111_v25, %v5164_v29  ;;  %v819_v63 = vmul.f32 %v5188_v33, %v5164_v29  ;;  %v304_v33 = vmul.f32 %v5227_v12, %v5106_v50  ;;  %v320_v27 = vmul.f32 %v5106_v50, %v4541_v46  ;;  %v5254_v46 = vld [vmem:[%s7906_s0 + $0x68] sm:$0x3] }
 0x2bb   :  { %7998 = vst [vmem:[#allocation54_spill] sm:$0xff] %v5086_v42  ;;  %v825_v16 = vmul.f32 %v5254_v46, %v5164_v29 }
 0x2bc   :  { %v886_v42 = vrot.slane %v818_v14, 2  ;;  %8009 = vst [vmem:[#allocation65_spill] sm:$0xff] %v5254_v46 }
 0x2bd   :  { %v5101_v9 = vpop.permute.xlu2 %1097 }
 0x2be   :  { %8001 = vst [vmem:[#allocation57_spill] sm:$0xff] %v5101_v9  ;;  %v887_v9 = vrot.slane %v819_v63, 2  ;;  %v370_v63 = vrot.slane %v304_v33, 1  ;;  %v183_v33 = vadd.f32 %v4802_v38, %v65_v47  ;;  %v393_v38 = vrot.slane %v319_v52, 1 }
 0x2c0   :  { %v371_v5 = vsel %vm365_vm0, %v369_v26, %v370_v63  ;;  %v5319_v26 = vld [vmem:[%s7906_s0 + $0x28] sm:$0x3] }
 0x2c1   :  { %1358 = vrot.lane.b32.xlu0 %v4104_v10, %s4268_s22  ;;  %v5177_v10 = vld [vmem:[%s7906_s0 + $0x60] sm:$0xff]  ;;  %8013 = vst [vmem:[#allocation67_spill] sm:$0xff] %v5319_v26  ;;  %v817_v63 = vmul.f32 %v5319_v26, %v5164_v29  ;;  %v8018_v26 = vld [vmem:[#allocation14_spill] sm:$0xff] }
 0x2c2   :  { %1287 = vrot.lane.b32.xlu2 %v1256_v19, %s4271_s12  ;;  %v5090_v24 = vpop.permute.xlu0 %1075  ;;  %v313_v19 = vmul.f32 %v5177_v10, %v5106_v50  ;;  %v69_v11 = vmul.f32 %v5177_v10, %v5099_v31  ;;  %v824_v59 = vmul.f32 %v5177_v10, %v5164_v29 }
 0x2c3   :  { %7999 = vst [vmem:[#allocation55_spill] sm:$0xff] %v5090_v24  ;;  %v72_v24 = vmul.f32 %v5203_v58, %v5099_v31 }
 0x2c4   :  { %v187_v39 = vadd.f32 %v4806_v55, %v69_v11  ;;  %v797_v55 = vadd.f32 %v4954_v53, %v615_v32  ;;  %v888_v11 = vsel %vm876_vm1, %v886_v42, %v887_v9  ;;  %v5263_v53 = vld [vmem:[%s7906_s0 + $0x100] sm:$0xff]  ;;  %v5272_v9 = vld [vmem:[%s7906_s0 + $0x110] sm:$0xff]  ;;  %v895_v52 = vrot.slane %v824_v59, 2 }
 0x2c5   :  { %v5166_v8 = vpop.permute.xlu2 %1103  ;;  %v5267_v42 = vmul.f32 %v5263_v53, %v5099_v31 }
 0x2c6   :  { %8003 = vst [vmem:[#allocation59_spill] sm:$0xff] %v5166_v8  ;;  %v384_v8 = vrot.slane %v313_v19, 1  ;;  %v399_v19 = vrot.slane %v323_v45, 1  ;;  %v289_v51 = vadd.f32 %v4656_v34, %v187_v39  ;;  %v182_v34 = vadd.f32 %v4792_v54, %v64_v43  ;;  %v8011_v39 = vld [vmem:[#allocation25_spill] sm:$0xff] }
 0x2c7   :  { %v186_v54 = vadd.f32 %v4640_v15, %v68_v17  ;;  %v394_v43 = vrot.slane %v320_v27, 1  ;;  %v285_v45 = vadd.f32 %v4682_v56, %v183_v33  ;;  %v944_v37 = vadd.f32 %v888_v11, %v797_v55 }
 0x2c8   :  { %v386_v1 = vsel %vm365_vm0, %v384_v8, %v385_v2  ;;  %v5276_v8 = vmul.f32 %v5272_v9, %v5099_v31  ;;  %v5280_v47 = vsel %vm365_vm0, %v399_v19, %v400_v3  ;;  %v5287_v2 = vld [vmem:[%s7907_s1 + $0x9] ss:$0 sm:$0xff]  ;;  %v190_v31 = vadd.f32 %v4810_v0, %v72_v24  ;;  %v5302_v3 = vld [vmem:[%s7906_s0 + $0x40] sm:$0xff] }
 0x2c9   :  { %v436_v44 = vadd.f32 %v386_v1, %v289_v51  ;;  %v5292_v15 = vmul.f32 %v5143_v57, %v5106_v50  ;;  %v896_v27 = vrot.slane %v825_v16, 2  ;;  %v284_v56 = vadd.f32 %v4822_v13, %v182_v34  ;;  %8012 = vst [vmem:[#allocation25_spill] sm:$0xff] %v5302_v3  ;;  %v5310_v51 = vld [vmem:[%s7906_s0 + $0x78] sm:$0x3]  ;;  %v8014_v1 = vld [vmem:[#allocation10_spill] sm:$0xff] }
 0x2ca   :  { %v5094_v22 = vpop.permute.xlu0 %1081  ;;  %v1326_v0 = vmul.f32 %v5302_v3, %v5287_v2  ;;  %v395_v24 = vsel %vm365_vm0, %v393_v38, %v394_v43  ;;  %v316_v13 = vmul.f32 %v5310_v51, %v5106_v50  ;;  %v292_v11 = vadd.f32 %v8014_v1, %v190_v31 }
 0x2cb   :  { %v618_v32 = vadd.f32 %v8011_v39, %v436_v44  ;;  %v1126_v19 = vadd.f32 %v5094_v22, %v944_v37  ;;  %v816_v22 = vmul.f32 %v5124_v40, %v5164_v29  ;;  %v814_v16 = vmul.f32 %v5157_v20, %v5164_v29  ;;  %v5335_v44 = vld [vmem:[%s7906_s0 + $0xb8] sm:$0x3] }
 0x2cc   :  { %v815_v33 = vmul.f32 %v5227_v12, %v5164_v29  ;;  %v897_v38 = vsel %vm876_vm1, %v895_v52, %v896_v27  ;;  %v830_v43 = vmul.f32 %v5203_v58, %v5164_v29  ;;  %8015 = vst [vmem:[#allocation10_spill] sm:$0xff] %v5335_v44  ;;  %v8016_v37 = vld [vmem:[#allocation20_spill] sm:$0xff]  ;;  %v432_v39 = vadd.f32 %v5195_v4, %v285_v45 }
 0x2cd   :  { %v800_v59 = vadd.f32 %v4956_v62, %v618_v32  ;;  %v831_v62 = vmul.f32 %v5335_v44, %v5164_v29  ;;  %v288_v31 = vadd.f32 %v8016_v37, %v186_v54  ;;  %v431_v32 = vadd.f32 %v371_v5, %v284_v56  ;;  %v8019_v37 = vld [vmem:[#allocation26_spill] sm:$0xff] }
 0x2ce   :  { %v387_v52 = vrot.slane %v5292_v15, 1  ;;  %v388_v27 = vrot.slane %v316_v13, 1  ;;  %v884_v1 = vrot.slane %v817_v63, 2  ;;  %v880_v3 = vrot.slane %v814_v16, 2  ;;  %v5370_v63 = vld [vmem:[%s7906_s0 + $0x58] sm:$0x3] }
 0x2cf   :  { %v613_v46 = vadd.f32 %v8018_v26, %v431_v32  ;;  %v947_v58 = vadd.f32 %v897_v38, %v800_v59  ;;  %v881_v44 = vrot.slane %v815_v33, 2  ;;  %v904_v20 = vrot.slane %v830_v43, 2  ;;  %v8021_v16 = vld [vmem:[#allocation30_spill] sm:$0xff] }
 0x2d0   :  { %v905_v54 = vrot.slane %v831_v62, 2  ;;  %v331_v45 = vmul.f32 %v5272_v9, %v5106_v50  ;;  %v1329_v15 = vmul.f32 %v5143_v57, %v5287_v2  ;;  %v822_v26 = vmul.f32 %v5134_v41, %v5164_v29 }
 0x2d1   :  { %v389_v33 = vsel %vm365_vm0, %v387_v52, %v388_v27  ;;  %v5386_v38 = vmul.f32 %v5150_v49, %v5106_v50  ;;  %v8022_v52 = vld [vmem:[#allocation36_spill] sm:$0xff] }
 0x2d2   :  { %v5119_v23 = vpop.permute.xlu0 %1087  ;;  %v906_v59 = vsel %vm876_vm1, %v904_v20, %v905_v54  ;;  %v290_v27 = vadd.f32 %v8022_v52, %v5198_v21 }
 0x2d3   :  { %v1129_v5 = vadd.f32 %v5119_v23, %v947_v58 }
 0x2d4   :  { %v437_v52 = vadd.f32 %v389_v33, %v290_v27  ;;  %v8030_v27 = vld [vmem:[#allocation62_spill] sm:$0xff] }
 0x2da   :  { %v5216_v30 = vpop.permute.xlu0 %1093 }
 0x2e2   :  { %v5294_v17 = vpop.permute.xlu0 %1099 }
 0x2e3   :  { %8010 = vst [vmem:[#allocation66_spill] sm:$0xff] %v5294_v17  ;;  %v8017_v17 = vld [vmem:[#allocation40_spill] sm:$0xff] }
 0x2e4   :  { %v614_v12 = vadd.f32 %v8017_v17, %v432_v39  ;;  %v5355_v17 = vld [vmem:[%s7906_s0 + $0x118] sm:$0x3] }
 0x2e5   :  { %v332_v56 = vmul.f32 %v5355_v17, %v5106_v50 }
 0x2e7   :  { %v412_v62 = vrot.slane %v332_v56, 1  ;;  %v1332_v56 = vmul.f32 %v5150_v49, %v5287_v2 }
 0x2f4   :  { %v5243_v14 = vpop.permute.xlu2 %1257 }
 0x2f5   :  { %8008 = vst [vmem:[#allocation64_spill] sm:$0xff] %v5243_v14  ;;  %v439_v14 = vadd.f32 %v395_v24, %v292_v11 }
 0x2f7   :  { %v621_v4 = vadd.f32 %v8019_v37, %v439_v14  ;;  %v796_v14 = vadd.f32 %v5022_v18, %v614_v12  ;;  %v435_v18 = vadd.f32 %v5237_v61, %v288_v31  ;;  %v5377_v12 = vmul.f32 %v5263_v53, %v5106_v50  ;;  %v5393_v31 = vld [vmem:[%s7906_s0 + $0xc8] sm:$0x3] }
 0x2f8   :  { %v411_v61 = vrot.slane %v331_v45, 1  ;;  %v322_v20 = vmul.f32 %v5393_v31, %v5106_v50  ;;  %v1325_v37 = vmul.f32 %v5111_v25, %v5287_v2 }
 0x2f9   :  { %v803_v58 = vadd.f32 %v4958_v36, %v621_v4  ;;  %v882_v36 = vsel %vm876_vm1, %v880_v3, %v881_v44 }
 0x2fb   :  { %v950_v32 = vadd.f32 %v906_v59, %v803_v58 }
 0x2fc   :  { %v1264_v55 = vpop.permute.xlu2 %1263 }
 0x2fd   :  { %v1308_v34 = vadd.f32 %v1264_v55, %v1126_v19  ;;  %v883_v55 = vrot.slane %v816_v22, 2  ;;  %v5362_v22 = vpop.permute.xlu0 %1105  ;;  %v1132_v45 = vadd.f32 %v5216_v30, %v950_v32  ;;  %v827_v30 = vmul.f32 %v5310_v51, %v5164_v29 }
 0x2ff   :  { %v5341_v19 = vadd.f32 %v1326_v0, %v1308_v34  ;;  %v8020_v0 = vld [vmem:[#allocation31_spill] sm:$0xff]  ;;  %v885_v13 = vsel %vm876_vm1, %v883_v55, %v884_v1  ;;  %v196_v34 = vadd.f32 %v8021_v16, %v5276_v8  ;;  %v892_v8 = vrot.slane %v822_v26, 2  ;;  %v8023_v55 = vld [vmem:[#allocation41_spill] sm:$0xff] }
 0x300   :  { %v795_v24 = vadd.f32 %v8020_v0, %v613_v46  ;;  %v823_v46 = vmul.f32 %v5370_v63, %v5164_v29  ;;  %v943_v3 = vadd.f32 %v885_v13, %v796_v14  ;;  %v617_v1 = vadd.f32 %v8023_v55, %v435_v18  ;;  %v8024_v0 = vld [vmem:[#allocation13_spill] sm:$0xff] }
 0x301   :  { %v298_v21 = vadd.f32 %v8024_v0, %v196_v34  ;;  %v408_v16 = vrot.slane %v5377_v12, 1  ;;  %v1328_v12 = vmul.f32 %v5177_v10, %v5287_v2  ;;  %v8029_v0 = vld [vmem:[#allocation38_spill] sm:$0xff] }
 0x302   :  { %v893_v44 = vrot.slane %v823_v46, 2  ;;  %v942_v39 = vadd.f32 %v882_v36, %v795_v24  ;;  %v1125_v54 = vadd.f32 %v5084_v35, %v943_v3  ;;  %v799_v24 = vadd.f32 %v5044_v60, %v617_v1  ;;  %v5426_v36 = vld [vmem:[%s7906_s0 + $0x108] sm:$0x3] }
 0x303   :  { %v826_v35 = vmul.f32 %v5143_v57, %v5164_v29  ;;  %v413_v46 = vsel %vm365_vm0, %v411_v61, %v412_v62  ;;  %v843_v60 = vmul.f32 %v5355_v17, %v5164_v29  ;;  %v330_v59 = vmul.f32 %v5426_v36, %v5106_v50  ;;  %v8025_v62 = vld [vmem:[#allocation7_spill] sm:$0xff] }
 0x304   :  { %v1270_v23 = vpop.permute.xlu2 %1269  ;;  %v1124_v4 = vadd.f32 %v4964_v48, %v942_v39  ;;  %v894_v48 = vsel %vm876_vm1, %v892_v8, %v893_v44  ;;  %v192_v3 = vadd.f32 %v8025_v62, %v5220_v28  ;;  %v396_v8 = vrot.slane %v5386_v38, 1  ;;  %v8028_v28 = vld [vmem:[#allocation16_spill] sm:$0xff] }
 0x305   :  { %v1311_v11 = vadd.f32 %v1270_v23, %v1129_v5  ;;  %v397_v44 = vrot.slane %v322_v20, 1  ;;  %v946_v39 = vadd.f32 %v894_v48, %v799_v24  ;;  %v445_v32 = vadd.f32 %v413_v46, %v298_v21  ;;  %v8033_v48 = vld [vmem:[#allocation34_spill] sm:$0xff] }
 0x306   :  { %v898_v55 = vrot.slane %v826_v35, 2  ;;  %v899_v1 = vrot.slane %v827_v30, 2  ;;  %v409_v38 = vrot.slane %v330_v59, 1  ;;  %v293_v33 = vadd.f32 %v8029_v0, %v5232_v7  ;;  %v8034_v30 = vld [vmem:[#allocation47_spill] sm:$0xff] }
 0x307   :  { %v5388_v43 = vadd.f32 %v1329_v15, %v1311_v11  ;;  %v1324_v15 = vmul.f32 %v5124_v40, %v5287_v2  ;;  %v842_v11 = vmul.f32 %v5272_v9, %v5164_v29  ;;  %v834_v21 = vmul.f32 %v8030_v27, %v5164_v29 }
 0x308   :  { %v832_v46 = vmul.f32 %v5150_v49, %v5164_v29 }
 0x309   :  { %v922_v50 = vrot.slane %v842_v11, 2  ;;  %v833_v11 = vmul.f32 %v5393_v31, %v5164_v29 }
 0x30b   :  { %v1262_v5 = vpop.permute.xlu1 %1261  ;;  %v1260_v13 = vpop.permute.xlu0 %1259 }
 0x30c   :  { %v1307_v14 = vadd.f32 %v1262_v5, %v1125_v54  ;;  %v1276_v23 = vpop.permute.xlu2 %1275  ;;  %v1306_v58 = vadd.f32 %v1260_v13, %v1124_v4  ;;  %v1128_v54 = vadd.f32 %v5088_v6, %v946_v39  ;;  %v8026_v4 = vld [vmem:[#allocation22_spill] sm:$0xff]  ;;  %v8027_v5 = vld [vmem:[#allocation29_spill] sm:$0xff]  ;;  %v5451_v6 = vld [vmem:[%s7906_s0 + $0xd8] sm:$0x3] }
 0x30d   :  { %v1314_v26 = vadd.f32 %v1276_v23, %v1132_v45  ;;  %v294_v45 = vadd.f32 %v8026_v4, %v192_v3  ;;  %v835_v24 = vmul.f32 %v5451_v6, %v5164_v29  ;;  %v398_v23 = vsel %vm365_vm0, %v396_v8, %v397_v44  ;;  %v5474_v39 = vld [vmem:[%s7906_s0 + $0x80] sm:$0xff] }
 0x30e   :  { %v5421_v18 = vadd.f32 %v1325_v37, %v1307_v14  ;;  %v5431_v34 = vadd.f32 %v1324_v15, %v1306_v58  ;;  %v923_v37 = vrot.slane %v843_v60, 2  ;;  %v627_v15 = vadd.f32 %v8027_v5, %v445_v32  ;;  %v5479_v32 = vld [vmem:[%s7906_s0 + $0x120] sm:$0xff] }
 0x30f   :  { %v5433_v61 = vadd.f32 %v1332_v56, %v1314_v26  ;;  %v619_v56 = vadd.f32 %v8028_v28, %v437_v52  ;;  %v900_v26 = vsel %vm876_vm1, %v898_v55, %v899_v1  ;;  %v441_v62 = vadd.f32 %v5280_v47, %v294_v45  ;;  %v8035_v52 = vld [vmem:[#allocation8_spill] sm:$0xff] }
 0x310   :  { %v809_v58 = vadd.f32 %v8034_v30, %v627_v15  ;;  %v924_v60 = vsel %vm876_vm1, %v922_v50, %v923_v37  ;;  %v440_v3 = vadd.f32 %v398_v23, %v293_v33  ;;  %v910_v8 = vrot.slane %v834_v21, 2  ;;  %v8036_v50 = vld [vmem:[#allocation43_spill] sm:$0xff]  ;;  %v8038_v15 = vld [vmem:[#allocation49_spill] sm:$0xff] }
 0x311   :  { %v801_v7 = vadd.f32 %v8033_v48, %v619_v56  ;;  %v911_v44 = vrot.slane %v835_v24, 2  ;;  %v195_v55 = vadd.f32 %v8035_v52, %v5267_v42  ;;  %v410_v1 = vsel %vm365_vm0, %v408_v16, %v409_v38  ;;  %v8040_v16 = vld [vmem:[#allocation23_spill] sm:$0xff]  ;;  %v8042_v24 = vld [vmem:[#allocation53_spill] sm:$0xff] }
 0x312   :  { %v956_v47 = vadd.f32 %v924_v60, %v809_v58  ;;  %v623_v37 = vadd.f32 %v8036_v50, %v441_v62  ;;  %v907_v45 = vrot.slane %v832_v46, 2  ;;  %v908_v5 = vrot.slane %v833_v11, 2  ;;  %v8041_v33 = vld [vmem:[#allocation35_spill] sm:$0xff] }
 0x313   :  { %v1268_v20 = vpop.permute.xlu1 %1267  ;;  %v5455_v14 = vpop.permute.xlu0 %1265  ;;  %v1330_v0 = vmul.f32 %v5287_v2, %v5474_v39  ;;  %v1338_v42 = vmul.f32 %v5287_v2, %v5479_v32  ;;  %v297_v38 = vadd.f32 %v8040_v16, %v195_v55  ;;  %v912_v23 = vsel %vm876_vm1, %v910_v8, %v911_v44  ;;  %v8043_v55 = vld [vmem:[#allocation44_spill] sm:$0xff] }
 0x314   :  { %v1310_v35 = vadd.f32 %v1268_v20, %v1128_v54  ;;  %8031 = vst [vmem:[#allocation20_spill] sm:$0xff] %v5455_v14  ;;  %v5457_v13 = vpop.permute.xlu2 %1281  ;;  %v948_v54 = vadd.f32 %v900_v26, %v801_v7  ;;  %v1138_v56 = vadd.f32 %v5362_v22, %v956_v47  ;;  %v840_v22 = vmul.f32 %v5263_v53, %v5164_v29  ;;  %v8044_v47 = vld [vmem:[#allocation57_spill] sm:$0xff] }
 0x315   :  { %8032 = vst [vmem:[#allocation40_spill] sm:$0xff] %v5457_v13  ;;  %v841_v30 = vmul.f32 %v5426_v36, %v5164_v29  ;;  %v909_v46 = vsel %vm876_vm1, %v907_v45, %v908_v5  ;;  %v444_v62 = vadd.f32 %v410_v1, %v297_v38  ;;  %v5512_v29 = vld [vmem:[%s7906_s0 + $0xe0] sm:$0xff]  ;;  %v1333_v1 = vmul.f32 %v8030_v27, %v5287_v2  ;;  %v8046_v5 = vld [vmem:[#allocation54_spill] sm:$0xff] }
 0x316   :  { %v5468_v59 = vadd.f32 %v1328_v12, %v1310_v35  ;;  %v8037_v12 = vld [vmem:[#allocation18_spill] sm:$0xff]  ;;  %v1130_v28 = vadd.f32 %v8038_v15, %v948_v54  ;;  %v805_v35 = vadd.f32 %v8042_v24, %v623_v37  ;;  %v919_v52 = vrot.slane %v840_v22, 2 }
 0x317   :  { %v622_v4 = vadd.f32 %v8037_v12, %v440_v3  ;;  %v920_v8 = vrot.slane %v841_v30, 2  ;;  %v626_v54 = vadd.f32 %v8043_v55, %v444_v62  ;;  %v1334_v37 = vmul.f32 %v5512_v29, %v5287_v2  ;;  %v8045_v12 = vld [vmem:[#allocation50_spill] sm:$0xff] }
 0x318   :  { %v952_v3 = vadd.f32 %v912_v23, %v805_v35  ;;  %v1337_v35 = vmul.f32 %v5272_v9, %v5287_v2 }
 0x319   :  { %v804_v21 = vadd.f32 %v8041_v33, %v622_v4  ;;  %v808_v15 = vadd.f32 %v8046_v5, %v626_v54 }
 0x31a   :  { %v1134_v50 = vadd.f32 %v8044_v47, %v952_v3  ;;  %v8050_v3 = vld [vmem:[#allocation25_spill] sm:$0xff] }
 0x31b   :  { %v5488_v20 = vpop.permute.xlu1 %1273  ;;  %v1272_v48 = vpop.permute.xlu0 %1271  ;;  %v951_v44 = vadd.f32 %v909_v46, %v804_v21  ;;  %v8047_v21 = vld [vmem:[#allocation59_spill] sm:$0xff] }
 0x31c   :  { %8039 = vst [vmem:[#allocation14_spill] sm:$0xff] %v5488_v20  ;;  %v1288_v7 = vpop.permute.xlu2 %1287  ;;  %v1312_v58 = vadd.f32 %v1272_v48, %v1130_v28 }
 0x31d   :  { %v1320_v26 = vadd.f32 %v1288_v7, %v1138_v56  ;;  %v1133_v4 = vadd.f32 %v8045_v12, %v951_v44  ;;  %v8051_v44 = vld [vmem:[#allocation61_spill] sm:$0xff] }
 0x31e   :  { %v5503_v11 = vadd.f32 %v1330_v0, %v1312_v58  ;;  %v921_v0 = vsel %vm876_vm1, %v919_v52, %v920_v8 }
 0x31f   :  { %v5505_v60 = vadd.f32 %v1338_v42, %v1320_v26  ;;  %v955_v33 = vadd.f32 %v921_v0, %v808_v15  ;;  %v8049_v26 = vld [vmem:[#allocation58_spill] sm:$0xff] }
 0x320   :  { %v4105_v15 = vld [vmem:[%s7907_s1 + $0xb] ss:$0 sm:$0xff] }
 0x321   :  { %v1137_v24 = vadd.f32 %v8047_v21, %v955_v33 }
 0x323   :  { %v1280_v45 = vpop.permute.xlu1 %1279  ;;  %v1278_v56 = vpop.permute.xlu0 %1277 }
 0x324   :  { %v1316_v28 = vadd.f32 %v1280_v45, %v1134_v50  ;;  %v1315_v42 = vadd.f32 %v1278_v56, %v1133_v4  ;;  %v5560_v45 = vld [vmem:[%s7906_s0 + $0xf0] sm:$0xff] }
 0x326   :  { %v5521_v16 = vadd.f32 %v1334_v37, %v1316_v28  ;;  %v5523_v38 = vadd.f32 %v1333_v1, %v1315_v42 }
 0x32b   :  { %v1286_v23 = vpop.permute.xlu1 %1285  ;;  %v5528_v7 = vpop.permute.xlu0 %1283 }
 0x32c   :  { %v1319_v48 = vadd.f32 %v1286_v23, %v1137_v24  ;;  %8048 = vst [vmem:[#allocation26_spill] sm:$0xff] %v5528_v7 }
 0x32e   :  { %v5530_v22 = vadd.f32 %v1337_v35, %v1319_v48 }
 0x333   :  { %v1359_v30 = vpop.permute.xlu0 %1358 }
 0x334   :  { %v1363_v58 = vmul.f32 %v5111_v25, %v1359_v30  ;;  %v1361_v46 = vmul.f32 %v8049_v26, %v1359_v30  ;;  %v1362_v62 = vmul.f32 %v5124_v40, %v1359_v30  ;;  %v1366_v2 = vmul.f32 %v5177_v10, %v1359_v30 }
 0x335   :  { %v1364_v52 = vmul.f32 %v8050_v3, %v1359_v30  ;;  %v1365_v8 = vmul.f32 %v5134_v41, %v1359_v30  ;;  %v1369_v55 = vmul.f32 %v8051_v44, %v1359_v30  ;;  %v1367_v54 = vmul.f32 %v5143_v57, %v1359_v30 }
 0x336   :  { %1397 = vrot.lane.b32.xlu0 %v1363_v58, %s4270_s7  ;;  %1393 = vrot.lane.b32.xlu1 %v1361_v46, %s4270_s7  ;;  %v1368_v47 = vmul.f32 %v1359_v30, %v5474_v39  ;;  %v1372_v50 = vmul.f32 %v5512_v29, %v1359_v30  ;;  %v1370_v37 = vmul.f32 %v5150_v49, %v1359_v30 }
 0x337   :  { %1395 = vrot.lane.b32.xlu2 %v1362_v62, %s4270_s7  ;;  %v1371_v12 = vmul.f32 %v8030_v27, %v1359_v30  ;;  %v1375_v4 = vmul.f32 %v5272_v9, %v1359_v30  ;;  %v1373_v1 = vmul.f32 %v5560_v45, %v1359_v30  ;;  %v1374_v5 = vmul.f32 %v5263_v53, %v1359_v30 }
 0x338   :  { %v1376_v28 = vmul.f32 %v1359_v30, %v5479_v32 }
 0x33e   :  { %1403 = vrot.lane.b32.xlu0 %v1366_v2, %s4270_s7  ;;  %1399 = vrot.lane.b32.xlu1 %v1364_v52, %s4270_s7 }
 0x33f   :  { %1401 = vrot.lane.b32.xlu2 %v1365_v8, %s4270_s7 }
 0x346   :  { %1409 = vrot.lane.b32.xlu0 %v1369_v55, %s4270_s7  ;;  %1405 = vrot.lane.b32.xlu1 %v1367_v54, %s4270_s7 }
 0x347   :  { %1407 = vrot.lane.b32.xlu2 %v1368_v47, %s4270_s7 }
 0x34e   :  { %1415 = vrot.lane.b32.xlu0 %v1372_v50, %s4270_s7  ;;  %1411 = vrot.lane.b32.xlu1 %v1370_v37, %s4270_s7 }
 0x34f   :  { %1413 = vrot.lane.b32.xlu2 %v1371_v12, %s4270_s7  ;;  %v4107_v12 = vld [vmem:[%s7907_s1 + $0xd] ss:$0 sm:$0xff] }
 0x356   :  { %1421 = vrot.lane.b32.xlu0 %v1375_v4, %s4270_s7  ;;  %1417 = vrot.lane.b32.xlu1 %v1373_v1, %s4270_s7 }
 0x357   :  { %1419 = vrot.lane.b32.xlu2 %v1374_v5, %s4270_s7 }
 0x35e   :  { %1423 = vrot.lane.b32.xlu1 %v1376_v28, %s4270_s7 }
 0x35f   :  { %1460 = vrot.lane.b32.xlu2 %v4105_v15, %s4269_s25 }
 0x391   :  { %v5573_v56 = vpop.permute.xlu2 %1395 }
 0x399   :  { %v5575_v0 = vpop.permute.xlu2 %1401 }
 0x39a   :  { %8052 = vst [vmem:[#allocation31_spill] sm:$0xff] %v5575_v0 }
 0x3a1   :  { %v5577_v42 = vpop.permute.xlu2 %1407 }
 0x3a8   :  { %v5619_v1 = vpop.permute.xlu1 %1393  ;;  %v1398_v15 = vpop.permute.xlu0 %1397 }
 0x3a9   :  { %v5579_v33 = vpop.permute.xlu2 %1413  ;;  %8054 = vst [vmem:[#allocation36_spill] sm:$0xff] %v5619_v1 }
 0x3b0   :  { %v1400_v5 = vpop.permute.xlu1 %1399 }
 0x3b1   :  { %v5581_v21 = vpop.permute.xlu2 %1419 }
 0x3b2   :  { %8053 = vst [vmem:[#allocation30_spill] sm:$0xff] %v5581_v21 }
 0x3b8   :  { %v5621_v28 = vpop.permute.xlu1 %1405 }
 0x3b9   :  { %v1461_v24 = vpop.permute.xlu2 %1460 }
 0x3ba   :  { %v1465_v35 = vmul.f32 %v5111_v25, %v1461_v24  ;;  %v1464_v23 = vmul.f32 %v5124_v40, %v1461_v24  ;;  %v1463_v48 = vmul.f32 %v8049_v26, %v1461_v24  ;;  %v1468_v30 = vmul.f32 %v5177_v10, %v1461_v24 }
 0x3bb   :  { %v1467_v58 = vmul.f32 %v5134_v41, %v1461_v24  ;;  %v1466_v46 = vmul.f32 %v8050_v3, %v1461_v24  ;;  %v1471_v62 = vmul.f32 %v8051_v44, %v1461_v24  ;;  %v1470_v2 = vmul.f32 %v1461_v24, %v5474_v39 }
 0x3bc   :  { %1499 = vrot.lane.b32.xlu2 %v1465_v35, %s4271_s12  ;;  %1497 = vrot.lane.b32.xlu1 %v1464_v23, %s4271_s12  ;;  %v1469_v52 = vmul.f32 %v5143_v57, %v1461_v24  ;;  %v1474_v8 = vmul.f32 %v5512_v29, %v1461_v24  ;;  %v1473_v55 = vmul.f32 %v8030_v27, %v1461_v24  ;;  %v1404_v35 = vpop.permute.xlu0 %1403  ;;  %v5626_v23 = vld [vmem:[%s7907_s1 + $0xc] ss:$0 sm:$0xff] }
 0x3bd   :  { %1495 = vrot.lane.b32.xlu0 %v1463_v48, %s4271_s12  ;;  %v1472_v54 = vmul.f32 %v5150_v49, %v1461_v24  ;;  %v1477_v47 = vmul.f32 %v5272_v9, %v1461_v24  ;;  %v1476_v50 = vmul.f32 %v5263_v53, %v1461_v24  ;;  %v1475_v37 = vmul.f32 %v5560_v45, %v1461_v24 }
 0x3be   :  { %v1478_v4 = vmul.f32 %v1461_v24, %v5479_v32  ;;  %v1565_v48 = vmul.f32 %v5111_v25, %v5626_v23  ;;  %v8055_v24 = vld [vmem:[#allocation60_spill] sm:$0xff] }
 0x3c4   :  { %1505 = vrot.lane.b32.xlu2 %v1468_v30, %s4271_s12  ;;  %1503 = vrot.lane.b32.xlu1 %v1467_v58, %s4271_s12  ;;  %v1566_v30 = vmul.f32 %v8055_v24, %v5626_v23  ;;  %v5632_v58 = vpop.permute.xlu1 %1411 }
 0x3c5   :  { %1501 = vrot.lane.b32.xlu0 %v1466_v46, %s4271_s12  ;;  %v1631_v46 = vrot.slane %v1565_v48, 1 }
 0x3cc   :  { %1511 = vrot.lane.b32.xlu2 %v1471_v62, %s4271_s12  ;;  %1509 = vrot.lane.b32.xlu1 %v1470_v2, %s4271_s12  ;;  %v1632_v62 = vrot.slane %v1566_v30, 1  ;;  %v5634_v2 = vpop.permute.xlu0 %1409  ;;  %v5644_v48 = vpop.permute.xlu1 %1417  ;;  %v1446_v30 = vadd.f32 %v1404_v35, %v5468_v59  ;;  %v1583_v59 = vmul.f32 %v5512_v29, %v5626_v23 }
 0x3cd   :  { %1507 = vrot.lane.b32.xlu0 %v1469_v52, %s4271_s12  ;;  %8056 = vst [vmem:[#allocation41_spill] sm:$0xff] %v5634_v2  ;;  %v1443_v52 = vadd.f32 %v1398_v15, %v5421_v18 }
 0x3ce   :  { %8058 = vst [vmem:[#allocation13_spill] sm:$0xff] %v5644_v48 }
 0x3d4   :  { %1517 = vrot.lane.b32.xlu2 %v1474_v8, %s4271_s12  ;;  %1515 = vrot.lane.b32.xlu1 %v1473_v55, %s4271_s12  ;;  %v1633_v55 = vsel %vm365_vm0, %v1631_v46, %v1632_v62  ;;  %v1416_v14 = vpop.permute.xlu0 %1415  ;;  %v5650_v1 = vpop.permute.xlu1 %1423 }
 0x3d5   :  { %1513 = vrot.lane.b32.xlu0 %v1472_v54, %s4271_s12  ;;  %v1571_v54 = vmul.f32 %v5177_v10, %v5626_v23 }
 0x3dc   :  { %1523 = vrot.lane.b32.xlu2 %v1477_v47, %s4271_s12  ;;  %1521 = vrot.lane.b32.xlu1 %v1476_v50, %s4271_s12  ;;  %v8057_v47 = vld [vmem:[#allocation65_spill] sm:$0xff] }
 0x3dd   :  { %1519 = vrot.lane.b32.xlu0 %v1475_v37, %s4271_s12  ;;  %v1572_v50 = vmul.f32 %v8057_v47, %v5626_v23 }
 0x3df   :  { %v1641_v0 = vrot.slane %v1572_v50, 1 }
 0x3e4   :  { %1708 = vrot.lane.b32.xlu1 %v4107_v12, %s4268_s22 }
 0x3e5   :  { %1525 = vrot.lane.b32.xlu0 %v1478_v4, %s4271_s12  ;;  %v1640_v4 = vrot.slane %v1571_v54, 1  ;;  %v1422_v54 = vpop.permute.xlu0 %1421 }
 0x3e7   :  { %v1642_v15 = vsel %vm365_vm0, %v1640_v4, %v1641_v0  ;;  %v5663_v0 = vld [vmem:[%s7906_s0 + $0xe8] sm:$0x3]  ;;  %v1658_v4 = vrot.slane %v1583_v59, 1 }
 0x3e8   :  { %v1584_v35 = vmul.f32 %v5663_v0, %v5626_v23 }
 0x416   :  { %v1500_v8 = vpop.permute.xlu2 %1499 }
 0x417   :  { %v1545_v37 = vadd.f32 %v1500_v8, %v1443_v52  ;;  %v1563_v52 = vmul.f32 %v5124_v40, %v5626_v23  ;;  %v8060_v8 = vld [vmem:[#allocation67_spill] sm:$0xff] }
 0x419   :  { %v5642_v12 = vadd.f32 %v1633_v55, %v1545_v37  ;;  %v1564_v55 = vmul.f32 %v8060_v8, %v5626_v23  ;;  %v1628_v50 = vrot.slane %v1563_v52, 1  ;;  %v1590_v52 = vmul.f32 %v5355_v17, %v5626_v23 }
 0x41b   :  { %v1629_v37 = vrot.slane %v1564_v55, 1 }
 0x41d   :  { %v1630_v7 = vsel %vm365_vm0, %v1628_v50, %v1629_v37 }
 0x41e   :  { %v1506_v18 = vpop.permute.xlu2 %1505 }
 0x41f   :  { %v1548_v46 = vadd.f32 %v1506_v18, %v1446_v30  ;;  %v1659_v30 = vrot.slane %v1584_v35, 1  ;;  %v1442_v18 = vadd.f32 %v5573_v56, %v5431_v34  ;;  %v1567_v34 = vmul.f32 %v8050_v3, %v5626_v23 }
 0x421   :  { %v5648_v62 = vadd.f32 %v1642_v15, %v1548_v46  ;;  %v1452_v15 = vadd.f32 %v1416_v14, %v5521_v16  ;;  %v1660_v13 = vsel %vm365_vm0, %v1658_v4, %v1659_v30  ;;  %v5683_v14 = vld [vmem:[%s7906_s0 + $0x48] sm:$0x3]  ;;  %v1668_v4 = vrot.slane %v1590_v52, 1 }
 0x422   :  { %v1568_v16 = vmul.f32 %v5683_v14, %v5626_v23  ;;  %v1634_v30 = vrot.slane %v1567_v34, 1 }
 0x426   :  { %v5652_v21 = vpop.permute.xlu2 %1511 }
 0x427   :  { %8059 = vst [vmem:[#allocation7_spill] sm:$0xff] %v5652_v21  ;;  %v1589_v21 = vmul.f32 %v5272_v9, %v5626_v23 }
 0x429   :  { %v1667_v37 = vrot.slane %v1589_v21, 1 }
 0x42b   :  { %v1669_v21 = vsel %vm365_vm0, %v1667_v37, %v1668_v4  ;;  %v1447_v37 = vadd.f32 %v5621_v28, %v5388_v43 }
 0x42e   :  { %v1518_v46 = vpop.permute.xlu2 %1517  ;;  %v1498_v48 = vpop.permute.xlu1 %1497 }
 0x42f   :  { %v1554_v55 = vadd.f32 %v1518_v46, %v1452_v15  ;;  %v1544_v59 = vadd.f32 %v1498_v48, %v1442_v18  ;;  %v5676_v35 = vpop.permute.xlu0 %1495  ;;  %v5694_v48 = vld [vmem:[%s7906_s0 + $0x88] sm:$0x3]  ;;  %v1635_v18 = vrot.slane %v1568_v16, 1  ;;  %v1455_v15 = vadd.f32 %v1422_v54, %v5530_v22 }
 0x430   :  { %8061 = vst [vmem:[#allocation22_spill] sm:$0xff] %v5676_v35  ;;  %v1444_v46 = vadd.f32 %v1400_v5, %v5341_v19  ;;  %v1573_v22 = vmul.f32 %v5143_v57, %v5626_v23  ;;  %v1574_v19 = vmul.f32 %v5310_v51, %v5626_v23 }
 0x431   :  { %v5687_v56 = vadd.f32 %v1630_v7, %v1544_v59  ;;  %v5689_v50 = vadd.f32 %v1660_v13, %v1554_v55  ;;  %v1575_v13 = vmul.f32 %v5626_v23, %v5474_v39  ;;  %v1576_v7 = vmul.f32 %v5626_v23, %v5694_v48 }
 0x432   :  { %v1636_v59 = vsel %vm365_vm0, %v1634_v30, %v1635_v18  ;;  %v1644_v20 = vrot.slane %v1574_v19, 1  ;;  %v1581_v18 = vmul.f32 %v8030_v27, %v5626_v23 }
 0x433   :  { %8062 = vst [vmem:[#allocation29_spill] sm:$0xff] %v5687_v56  ;;  %v1646_v16 = vrot.slane %v1575_v13, 1  ;;  %v1643_v56 = vrot.slane %v1573_v22, 1  ;;  %v1451_v22 = vadd.f32 %v5579_v33, %v5523_v38 }
 0x436   :  { %v1524_v35 = vpop.permute.xlu2 %1523  ;;  %v5698_v2 = vpop.permute.xlu1 %1503 }
 0x437   :  { %8063 = vst [vmem:[#allocation16_spill] sm:$0xff] %v5698_v2  ;;  %v1557_v52 = vadd.f32 %v1524_v35, %v1455_v15  ;;  %v1502_v55 = vpop.permute.xlu0 %1501  ;;  %v1647_v2 = vrot.slane %v1576_v7, 1  ;;  %v1448_v35 = vadd.f32 %v5577_v42, %v5503_v11  ;;  %v1582_v15 = vmul.f32 %v5451_v6, %v5626_v23 }
 0x438   :  { %v1546_v5 = vadd.f32 %v1502_v55, %v1444_v46  ;;  %v1645_v7 = vsel %vm365_vm0, %v1643_v56, %v1644_v20  ;;  %v1580_v11 = vmul.f32 %v5393_v31, %v5626_v23  ;;  %v1450_v20 = vadd.f32 %v5632_v58, %v5433_v61  ;;  %v8065_v58 = vld [vmem:[#allocation63_spill] sm:$0xff] }
 0x439   :  { %v5710_v54 = vadd.f32 %v1669_v21, %v1557_v52  ;;  %v1648_v30 = vsel %vm365_vm0, %v1646_v16, %v1647_v2  ;;  %v1579_v21 = vmul.f32 %v5150_v49, %v5626_v23  ;;  %v1655_v2 = vrot.slane %v1581_v18, 1 }
 0x43a   :  { %v5712_v34 = vadd.f32 %v1636_v59, %v1546_v5  ;;  %v1656_v52 = vrot.slane %v1582_v15, 1  ;;  %v1653_v59 = vrot.slane %v1580_v11, 1 }
 0x43b   :  { %8064 = vst [vmem:[#allocation38_spill] sm:$0xff] %v5710_v54  ;;  %v1652_v55 = vrot.slane %v1579_v21, 1 }
 0x43c   :  { %v1657_v19 = vsel %vm365_vm0, %v1655_v2, %v1656_v52 }
 0x43e   :  { %v1510_v4 = vpop.permute.xlu1 %1509 }
 0x43f   :  { %v1550_v46 = vadd.f32 %v1510_v4, %v1448_v35  ;;  %v1508_v13 = vpop.permute.xlu0 %1507  ;;  %v1654_v35 = vsel %vm365_vm0, %v1652_v55, %v1653_v59 }
 0x440   :  { %v1549_v43 = vadd.f32 %v1508_v13, %v1447_v37 }
 0x441   :  { %v5728_v42 = vadd.f32 %v1648_v30, %v1550_v46 }
 0x442   :  { %v5730_v28 = vadd.f32 %v1645_v7, %v1549_v43 }
 0x446   :  { %v1516_v56 = vpop.permute.xlu1 %1515 }
 0x447   :  { %v1553_v5 = vadd.f32 %v1516_v56, %v1451_v22  ;;  %v1514_v16 = vpop.permute.xlu0 %1513  ;;  %v5773_v56 = vld [vmem:[%s7906_s0 + $0x128] sm:$0x3] }
 0x448   :  { %v1552_v37 = vadd.f32 %v1514_v16, %v1450_v20  ;;  %v1591_v16 = vmul.f32 %v5626_v23, %v5479_v32 }
 0x449   :  { %v5738_v4 = vadd.f32 %v1657_v19, %v1553_v5 }
 0x44a   :  { %v5740_v30 = vadd.f32 %v1654_v35, %v1552_v37  ;;  %v1592_v35 = vmul.f32 %v5626_v23, %v5773_v56 }
 0x44e   :  { %v5742_v18 = vpop.permute.xlu1 %1521 }
 0x44f   :  { %v5758_v21 = vpop.permute.xlu0 %1519 }
 0x456   :  { %v5744_v15 = vpop.permute.xlu1 %1708 }
 0x457   :  { %v1715_v38 = vmul.f32 %v5111_v25, %v5744_v15  ;;  %v1716_v61 = vmul.f32 %v8055_v24, %v5744_v15  ;;  %v1711_v33 = vmul.f32 %v8049_v26, %v5744_v15  ;;  %v1712_v46 = vmul.f32 %v8065_v58, %v5744_v15 }
 0x458   :  { %v1713_v13 = vmul.f32 %v5124_v40, %v5744_v15  ;;  %v1714_v7 = vmul.f32 %v8060_v8, %v5744_v15  ;;  %v1721_v26 = vmul.f32 %v5177_v10, %v5744_v15  ;;  %v1722_v55 = vmul.f32 %v8057_v47, %v5744_v15 }
 0x459   :  { %v1781_v11 = vrot.slane %v1715_v38, 1  ;;  %v1782_v43 = vrot.slane %v1716_v61, 1  ;;  %v1775_v25 = vrot.slane %v1711_v33, 1  ;;  %v1776_v2 = vrot.slane %v1712_v46, 1 }
 0x45a   :  { %v1778_v52 = vrot.slane %v1713_v13, 1  ;;  %v1779_v24 = vrot.slane %v1714_v7, 1  ;;  %v1717_v22 = vmul.f32 %v8050_v3, %v5744_v15  ;;  %v1718_v20 = vmul.f32 %v5683_v14, %v5744_v15  ;;  %v8066_v7 = vld [vmem:[#allocation10_spill] sm:$0xff] }
 0x45b   :  { %v1783_v59 = vsel %vm365_vm0, %v1781_v11, %v1782_v43  ;;  %v1777_v40 = vsel %vm365_vm0, %v1775_v25, %v1776_v2  ;;  %v1719_v19 = vmul.f32 %v5134_v41, %v5744_v15  ;;  %v1720_v5 = vmul.f32 %v5370_v63, %v5744_v15  ;;  %v1526_v2 = vpop.permute.xlu0 %1525 }
 0x45c   :  { %1827 = vrot.lane.b32.xlu1 %v1783_v59, %s4270_s7  ;;  %1823 = vrot.lane.b32.xlu2 %v1777_v40, %s4270_s7  ;;  %v1780_v10 = vsel %vm365_vm0, %v1778_v52, %v1779_v24  ;;  %v1790_v37 = vrot.slane %v1721_v26, 1  ;;  %v1791_v38 = vrot.slane %v1722_v55, 1  ;;  %v1784_v61 = vrot.slane %v1717_v22, 1 }
 0x45d   :  { %1825 = vrot.lane.b32.xlu0 %v1780_v10, %s4270_s7  ;;  %v1785_v33 = vrot.slane %v1718_v20, 1  ;;  %v1787_v58 = vrot.slane %v1719_v19, 1  ;;  %v1788_v46 = vrot.slane %v1720_v5, 1  ;;  %v1456_v41 = vadd.f32 %v5650_v1, %v5505_v60 }
 0x45e   :  { %v1727_v13 = vmul.f32 %v8051_v44, %v5744_v15  ;;  %v1728_v11 = vmul.f32 %v8066_v7, %v5744_v15  ;;  %v1670_v43 = vrot.slane %v1591_v16, 1  ;;  %v1671_v25 = vrot.slane %v1592_v35, 1 }
 0x45f   :  { %v1792_v52 = vsel %vm365_vm0, %v1790_v37, %v1791_v38  ;;  %v1786_v24 = vsel %vm365_vm0, %v1784_v61, %v1785_v33  ;;  %v1723_v26 = vmul.f32 %v5143_v57, %v5744_v15  ;;  %v1724_v55 = vmul.f32 %v5310_v51, %v5744_v15 }
 0x460   :  { %v1789_v60 = vsel %vm365_vm0, %v1787_v58, %v1788_v46  ;;  %v1725_v44 = vmul.f32 %v5744_v15, %v5474_v39  ;;  %v1726_v1 = vmul.f32 %v5744_v15, %v5694_v48  ;;  %v1558_v59 = vadd.f32 %v1526_v2, %v1456_v41 }
 0x461   :  { %v1672_v57 = vsel %vm365_vm0, %v1670_v43, %v1671_v25  ;;  %v1799_v40 = vrot.slane %v1727_v13, 1  ;;  %v1800_v22 = vrot.slane %v1728_v11, 1  ;;  %v1793_v20 = vrot.slane %v1723_v26, 1 }
 0x462   :  { %v1794_v10 = vrot.slane %v1724_v55, 1  ;;  %v1796_v19 = vrot.slane %v1725_v44, 1  ;;  %v1797_v5 = vrot.slane %v1726_v1, 1  ;;  %v1733_v16 = vmul.f32 %v5512_v29, %v5744_v15  ;;  %v5839_v44 = vld [vmem:[%s7906_s0 + $0xf8] sm:$0x3] }
 0x463   :  { %v1734_v35 = vmul.f32 %v5663_v0, %v5744_v15  ;;  %v5812_v37 = vadd.f32 %v1672_v57, %v1558_v59  ;;  %v1801_v38 = vsel %vm365_vm0, %v1799_v40, %v1800_v22  ;;  %v1729_v33 = vmul.f32 %v5150_v49, %v5744_v15 }
 0x464   :  { %1833 = vrot.lane.b32.xlu1 %v1792_v52, %s4270_s7  ;;  %1829 = vrot.lane.b32.xlu2 %v1786_v24, %s4270_s7  ;;  %v1795_v61 = vsel %vm365_vm0, %v1793_v20, %v1794_v10  ;;  %v1730_v58 = vmul.f32 %v5393_v31, %v5744_v15  ;;  %v1798_v46 = vsel %vm365_vm0, %v1796_v19, %v1797_v5  ;;  %v1808_v11 = vrot.slane %v1733_v16, 1 }
 0x465   :  { %1831 = vrot.lane.b32.xlu0 %v1789_v60, %s4270_s7  ;;  %8067 = vst [vmem:[#allocation62_spill] sm:$0xff] %v5812_v37  ;;  %v1731_v41 = vmul.f32 %v8030_v27, %v5744_v15  ;;  %v1732_v13 = vmul.f32 %v5451_v6, %v5744_v15  ;;  %v1809_v43 = vrot.slane %v1734_v35, 1  ;;  %v1802_v49 = vrot.slane %v1729_v33, 1 }
 0x466   :  { %v1803_v25 = vrot.slane %v1730_v58, 1  ;;  %v1739_v26 = vmul.f32 %v5272_v9, %v5744_v15  ;;  %v1740_v27 = vmul.f32 %v5355_v17, %v5744_v15  ;;  %v1735_v60 = vmul.f32 %v5560_v45, %v5744_v15 }
 0x467   :  { %v1805_v2 = vrot.slane %v1731_v41, 1  ;;  %v1806_v52 = vrot.slane %v1732_v13, 1  ;;  %v1810_v24 = vsel %vm365_vm0, %v1808_v11, %v1809_v43  ;;  %v1736_v1 = vmul.f32 %v5839_v44, %v5744_v15 }
 0x468   :  { %v1804_v55 = vsel %vm365_vm0, %v1802_v49, %v1803_v25  ;;  %v1737_v59 = vmul.f32 %v5263_v53, %v5744_v15  ;;  %v1738_v57 = vmul.f32 %v5426_v36, %v5744_v15  ;;  %v1817_v40 = vrot.slane %v1739_v26, 1 }
 0x469   :  { %v1807_v9 = vsel %vm365_vm0, %v1805_v2, %v1806_v52  ;;  %v1818_v22 = vrot.slane %v1740_v27, 1  ;;  %v1811_v20 = vrot.slane %v1735_v60, 1  ;;  %v1812_v10 = vrot.slane %v1736_v1, 1  ;;  %v5882_v2 = vld [vmem:[%s7906_s0 + $0x30] sm:$0xff] }
 0x46a   :  { %v1814_v19 = vrot.slane %v1737_v59, 1  ;;  %v1815_v5 = vrot.slane %v1738_v57, 1  ;;  %v1742_v53 = vmul.f32 %v5744_v15, %v5773_v56  ;;  %8069 = vst [vmem:[#allocation47_spill] sm:$0xff] %v5882_v2  ;;  %v5905_v1 = vld [vmem:[%s7906_s0 + $0x10] sm:$0xff]  ;;  %v5912_v59 = vld [vmem:[%s7906_s0 + $0x18] sm:$0x3] }
 0x46b   :  { %v1819_v16 = vsel %vm365_vm0, %v1817_v40, %v1818_v22  ;;  %v1813_v35 = vsel %vm365_vm0, %v1811_v20, %v1812_v10  ;;  %8071 = vst [vmem:[#allocation43_spill] sm:$0xff] %v5905_v1 }
 0x46c   :  { %1839 = vrot.lane.b32.xlu1 %v1801_v38, %s4270_s7  ;;  %1835 = vrot.lane.b32.xlu2 %v1795_v61, %s4270_s7  ;;  %v1741_v38 = vmul.f32 %v5744_v15, %v5479_v32  ;;  %v1816_v61 = vsel %vm365_vm0, %v1814_v19, %v1815_v5  ;;  %v1821_v58 = vrot.slane %v1742_v53, 1  ;;  %8072 = vst [vmem:[#allocation18_spill] sm:$0xff] %v5912_v59  ;;  %v5919_v5 = vld [vmem:[%s7906_s0 + $0x60] sm:$0xff] }
 0x46d   :  { %1837 = vrot.lane.b32.xlu0 %v1798_v46, %s4270_s7  ;;  %v4108_v46 = vld [vmem:[%s7907_s1 + $0xe] ss:$0 sm:$0xff]  ;;  %8073 = vst [vmem:[#allocation49_spill] sm:$0xff] %v5919_v5 }
 0x46e   :  { %v1820_v33 = vrot.slane %v1741_v38, 1 }
 0x470   :  { %v1822_v41 = vsel %vm365_vm0, %v1820_v33, %v1821_v58 }
 0x474   :  { %1845 = vrot.lane.b32.xlu1 %v1810_v24, %s4270_s7  ;;  %1841 = vrot.lane.b32.xlu2 %v1804_v55, %s4270_s7  ;;  %v5889_v24 = vld [vmem:[%s7906_s0 + $0x38] sm:$0x3]  ;;  %v5896_v55 = vld [vmem:[%s7906_s0 + $0x20] sm:$0xff] }
 0x475   :  { %1843 = vrot.lane.b32.xlu0 %v1807_v9, %s4270_s7  ;;  %8070 = vst [vmem:[#allocation8_spill] sm:$0xff] %v5889_v24 }
 0x47c   :  { %1851 = vrot.lane.b32.xlu1 %v1819_v16, %s4270_s7  ;;  %1847 = vrot.lane.b32.xlu2 %v1813_v35, %s4270_s7 }
 0x47d   :  { %1849 = vrot.lane.b32.xlu0 %v1816_v61, %s4270_s7  ;;  %v5930_v61 = vld [vmem:[%s7906_s0 + $0x50] sm:$0xff] }
 0x47e   :  { %8074 = vst [vmem:[#allocation23_spill] sm:$0xff] %v5930_v61 }
 0x484   :  { %1853 = vrot.lane.b32.xlu2 %v1822_v41, %s4270_s7 }
 0x485   :  { %1890 = vrot.lane.b32.xlu0 %v4108_v46, %s4269_s25 }
 0x4cf   :  { %v5867_v15 = vpop.permute.xlu0 %1825 }
 0x4d7   :  { %v5869_v13 = vpop.permute.xlu0 %1831 }
 0x4d8   :  { %8068 = vst [vmem:[#allocation34_spill] sm:$0xff] %v5869_v13 }
 0x4df   :  { %v5871_v11 = vpop.permute.xlu0 %1837 }
 0x4e7   :  { %v5873_v43 = vpop.permute.xlu0 %1843 }
 0x4ef   :  { %v5875_v49 = vpop.permute.xlu0 %1849 }
 0x4f7   :  { %v5877_v25 = vpop.permute.xlu0 %1890 }
 0x4f8   :  { %v1897_v52 = vmul.f32 %v5882_v2, %v5877_v25  ;;  %v1898_v26 = vmul.f32 %v5889_v24, %v5877_v25  ;;  %v1895_v27 = vmul.f32 %v5896_v55, %v5877_v25  ;;  %v1896_v60 = vmul.f32 %v8060_v8, %v5877_v25 }
 0x4f9   :  { %v1893_v9 = vmul.f32 %v5905_v1, %v5877_v25  ;;  %v1894_v57 = vmul.f32 %v5912_v59, %v5877_v25  ;;  %v1903_v16 = vmul.f32 %v5919_v5, %v5877_v25  ;;  %v1904_v35 = vmul.f32 %v8057_v47, %v5877_v25 }
 0x4fa   :  { %v1963_v40 = vrot.slane %v1897_v52, 1  ;;  %v1964_v22 = vrot.slane %v1898_v26, 1  ;;  %v1960_v20 = vrot.slane %v1895_v27, 1  ;;  %v1961_v8 = vrot.slane %v1896_v60, 1 }
 0x4fb   :  { %v1957_v10 = vrot.slane %v1893_v9, 1  ;;  %v1958_v19 = vrot.slane %v1894_v57, 1  ;;  %v1901_v33 = vmul.f32 %v5930_v61, %v5877_v25  ;;  %v1902_v58 = vmul.f32 %v5370_v63, %v5877_v25 }
 0x4fc   :  { %v1965_v38 = vsel %vm365_vm0, %v1963_v40, %v1964_v22  ;;  %v1962_v53 = vsel %vm365_vm0, %v1960_v20, %v1961_v8  ;;  %v1899_v46 = vmul.f32 %v8050_v3, %v5877_v25  ;;  %v1900_v41 = vmul.f32 %v5683_v14, %v5877_v25  ;;  %v5948_v40 = vld [vmem:[%s7906_s0 + $0xb0] sm:$0xff] }
 0x4fd   :  { %2009 = vrot.lane.b32.xlu0 %v1965_v38, %s4271_s12  ;;  %2007 = vrot.lane.b32.xlu2 %v1962_v53, %s4271_s12  ;;  %v1959_v47 = vsel %vm365_vm0, %v1957_v10, %v1958_v19  ;;  %v1972_v52 = vrot.slane %v1903_v16, 1  ;;  %v1973_v26 = vrot.slane %v1904_v35, 1  ;;  %v1969_v27 = vrot.slane %v1901_v33, 1  ;;  %8075 = vst [vmem:[#allocation35_spill] sm:$0xff] %v5948_v40  ;;  %v5965_v16 = vld [vmem:[%s7906_s0 + $0x70] sm:$0xff] }
 0x4fe   :  { %2005 = vrot.lane.b32.xlu1 %v1959_v47, %s4271_s12  ;;  %v1970_v60 = vrot.slane %v1902_v58, 1  ;;  %v1966_v9 = vrot.slane %v1899_v46, 1  ;;  %v1967_v63 = vrot.slane %v1900_v41, 1  ;;  %v1909_v3 = vmul.f32 %v5948_v40, %v5877_v25 }
 0x4ff   :  { %v1974_v57 = vsel %vm365_vm0, %v1972_v52, %v1973_v26  ;;  %v1910_v20 = vmul.f32 %v8066_v7, %v5877_v25  ;;  %v1907_v8 = vmul.f32 %v5877_v25, %v5474_v39  ;;  %v1908_v10 = vmul.f32 %v5877_v25, %v5694_v48 }
 0x500   :  { %v1971_v22 = vsel %vm365_vm0, %v1969_v27, %v1970_v60  ;;  %v1968_v19 = vsel %vm365_vm0, %v1966_v9, %v1967_v63  ;;  %v1905_v7 = vmul.f32 %v5965_v16, %v5877_v25  ;;  %v1906_v39 = vmul.f32 %v5310_v51, %v5877_v25  ;;  %v5981_v51 = vld [vmem:[%s7906_s0 + $0xd0] sm:$0xff]  ;;  %v5993_v63 = vld [vmem:[%s7906_s0 + $0xc0] sm:$0xff] }
 0x501   :  { %v1981_v35 = vrot.slane %v1909_v3, 1  ;;  %v1982_v38 = vrot.slane %v1910_v20, 1  ;;  %v1978_v53 = vrot.slane %v1907_v8, 1  ;;  %v1979_v33 = vrot.slane %v1908_v10, 1 }
 0x502   :  { %v1975_v58 = vrot.slane %v1905_v7, 1  ;;  %v1976_v47 = vrot.slane %v1906_v39, 1  ;;  %v1915_v46 = vmul.f32 %v5512_v29, %v5877_v25  ;;  %v1916_v41 = vmul.f32 %v5663_v0, %v5877_v25  ;;  %v6004_v39 = vld [vmem:[%s7906_s0 + $0x110] sm:$0xff] }
 0x503   :  { %v1983_v52 = vsel %vm365_vm0, %v1981_v35, %v1982_v38  ;;  %v1980_v26 = vsel %vm365_vm0, %v1978_v53, %v1979_v33  ;;  %v1913_v27 = vmul.f32 %v5981_v51, %v5877_v25  ;;  %v1914_v60 = vmul.f32 %v5451_v6, %v5877_v25  ;;  %8076 = vst [vmem:[#allocation53_spill] sm:$0xff] %v6004_v39  ;;  %v6014_v53 = vld [vmem:[%s7906_s0 + $0x100] sm:$0xff] }
 0x504   :  { %v1977_v9 = vsel %vm365_vm0, %v1975_v58, %v1976_v47  ;;  %v1912_v3 = vmul.f32 %v5393_v31, %v5877_v25  ;;  %v1990_v6 = vrot.slane %v1915_v46, 1  ;;  %v1921_v35 = vmul.f32 %v6004_v39, %v5877_v25 }
 0x505   :  { %2015 = vrot.lane.b32.xlu0 %v1974_v57, %s4271_s12  ;;  %2013 = vrot.lane.b32.xlu2 %v1971_v22, %s4271_s12  ;;  %v1911_v57 = vmul.f32 %v5993_v63, %v5877_v25  ;;  %v1991_v22 = vrot.slane %v1916_v41, 1  ;;  %v1987_v20 = vrot.slane %v1913_v27, 1  ;;  %v1988_v8 = vrot.slane %v1914_v60, 1 }
 0x506   :  { %2011 = vrot.lane.b32.xlu1 %v1968_v19, %s4271_s12  ;;  %v1985_v19 = vrot.slane %v1912_v3, 1  ;;  %v1922_v38 = vmul.f32 %v5355_v17, %v5877_v25  ;;  %v1919_v33 = vmul.f32 %v6014_v53, %v5877_v25  ;;  %v1920_v58 = vmul.f32 %v5426_v36, %v5877_v25  ;;  %v6030_v3 = vpop.permute.xlu2 %1823 }
 0x507   :  { %v1984_v10 = vrot.slane %v1911_v57, 1  ;;  %v1992_v7 = vsel %vm365_vm0, %v1990_v6, %v1991_v22  ;;  %v1989_v31 = vsel %vm365_vm0, %v1987_v20, %v1988_v8  ;;  %v1917_v17 = vmul.f32 %v5560_v45, %v5877_v25  ;;  %8077 = vst [vmem:[#allocation44_spill] sm:$0xff] %v6030_v3  ;;  %v4110_v8 = vld [vmem:[%s7907_s1 + $0x10] ss:$0 sm:$0xff] }
 0x508   :  { %v1918_v46 = vmul.f32 %v5839_v44, %v5877_v25  ;;  %v1999_v41 = vrot.slane %v1921_v35, 1  ;;  %v1997_v27 = vrot.slane %v1920_v58, 1  ;;  %v1923_v22 = vmul.f32 %v5877_v25, %v5479_v32 }
 0x509   :  { %v1986_v47 = vsel %vm365_vm0, %v1984_v10, %v1985_v19  ;;  %v1993_v60 = vrot.slane %v1917_v17, 1  ;;  %v1924_v20 = vmul.f32 %v5877_v25, %v5773_v56 }
 0x50a   :  { %v1994_v36 = vrot.slane %v1918_v46, 1  ;;  %v2002_v10 = vrot.slane %v1923_v22, 1 }
 0x50b   :  { %v2003_v19 = vrot.slane %v1924_v20, 1 }
 0x50c   :  { %v1995_v6 = vsel %vm365_vm0, %v1993_v60, %v1994_v36  ;;  %v1881_v36 = vadd.f32 %v5873_v43, %v5738_v4 }
 0x50d   :  { %2021 = vrot.lane.b32.xlu0 %v1983_v52, %s4271_s12  ;;  %2019 = vrot.lane.b32.xlu2 %v1980_v26, %s4271_s12  ;;  %v2000_v52 = vrot.slane %v1922_v38, 1  ;;  %v1996_v26 = vrot.slane %v1919_v33, 1  ;;  %v6048_v38 = vpop.permute.xlu1 %1827 }
 0x50e   :  { %2017 = vrot.lane.b32.xlu1 %v1977_v9, %s4271_s12  ;;  %v6046_v35 = vpop.permute.xlu2 %1829 }
 0x50f   :  { %v2001_v9 = vsel %vm365_vm0, %v1999_v41, %v2000_v52  ;;  %v1998_v57 = vsel %vm365_vm0, %v1996_v26, %v1997_v27  ;;  %v1878_v52 = vadd.f32 %v5871_v11, %v5728_v42 }
 0x515   :  { %2027 = vrot.lane.b32.xlu0 %v1992_v7, %s4271_s12  ;;  %2025 = vrot.lane.b32.xlu2 %v1989_v31, %s4271_s12  ;;  %v2004_v7 = vsel %vm365_vm0, %v2002_v10, %v2003_v19  ;;  %v1834_v33 = vpop.permute.xlu1 %1833 }
 0x516   :  { %2023 = vrot.lane.b32.xlu1 %v1986_v47, %s4271_s12  ;;  %v1836_v32 = vpop.permute.xlu2 %1835  ;;  %v1876_v20 = vadd.f32 %v1834_v33, %v5648_v62 }
 0x517   :  { %v1877_v19 = vadd.f32 %v1836_v32, %v5730_v28  ;;  %v6101_v32 = vld [vmem:[%s7906_s0 + $0x28] sm:$0x3] }
 0x51d   :  { %2033 = vrot.lane.b32.xlu0 %v2001_v9, %s4271_s12  ;;  %2031 = vrot.lane.b32.xlu2 %v1998_v57, %s4271_s12  ;;  %v6054_v47 = vpop.permute.xlu1 %1839 }
 0x51e   :  { %2029 = vrot.lane.b32.xlu1 %v1995_v6, %s4271_s12  ;;  %v1842_v31 = vpop.permute.xlu2 %1841 }
 0x525   :  { %2218 = vrot.lane.b32.xlu2 %v4110_v8, %s4268_s22  ;;  %v1846_v46 = vpop.permute.xlu1 %1845 }
 0x526   :  { %2035 = vrot.lane.b32.xlu1 %v2004_v7, %s4271_s12  ;;  %v6050_v25 = vpop.permute.xlu2 %1847 }
 0x52d   :  { %v6062_v27 = vpop.permute.xlu1 %1851 }
 0x52e   :  { %v6052_v58 = vpop.permute.xlu2 %1853  ;;  %8080 = vst [vmem:[#allocation54_spill] sm:$0xff] %v6062_v27 }
 0x52f   :  { %8078 = vst [vmem:[#allocation57_spill] sm:$0xff] %v6052_v58 }
 0x557   :  { %v6056_v17 = vpop.permute.xlu2 %2007 }
 0x55f   :  { %v6058_v41 = vpop.permute.xlu2 %2013 }
 0x560   :  { %8079 = vst [vmem:[#allocation50_spill] sm:$0xff] %v6058_v41  ;;  %v6111_v41 = vld [vmem:[%s7906_s0 + $0x68] sm:$0x3] }
 0x561   :  { %8082 = vst [vmem:[#allocation58_spill] sm:$0xff] %v6111_v41 }
 0x567   :  { %v2020_v26 = vpop.permute.xlu2 %2019 }
 0x568   :  { %v6064_v60 = vadd.f32 %v2020_v26, %v1878_v52 }
 0x56f   :  { %v6068_v9 = vpop.permute.xlu0 %2009  ;;  %v2026_v57 = vpop.permute.xlu2 %2025 }
 0x570   :  { %v6070_v6 = vadd.f32 %v2026_v57, %v1881_v36  ;;  %v6072_v22 = vpop.permute.xlu1 %2005 }
 0x571   :  { %8081 = vst [vmem:[#allocation59_spill] sm:$0xff] %v6072_v22 }
 0x577   :  { %v2016_v8 = vpop.permute.xlu0 %2015  ;;  %v6075_v10 = vpop.permute.xlu2 %2031 }
 0x578   :  { %v6077_v42 = vadd.f32 %v2016_v8, %v1876_v20  ;;  %v6079_v11 = vpop.permute.xlu1 %2011 }
 0x57f   :  { %v6082_v7 = vpop.permute.xlu0 %2021  ;;  %v6084_v4 = vpop.permute.xlu2 %2218 }
 0x580   :  { %v2018_v43 = vpop.permute.xlu1 %2017  ;;  %v2225_v52 = vmul.f32 %v5882_v2, %v6084_v4  ;;  %v2226_v62 = vmul.f32 %v5889_v24, %v6084_v4  ;;  %v2221_v33 = vmul.f32 %v5905_v1, %v6084_v4  ;;  %v2222_v36 = vmul.f32 %v5912_v59, %v6084_v4 }
 0x581   :  { %v6092_v26 = vadd.f32 %v2018_v43, %v1877_v19  ;;  %v2223_v28 = vmul.f32 %v5896_v55, %v6084_v4  ;;  %v2224_v57 = vmul.f32 %v6101_v32, %v6084_v4  ;;  %v2231_v58 = vmul.f32 %v5919_v5, %v6084_v4 }
 0x582   :  { %v2291_v20 = vrot.slane %v2225_v52, 2  ;;  %v2292_v8 = vrot.slane %v2226_v62, 2  ;;  %v2285_v27 = vrot.slane %v2221_v33, 2  ;;  %v2286_v54 = vrot.slane %v2222_v36, 2  ;;  %v6118_v52 = vld [vmem:[%s7906_s0 + $0x40] sm:$0xff] }
 0x583   :  { %v2288_v19 = vrot.slane %v2223_v28, 2  ;;  %v2289_v43 = vrot.slane %v2224_v57, 2  ;;  %v2232_v13 = vmul.f32 %v6111_v41, %v6084_v4  ;;  %v2227_v62 = vmul.f32 %v6118_v52, %v6084_v4 }
 0x584   :  { %v2293_v37 = vsel %vm876_vm1, %v2291_v20, %v2292_v8  ;;  %v2228_v33 = vmul.f32 %v5683_v14, %v6084_v4  ;;  %v2287_v36 = vsel %vm876_vm1, %v2285_v27, %v2286_v54  ;;  %v2229_v57 = vmul.f32 %v5930_v61, %v6084_v4  ;;  %v6135_v8 = vld [vmem:[%s7906_s0 + $0x58] sm:$0x3] }
 0x585   :  { %2337 = vrot.lane.b32.xlu2 %v2293_v37, %s4270_s7  ;;  %v2290_v28 = vsel %vm876_vm1, %v2288_v19, %v2289_v43  ;;  %v1882_v20 = vadd.f32 %v1846_v46, %v5689_v50  ;;  %2333 = vrot.lane.b32.xlu0 %v2287_v36, %s4270_s7  ;;  %8083 = vst [vmem:[#allocation25_spill] sm:$0xff] %v6135_v8  ;;  %v2300_v19 = vrot.slane %v2231_v58, 2  ;;  %v2301_v50 = vrot.slane %v2232_v13, 2 }
 0x586   :  { %2335 = vrot.lane.b32.xlu1 %v2290_v28, %s4270_s7  ;;  %v2230_v37 = vmul.f32 %v6135_v8, %v6084_v4  ;;  %v1880_v54 = vadd.f32 %v1842_v31, %v5740_v30  ;;  %v2294_v46 = vrot.slane %v2227_v62, 2  ;;  %v2295_v36 = vrot.slane %v2228_v33, 2  ;;  %v6151_v30 = vld [vmem:[%s7906_s0 + $0xb8] sm:$0x3]  ;;  %v6169_v33 = vld [vmem:[%s7906_s0 + $0x80] sm:$0xff] }
 0x587   :  { %v2028_v27 = vpop.permute.xlu0 %2027  ;;  %v2297_v28 = vrot.slane %v2229_v57, 2  ;;  %v2237_v59 = vmul.f32 %v5948_v40, %v6084_v4  ;;  %v2302_v1 = vsel %vm876_vm1, %v2300_v19, %v2301_v50  ;;  %8084 = vst [vmem:[#allocation61_spill] sm:$0xff] %v6151_v30  ;;  %v2238_v13 = vmul.f32 %v6151_v30, %v6084_v4 }
 0x588   :  { %v6140_v43 = vadd.f32 %v2028_v27, %v1882_v20  ;;  %v2024_v22 = vpop.permute.xlu1 %2023  ;;  %v2298_v61 = vrot.slane %v2230_v37, 2  ;;  %v2296_v8 = vsel %vm876_vm1, %v2294_v46, %v2295_v36  ;;  %v2233_v31 = vmul.f32 %v5965_v16, %v6084_v4 }
 0x589   :  { %v6142_v3 = vadd.f32 %v2024_v22, %v1880_v54  ;;  %v6162_v22 = vld [vmem:[%s7906_s0 + $0x78] sm:$0x3]  ;;  %v2235_v57 = vmul.f32 %v6169_v33, %v6084_v4  ;;  %v2310_v20 = vrot.slane %v2238_v13, 2  ;;  %v2243_v50 = vmul.f32 %v5512_v29, %v6084_v4 }
 0x58a   :  { %v2299_v58 = vsel %vm876_vm1, %v2297_v28, %v2298_v61  ;;  %v2234_v62 = vmul.f32 %v6162_v22, %v6084_v4  ;;  %v2309_v61 = vrot.slane %v2237_v59, 2  ;;  %v2303_v37 = vrot.slane %v2233_v31, 2  ;;  %v6187_v59 = vld [vmem:[%s7906_s0 + $0xc8] sm:$0x3]  ;;  %v6199_v31 = vld [vmem:[%s7906_s0 + $0xd8] sm:$0x3] }
 0x58b   :  { %v2306_v27 = vrot.slane %v2235_v57, 2  ;;  %v2244_v36 = vmul.f32 %v5663_v0, %v6084_v4  ;;  %v2241_v13 = vmul.f32 %v5981_v51, %v6084_v4 }
 0x58c   :  { %v2304_v54 = vrot.slane %v2234_v62, 2  ;;  %v2311_v46 = vsel %vm876_vm1, %v2309_v61, %v2310_v20  ;;  %v2318_v62 = vrot.slane %v2243_v50, 2 }
 0x58d   :  { %2343 = vrot.lane.b32.xlu2 %v2302_v1, %s4270_s7  ;;  %v2236_v1 = vmul.f32 %v6084_v4, %v5694_v48  ;;  %2339 = vrot.lane.b32.xlu0 %v2296_v8, %s4270_s7  ;;  %v2239_v48 = vmul.f32 %v5993_v63, %v6084_v4  ;;  %v2240_v8 = vmul.f32 %v6187_v59, %v6084_v4  ;;  %v2319_v57 = vrot.slane %v2244_v36, 2 }
 0x58e   :  { %2341 = vrot.lane.b32.xlu1 %v2299_v58, %s4270_s7  ;;  %v2305_v29 = vsel %vm876_vm1, %v2303_v37, %v2304_v54  ;;  %v2242_v58 = vmul.f32 %v6199_v31, %v6084_v4  ;;  %v2315_v20 = vrot.slane %v2241_v13, 2  ;;  %v2249_v54 = vmul.f32 %v6004_v39, %v6084_v4 }
 0x58f   :  { %v2307_v19 = vrot.slane %v2236_v1, 2  ;;  %v2312_v1 = vrot.slane %v2239_v48, 2  ;;  %v2313_v61 = vrot.slane %v2240_v8, 2  ;;  %v2245_v36 = vmul.f32 %v5560_v45, %v6084_v4 }
 0x590   :  { %v2316_v37 = vrot.slane %v2242_v58, 2  ;;  %v2246_v8 = vmul.f32 %v5839_v44, %v6084_v4  ;;  %v2327_v45 = vrot.slane %v2249_v54, 2 }
 0x591   :  { %v2308_v28 = vsel %vm876_vm1, %v2306_v27, %v2307_v19  ;;  %v2320_v27 = vsel %vm876_vm1, %v2318_v62, %v2319_v57  ;;  %v2314_v19 = vsel %vm876_vm1, %v2312_v1, %v2313_v61  ;;  %v2321_v62 = vrot.slane %v2245_v36, 2 }
 0x592   :  { %v2317_v48 = vsel %vm876_vm1, %v2315_v20, %v2316_v37  ;;  %v2322_v57 = vrot.slane %v2246_v8, 2  ;;  %v4111_v8 = vld [vmem:[%s7907_s1 + $0x11] ss:$0 sm:$0xff] }
 0x594   :  { %v2323_v37 = vsel %vm876_vm1, %v2321_v62, %v2322_v57  ;;  %v6270_v62 = vld [vmem:[%s7907_s1] ss:$0 sm:$0xff] }
 0x595   :  { %2349 = vrot.lane.b32.xlu2 %v2311_v46, %s4270_s7  ;;  %2345 = vrot.lane.b32.xlu0 %v2305_v29, %s4270_s7  ;;  %v6212_v46 = vld [vmem:[%s7906_s0 + $0x118] sm:$0x3]  ;;  %v2247_v29 = vmul.f32 %v6014_v53, %v6084_v4  ;;  %8088 = vst [vmem:[#allocation63_spill] sm:$0xff] %v6270_v62 }
 0x596   :  { %2347 = vrot.lane.b32.xlu1 %v2308_v28, %s4270_s7  ;;  %8085 = vst [vmem:[#allocation60_spill] sm:$0xff] %v6212_v46  ;;  %v2250_v50 = vmul.f32 %v6212_v46, %v6084_v4  ;;  %v6227_v28 = vld [vmem:[%s7906_s0 + $0x108] sm:$0x3] }
 0x597   :  { %v2248_v13 = vmul.f32 %v6227_v28, %v6084_v4  ;;  %v2324_v1 = vrot.slane %v2247_v29, 2 }
 0x598   :  { %v2328_v58 = vrot.slane %v2250_v50, 2  ;;  %v2252_v50 = vmul.f32 %v6084_v4, %v5773_v56  ;;  %v4177_v56 = vld [vmem:[%s7906_s0 + $0xa0] sm:$0xff] }
 0x599   :  { %v2325_v61 = vrot.slane %v2248_v13, 2  ;;  %v71_v57 = vmul.f32 %v6270_v62, %v4177_v56 }
 0x59a   :  { %v2329_v20 = vsel %vm876_vm1, %v2327_v45, %v2328_v58  ;;  %v4179_v45 = vld [vmem:[%s7906_s0 + $0xa8] sm:$0x3] }
 0x59d   :  { %2355 = vrot.lane.b32.xlu2 %v2320_v27, %s4270_s7  ;;  %2351 = vrot.lane.b32.xlu0 %v2314_v19, %s4270_s7  ;;  %v2326_v27 = vsel %vm876_vm1, %v2324_v1, %v2325_v61  ;;  %v6240_v19 = vld [vmem:[%s7906_s0 + $0x120] sm:$0xff] }
 0x59e   :  { %2353 = vrot.lane.b32.xlu1 %v2317_v48, %s4270_s7  ;;  %8086 = vst [vmem:[#allocation65_spill] sm:$0xff] %v6240_v19  ;;  %v2251_v54 = vmul.f32 %v6240_v19, %v6084_v4  ;;  %v2331_v48 = vrot.slane %v2252_v50, 2  ;;  %v6260_v4 = vld [vmem:[%s7907_s1 + $0x3] ss:$0 sm:$0xff] }
 0x59f   :  { %8087 = vst [vmem:[#allocation67_spill] sm:$0xff] %v6260_v4  ;;  %v317_v13 = vmul.f32 %v6260_v4, %v4177_v56  ;;  %v318_v58 = vmul.f32 %v4179_v45, %v6260_v4 }
 0x5a0   :  { %v2330_v36 = vrot.slane %v2251_v54, 2 }
 0x5a1   :  { %v390_v1 = vrot.slane %v317_v13, 1  ;;  %v391_v61 = vrot.slane %v318_v58, 1  ;;  %v8091_v13 = vld [vmem:[#allocation42_spill] sm:$0xff] }
 0x5a2   :  { %v2332_v29 = vsel %vm876_vm1, %v2330_v36, %v2331_v48  ;;  %v6279_v36 = vld [vmem:[%s7907_s1 + $0x6] ss:$0 sm:$0xff] }
 0x5a3   :  { %v392_v50 = vsel %vm365_vm0, %v390_v1, %v391_v61  ;;  %v828_v48 = vmul.f32 %v6279_v36, %v4177_v56  ;;  %v8092_v1 = vld [vmem:[#allocation52_spill] sm:$0xff] }
 0x5a5   :  { %2361 = vrot.lane.b32.xlu2 %v2329_v20, %s4270_s7  ;;  %2357 = vrot.lane.b32.xlu0 %v2323_v37, %s4270_s7  ;;  %v8089_v20 = vld [vmem:[#allocation6_spill] sm:$0xff]  ;;  %v901_v19 = vrot.slane %v828_v48, 2 }
 0x5a6   :  { %2359 = vrot.lane.b32.xlu1 %v2326_v27, %s4270_s7  ;;  %v189_v37 = vadd.f32 %v8089_v20, %v71_v57  ;;  %v8090_v27 = vld [vmem:[#allocation21_spill] sm:$0xff]  ;;  %v6287_v57 = vld [vmem:[%s7907_s1 + $0xf] ss:$0 sm:$0xff] }
 0x5a7   :  { %v2076_v56 = vmul.f32 %v5889_v24, %v6287_v57  ;;  %v8095_v24 = vld [vmem:[#allocation41_spill] sm:$0xff] }
 0x5a8   :  { %v291_v54 = vadd.f32 %v8090_v27, %v189_v37  ;;  %v2075_v37 = vmul.f32 %v5882_v2, %v6287_v57 }
 0x5aa   :  { %v2141_v27 = vrot.slane %v2075_v37, 2 }
 0x5ad   :  { %2363 = vrot.lane.b32.xlu0 %v2332_v29, %s4270_s7  ;;  %v438_v29 = vadd.f32 %v392_v50, %v291_v54  ;;  %v2142_v54 = vrot.slane %v2076_v56, 2  ;;  %v8093_v50 = vld [vmem:[#allocation56_spill] sm:$0xff] }
 0x5ae   :  { %2400 = vrot.lane.b32.xlu1 %v4111_v8, %s4269_s25  ;;  %v829_v8 = vmul.f32 %v6279_v36, %v4179_v45 }
 0x5af   :  { %v620_v58 = vadd.f32 %v8091_v13, %v438_v29  ;;  %v8094_v29 = vld [vmem:[#allocation14_spill] sm:$0xff] }
 0x5b0   :  { %v902_v46 = vrot.slane %v829_v8, 2  ;;  %v1873_v8 = vadd.f32 %v6048_v38, %v5642_v12  ;;  %v2143_v12 = vsel %vm876_vm1, %v2141_v27, %v2142_v54  ;;  %v2081_v38 = vmul.f32 %v5919_v5, %v6287_v57 }
 0x5b1   :  { %v802_v61 = vadd.f32 %v8092_v1, %v620_v58  ;;  %v1577_v58 = vmul.f32 %v5948_v40, %v5626_v23 }
 0x5b2   :  { %v903_v20 = vsel %vm876_vm1, %v901_v19, %v902_v46  ;;  %v6302_v46 = vld [vmem:[%s7907_s1 + $0x9] ss:$0 sm:$0xff]  ;;  %v2055_v1 = vadd.f32 %v6068_v9, %v1873_v8 }
 0x5b3   :  { %v949_v45 = vadd.f32 %v903_v20, %v802_v61  ;;  %v1331_v19 = vmul.f32 %v6302_v46, %v5948_v40  ;;  %v1578_v61 = vmul.f32 %v6151_v30, %v5626_v23  ;;  %v2082_v20 = vmul.f32 %v6111_v41, %v6287_v57  ;;  %v8097_v23 = vld [vmem:[#allocation7_spill] sm:$0xff] }
 0x5b4   :  { %v2201_v56 = vadd.f32 %v2143_v12, %v2055_v1  ;;  %v2087_v41 = vmul.f32 %v5948_v40, %v6287_v57 }
 0x5b5   :  { %v1131_v48 = vadd.f32 %v8093_v50, %v949_v45  ;;  %v1649_v45 = vrot.slane %v1577_v58, 1  ;;  %v1650_v50 = vrot.slane %v1578_v61, 1  ;;  %v2151_v39 = vrot.slane %v2082_v20, 2  ;;  %v6326_v58 = vpop.permute.xlu1 %2029 }
 0x5b6   :  { %v2159_v61 = vrot.slane %v2087_v41, 2  ;;  %v326_v20 = vmul.f32 %v6260_v4, %v5663_v0  ;;  %v6344_v41 = vld [vmem:[%s7906_s0 + $0xf0] sm:$0xff] }
 0x5b7   :  { %v1313_v13 = vadd.f32 %v8094_v29, %v1131_v48  ;;  %v2150_v29 = vrot.slane %v2081_v38, 2  ;;  %v1651_v27 = vsel %vm365_vm0, %v1649_v45, %v1650_v50  ;;  %v6332_v38 = vld [vmem:[%s7906_s0 + $0xe0] sm:$0xff]  ;;  %v328_v45 = vmul.f32 %v6260_v4, %v5839_v44 }
 0x5b9   :  { %v1347_v37 = vadd.f32 %v1331_v19, %v1313_v13  ;;  %v2152_v54 = vsel %vm876_vm1, %v2150_v29, %v2151_v39  ;;  %v2088_v13 = vmul.f32 %v6151_v30, %v6287_v57  ;;  %v325_v39 = vmul.f32 %v6332_v38, %v6260_v4 }
 0x5ba   :  { %v2204_v1 = vadd.f32 %v2152_v54, %v6077_v42  ;;  %v76_v42 = vmul.f32 %v6344_v41, %v6270_v62  ;;  %v2093_v29 = vmul.f32 %v6332_v38, %v6287_v57  ;;  %v2073_v54 = vmul.f32 %v5896_v55, %v6287_v57 }
 0x5bb   :  { %v1449_v9 = vadd.f32 %v8095_v24, %v1347_v37  ;;  %v2160_v12 = vrot.slane %v2088_v13, 2  ;;  %v2074_v13 = vmul.f32 %v6101_v32, %v6287_v57 }
 0x5bc   :  { %v2138_v40 = vrot.slane %v2073_v54, 2 }
 0x5bd   :  { %v1551_v2 = vadd.f32 %v8097_v23, %v1449_v9  ;;  %v2094_v9 = vmul.f32 %v5663_v0, %v6287_v57  ;;  %v402_v23 = vrot.slane %v325_v39, 1  ;;  %v6367_v39 = vpop.permute.xlu0 %2033  ;;  %v2139_v5 = vrot.slane %v2074_v13, 2 }
 0x5be   :  { %8101 = vst [vmem:[#allocation21_spill] sm:$0xff] %v6367_v39 }
 0x5bf   :  { %v1697_v19 = vadd.f32 %v1651_v27, %v1551_v2  ;;  %v403_v27 = vrot.slane %v326_v20, 1  ;;  %v6369_v20 = vpop.permute.xlu1 %2035 }
 0x5c0   :  { %8102 = vst [vmem:[#allocation42_spill] sm:$0xff] %v6369_v20 }
 0x5c1   :  { %v1879_v2 = vadd.f32 %v6054_v47, %v1697_v19  ;;  %v75_v47 = vmul.f32 %v6332_v38, %v6270_v62  ;;  %v406_v19 = vrot.slane %v328_v45, 1  ;;  %v2169_v62 = vrot.slane %v2094_v9, 2 }
 0x5c3   :  { %v2061_v50 = vadd.f32 %v6082_v7, %v1879_v2 }
 0x5df   :  { %v2338_v48 = vpop.permute.xlu2 %2337 }
 0x5e0   :  { %v6317_v8 = vadd.f32 %v2338_v48, %v2201_v56  ;;  %v327_v56 = vmul.f32 %v6344_v41, %v6260_v4  ;;  %v2161_v48 = vsel %vm876_vm1, %v2159_v61, %v2160_v12  ;;  %v8100_v61 = vld [vmem:[#allocation28_spill] sm:$0xff]  ;;  %v404_v4 = vsel %vm365_vm0, %v402_v23, %v403_v27 }
 0x5e1   :  { %v193_v12 = vadd.f32 %v8100_v61, %v75_v47  ;;  %v8106_v47 = vld [vmem:[#allocation29_spill] sm:$0xff]  ;;  %v836_v23 = vmul.f32 %v6332_v38, %v6279_v36  ;;  %v839_v27 = vmul.f32 %v6279_v36, %v5839_v44 }
 0x5e2   :  { %8096 = vst [vmem:[#allocation10_spill] sm:$0xff] %v6317_v8  ;;  %v405_v7 = vrot.slane %v327_v56, 1  ;;  %v2168_v8 = vrot.slane %v2093_v29, 2  ;;  %v8104_v56 = vld [vmem:[#allocation11_spill] sm:$0xff]  ;;  %v1872_v29 = vadd.f32 %v5867_v15, %v8106_v47  ;;  %v2077_v15 = vmul.f32 %v6118_v52, %v6287_v57 }
 0x5e3   :  { %v295_v45 = vadd.f32 %v8104_v56, %v193_v12  ;;  %v913_v61 = vrot.slane %v836_v23, 2  ;;  %v917_v12 = vrot.slane %v839_v27, 2  ;;  %v8108_v47 = vld [vmem:[#allocation19_spill] sm:$0xff] }
 0x5e4   :  { %v407_v9 = vsel %vm365_vm0, %v405_v7, %v406_v19  ;;  %v2054_v54 = vadd.f32 %v6056_v17, %v1872_v29  ;;  %v2170_v13 = vsel %vm876_vm1, %v2168_v8, %v2169_v62  ;;  %v2078_v7 = vmul.f32 %v5683_v14, %v6287_v57 }
 0x5e5   :  { %v442_v19 = vadd.f32 %v404_v4, %v295_v45  ;;  %v2210_v56 = vadd.f32 %v2170_v13, %v6140_v43  ;;  %v2144_v14 = vrot.slane %v2077_v15, 2  ;;  %v8110_v45 = vld [vmem:[#allocation37_spill] sm:$0xff]  ;;  %v1874_v43 = vadd.f32 %v6046_v35, %v5712_v34  ;;  %v6419_v34 = vld [vmem:[%s7906_s0 + $0x88] sm:$0x3] }
 0x5e6   :  { %v2145_v4 = vrot.slane %v2078_v7, 2  ;;  %v2085_v13 = vmul.f32 %v6169_v33, %v6287_v57  ;;  %v2083_v15 = vmul.f32 %v5965_v16, %v6287_v57  ;;  %v2084_v7 = vmul.f32 %v6162_v22, %v6287_v57 }
 0x5e7   :  { %v2344_v24 = vpop.permute.xlu2 %2343  ;;  %v2086_v35 = vmul.f32 %v6419_v34, %v6287_v57 }
 0x5e8   :  { %v6339_v37 = vadd.f32 %v2344_v24, %v2204_v1  ;;  %v2207_v1 = vadd.f32 %v2161_v48, %v2061_v50  ;;  %v8099_v24 = vld [vmem:[#allocation17_spill] sm:$0xff]  ;;  %v8105_v50 = vld [vmem:[#allocation39_spill] sm:$0xff] }
 0x5e9   :  { %v194_v2 = vadd.f32 %v8099_v24, %v76_v42  ;;  %v838_v42 = vmul.f32 %v6344_v41, %v6279_v36 }
 0x5ea   :  { %8098 = vst [vmem:[#allocation6_spill] sm:$0xff] %v6339_v37 }
 0x5eb   :  { %v296_v48 = vadd.f32 %v8105_v50, %v194_v2  ;;  %v916_v2 = vrot.slane %v838_v42, 2  ;;  %v8107_v50 = vld [vmem:[#allocation27_spill] sm:$0xff]  ;;  %v8111_v42 = vld [vmem:[#allocation46_spill] sm:$0xff] }
 0x5ec   :  { %v624_v17 = vadd.f32 %v8107_v50, %v442_v19  ;;  %v8113_v19 = vld [vmem:[#allocation66_spill] sm:$0xff] }
 0x5ed   :  { %v443_v24 = vadd.f32 %v407_v9, %v296_v48  ;;  %v918_v27 = vsel %vm876_vm1, %v916_v2, %v917_v12  ;;  %v8114_v2 = vld [vmem:[#allocation51_spill] sm:$0xff] }
 0x5ee   :  { %v806_v9 = vadd.f32 %v8111_v42, %v624_v17  ;;  %v2153_v17 = vrot.slane %v2083_v15, 2 }
 0x5ef   :  { %v2350_v37 = vpop.permute.xlu2 %2349  ;;  %v625_v62 = vadd.f32 %v8108_v47, %v443_v24  ;;  %v2154_v47 = vrot.slane %v2084_v7, 2 }
 0x5f0   :  { %v6371_v30 = vadd.f32 %v2350_v37, %v2207_v1  ;;  %v837_v37 = vmul.f32 %v6279_v36, %v5663_v0  ;;  %v2140_v1 = vsel %vm876_vm1, %v2138_v40, %v2139_v5 }
 0x5f1   :  { %v2200_v5 = vadd.f32 %v2140_v1, %v2054_v54  ;;  %v807_v48 = vadd.f32 %v8110_v45, %v625_v62  ;;  %v2056_v54 = vadd.f32 %v6079_v11, %v1874_v43  ;;  %v2146_v1 = vsel %vm876_vm1, %v2144_v14, %v2145_v4  ;;  %v8117_v4 = vld [vmem:[#allocation26_spill] sm:$0xff] }
 0x5f2   :  { %8103 = vst [vmem:[#allocation52_spill] sm:$0xff] %v6371_v30  ;;  %v914_v0 = vrot.slane %v837_v37, 2  ;;  %v2156_v62 = vrot.slane %v2085_v13, 2  ;;  %v2091_v13 = vmul.f32 %v5981_v51, %v6287_v57  ;;  %v2155_v15 = vsel %vm876_vm1, %v2153_v17, %v2154_v47  ;;  %v8118_v30 = vld [vmem:[#allocation30_spill] sm:$0xff] }
 0x5f3   :  { %v2202_v12 = vadd.f32 %v2146_v1, %v2056_v54  ;;  %v2092_v1 = vmul.f32 %v6199_v31, %v6287_v57 }
 0x5f4   :  { %v915_v37 = vsel %vm876_vm1, %v913_v61, %v914_v0  ;;  %v1335_v0 = vmul.f32 %v6344_v41, %v6302_v46 }
 0x5f5   :  { %v953_v11 = vadd.f32 %v915_v37, %v806_v9  ;;  %v6438_v9 = vld [vmem:[%s7907_s1 + $0xc] ss:$0 sm:$0xff]  ;;  %v2166_v17 = vrot.slane %v2092_v1, 2 }
 0x5f6   :  { %v1585_v43 = vmul.f32 %v6438_v9, %v6344_v41  ;;  %v1586_v37 = vmul.f32 %v6438_v9, %v5839_v44  ;;  %v1588_v54 = vmul.f32 %v6438_v9, %v6227_v28 }
 0x5f7   :  { %v2356_v8 = vpop.permute.xlu2 %2355  ;;  %v6398_v29 = vpop.permute.xlu0 %2333  ;;  %v1135_v24 = vadd.f32 %v8113_v19, %v953_v11  ;;  %v2090_v11 = vmul.f32 %v6187_v59, %v6287_v57 }
 0x5f8   :  { %v6396_v40 = vadd.f32 %v2356_v8, %v2210_v56  ;;  %v2336_v39 = vpop.permute.xlu1 %2335  ;;  %v2157_v8 = vrot.slane %v2086_v35, 2  ;;  %v2089_v35 = vmul.f32 %v5993_v63, %v6287_v57 }
 0x5f9   :  { %v6404_v23 = vadd.f32 %v2336_v39, %v2200_v5  ;;  %v954_v39 = vadd.f32 %v918_v27, %v807_v48  ;;  %v8116_v5 = vld [vmem:[#allocation40_spill] sm:$0xff]  ;;  %v1336_v48 = vmul.f32 %v6302_v46, %v6014_v53  ;;  %v1587_v27 = vmul.f32 %v6438_v9, %v6014_v53 }
 0x5fa   :  { %8109 = vst [vmem:[#allocation56_spill] sm:$0xff] %v6396_v40  ;;  %v1317_v14 = vadd.f32 %v8116_v5, %v1135_v24  ;;  %v2158_v7 = vsel %vm876_vm1, %v2156_v62, %v2157_v8  ;;  %v1661_v24 = vrot.slane %v1585_v43, 1  ;;  %v2162_v8 = vrot.slane %v2089_v35, 2 }
 0x5fb   :  { %8112 = vst [vmem:[#allocation14_spill] sm:$0xff] %v6404_v23  ;;  %v1136_v61 = vadd.f32 %v8114_v2, %v954_v39  ;;  %v1662_v2 = vrot.slane %v1586_v37, 1  ;;  %v2206_v5 = vadd.f32 %v2158_v7, %v6064_v60  ;;  %v2163_v40 = vrot.slane %v2090_v11, 2 }
 0x5fc   :  { %v1351_v19 = vadd.f32 %v1335_v0, %v1317_v14  ;;  %v2097_v37 = vmul.f32 %v6014_v53, %v6287_v57 }
 0x5fd   :  { %v1318_v45 = vadd.f32 %v8117_v4, %v1136_v61  ;;  %v1664_v61 = vrot.slane %v1587_v27, 1  ;;  %v2165_v4 = vrot.slane %v2091_v13, 2  ;;  %v1663_v14 = vsel %vm365_vm0, %v1661_v24, %v1662_v2 }
 0x5fe   :  { %v2096_v27 = vmul.f32 %v5839_v44, %v6287_v57 }
 0x5ff   :  { %v2340_v56 = vpop.permute.xlu0 %2339  ;;  %v1352_v39 = vadd.f32 %v1336_v48, %v1318_v45  ;;  %v2167_v43 = vsel %vm876_vm1, %v2165_v4, %v2166_v17  ;;  %v8120_v17 = vld [vmem:[#allocation47_spill] sm:$0xff] }
 0x600   :  { %v6427_v50 = vpop.permute.xlu1 %2341  ;;  %v6433_v42 = vadd.f32 %v2340_v56, %v2202_v12  ;;  %v1665_v12 = vrot.slane %v1588_v54, 1  ;;  %v2205_v56 = vadd.f32 %v2155_v15, %v6092_v26  ;;  %v2098_v54 = vmul.f32 %v6227_v28, %v6287_v57 }
 0x601   :  { %8115 = vst [vmem:[#allocation41_spill] sm:$0xff] %v6427_v50  ;;  %v1454_v20 = vadd.f32 %v8118_v30, %v1352_v39  ;;  %v8119_v50 = vld [vmem:[#allocation13_spill] sm:$0xff]  ;;  %v2164_v30 = vsel %vm876_vm1, %v2162_v8, %v2163_v40  ;;  %v2172_v7 = vrot.slane %v2096_v27, 2  ;;  %v2174_v40 = vrot.slane %v2097_v37, 2 }
 0x602   :  { %v1453_v23 = vadd.f32 %v8119_v50, %v1351_v19  ;;  %v1666_v26 = vsel %vm365_vm0, %v1664_v61, %v1665_v12  ;;  %v2095_v50 = vmul.f32 %v6344_v41, %v6287_v57  ;;  %v2175_v35 = vrot.slane %v2098_v54, 2 }
 0x603   :  { %v1556_v60 = vadd.f32 %v5742_v18, %v1454_v20  ;;  %v2209_v20 = vadd.f32 %v2167_v43, %v6070_v6 }
 0x604   :  { %v1555_v48 = vadd.f32 %v5758_v21, %v1453_v23  ;;  %v2208_v21 = vadd.f32 %v2164_v30, %v6142_v3  ;;  %v2171_v15 = vrot.slane %v2095_v50, 2  ;;  %v2176_v2 = vsel %vm876_vm1, %v2174_v40, %v2175_v35  ;;  %v8124_v50 = vld [vmem:[#allocation49_spill] sm:$0xff] }
 0x605   :  { %v1702_v18 = vadd.f32 %v1666_v26, %v1556_v60  ;;  %v8123_v60 = vld [vmem:[#allocation18_spill] sm:$0xff] }
 0x606   :  { %v1701_v13 = vadd.f32 %v1663_v14, %v1555_v48  ;;  %v2173_v6 = vsel %vm876_vm1, %v2171_v15, %v2172_v7  ;;  %v8122_v14 = vld [vmem:[#allocation43_spill] sm:$0xff] }
 0x607   :  { %v2346_v47 = vpop.permute.xlu0 %2345  ;;  %v1884_v39 = vadd.f32 %v5875_v49, %v1702_v18 }
 0x608   :  { %v2348_v62 = vpop.permute.xlu1 %2347  ;;  %v6462_v45 = vadd.f32 %v2346_v47, %v2205_v56  ;;  %v1883_v11 = vadd.f32 %v6050_v25, %v1701_v13 }
 0x609   :  { %v6464_v0 = vadd.f32 %v2348_v62, %v2206_v5  ;;  %v2066_v24 = vadd.f32 %v6075_v10, %v1884_v39  ;;  %v8121_v10 = vld [vmem:[#allocation8_spill] sm:$0xff] }
 0x60a   :  { %v2065_v3 = vadd.f32 %v6326_v58, %v1883_v11  ;;  %v6527_v11 = vld [vmem:[%s7906_s0 + $0x48] sm:$0x3] }
 0x60b   :  { %v2212_v12 = vadd.f32 %v2176_v2, %v2066_v24 }
 0x60c   :  { %v2211_v61 = vadd.f32 %v2173_v6, %v2065_v3 }
 0x60f   :  { %v2352_v23 = vpop.permute.xlu0 %2351 }
 0x610   :  { %v2354_v1 = vpop.permute.xlu1 %2353  ;;  %v6484_v44 = vadd.f32 %v2352_v23, %v2208_v21 }
 0x611   :  { %v6486_v19 = vadd.f32 %v2354_v1, %v2209_v20  ;;  %v8126_v20 = vld [vmem:[#allocation23_spill] sm:$0xff]  ;;  %v8127_v1 = vld [vmem:[#allocation25_spill] sm:$0xff] }
 0x617   :  { %v2358_v56 = vpop.permute.xlu0 %2357 }
 0x618   :  { %v2360_v5 = vpop.permute.xlu1 %2359  ;;  %v6492_v4 = vadd.f32 %v2358_v56, %v2211_v61 }
 0x619   :  { %v6494_v25 = vadd.f32 %v2360_v5, %v2212_v12 }
 0x620   :  { %v6496_v49 = vpop.permute.xlu1 %2400 }
 0x621   :  { %v2407_v47 = vmul.f32 %v8120_v17, %v6496_v49  ;;  %v2408_v58 = vmul.f32 %v8121_v10, %v6496_v49  ;;  %v2405_v62 = vmul.f32 %v5896_v55, %v6496_v49  ;;  %v2406_v8 = vmul.f32 %v6101_v32, %v6496_v49  ;;  %v8125_v55 = vld [vmem:[#allocation58_spill] sm:$0xff]  ;;  %v8128_v17 = vld [vmem:[#allocation35_spill] sm:$0xff]  ;;  %v8129_v10 = vld [vmem:[#allocation61_spill] sm:$0xff] }
 0x622   :  { %v2403_v26 = vmul.f32 %v8122_v14, %v6496_v49  ;;  %v2404_v48 = vmul.f32 %v8123_v60, %v6496_v49  ;;  %v2413_v27 = vmul.f32 %v8124_v50, %v6496_v49  ;;  %v2414_v21 = vmul.f32 %v8125_v55, %v6496_v49 }
 0x623   :  { %v2473_v43 = vrot.slane %v2407_v47, 2  ;;  %v2474_v37 = vrot.slane %v2408_v58, 2  ;;  %v2470_v30 = vrot.slane %v2405_v62, 2  ;;  %v2471_v54 = vrot.slane %v2406_v8, 2 }
 0x624   :  { %v2467_v13 = vrot.slane %v2403_v26, 2  ;;  %v2468_v18 = vrot.slane %v2404_v48, 2  ;;  %v2411_v23 = vmul.f32 %v8126_v20, %v6496_v49  ;;  %v2412_v15 = vmul.f32 %v8127_v1, %v6496_v49 }
 0x625   :  { %v2475_v32 = vsel %vm876_vm1, %v2473_v43, %v2474_v37  ;;  %v2472_v7 = vsel %vm876_vm1, %v2470_v30, %v2471_v54  ;;  %v2409_v35 = vmul.f32 %v6118_v52, %v6496_v49  ;;  %v2410_v39 = vmul.f32 %v6527_v11, %v6496_v49 }
 0x626   :  { %2519 = vrot.lane.b32.xlu1 %v2475_v32, %s4271_s12  ;;  %v2469_v40 = vsel %vm876_vm1, %v2467_v13, %v2468_v18  ;;  %2517 = vrot.lane.b32.xlu0 %v2472_v7, %s4271_s12  ;;  %v2482_v24 = vrot.slane %v2413_v27, 2  ;;  %v2483_v3 = vrot.slane %v2414_v21, 2  ;;  %v2479_v6 = vrot.slane %v2411_v23, 2 }
 0x627   :  { %2515 = vrot.lane.b32.xlu2 %v2469_v40, %s4271_s12  ;;  %v2480_v2 = vrot.slane %v2412_v15, 2  ;;  %v2476_v61 = vrot.slane %v2409_v35, 2  ;;  %v2477_v12 = vrot.slane %v2410_v39, 2  ;;  %v2419_v47 = vmul.f32 %v8128_v17, %v6496_v49 }
 0x628   :  { %v2484_v56 = vsel %vm876_vm1, %v2482_v24, %v2483_v3  ;;  %v2420_v58 = vmul.f32 %v8129_v10, %v6496_v49  ;;  %v2417_v62 = vmul.f32 %v6169_v33, %v6496_v49  ;;  %v2418_v14 = vmul.f32 %v6419_v34, %v6496_v49  ;;  %v8130_v24 = vld [vmem:[#allocation53_spill] sm:$0xff]  ;;  %v8131_v3 = vld [vmem:[#allocation60_spill] sm:$0xff] }
 0x629   :  { %v2481_v5 = vsel %vm876_vm1, %v2479_v6, %v2480_v2  ;;  %v2478_v8 = vsel %vm876_vm1, %v2476_v61, %v2477_v12  ;;  %v2415_v26 = vmul.f32 %v5965_v16, %v6496_v49  ;;  %v2416_v60 = vmul.f32 %v6162_v22, %v6496_v49  ;;  %v6556_v16 = vld [vmem:[%s7906_s0 + $0xe8] sm:$0x3] }
 0x62a   :  { %v2491_v48 = vrot.slane %v2419_v47, 2  ;;  %v2492_v43 = vrot.slane %v2420_v58, 2  ;;  %v2488_v37 = vrot.slane %v2417_v62, 2  ;;  %v2489_v30 = vrot.slane %v2418_v14, 2 }
 0x62b   :  { %v2485_v50 = vrot.slane %v2415_v26, 2  ;;  %v2486_v27 = vrot.slane %v2416_v60, 2  ;;  %v2425_v54 = vmul.f32 %v6332_v38, %v6496_v49  ;;  %v2426_v22 = vmul.f32 %v6556_v16, %v6496_v49  ;;  %v8132_v26 = vld [vmem:[#allocation65_spill] sm:$0xff] }
 0x62c   :  { %v2493_v34 = vsel %vm876_vm1, %v2491_v48, %v2492_v43  ;;  %v2423_v13 = vmul.f32 %v5981_v51, %v6496_v49  ;;  %v2424_v18 = vmul.f32 %v6199_v31, %v6496_v49  ;;  %v2490_v55 = vsel %vm876_vm1, %v2488_v37, %v2489_v30  ;;  %v6603_v48 = vld [vmem:[%s7906_s0 + $0x128] sm:$0x3] }
 0x62d   :  { %v2487_v21 = vsel %vm876_vm1, %v2485_v50, %v2486_v27  ;;  %v2421_v32 = vmul.f32 %v5993_v63, %v6496_v49  ;;  %v2422_v20 = vmul.f32 %v6187_v59, %v6496_v49  ;;  %v2500_v51 = vrot.slane %v2425_v54, 2  ;;  %v4113_v50 = vld [vmem:[%s7907_s1 + $0x13] ss:$0 sm:$0xff] }
 0x62e   :  { %2525 = vrot.lane.b32.xlu1 %v2484_v56, %s4271_s12  ;;  %2523 = vrot.lane.b32.xlu0 %v2481_v5, %s4271_s12  ;;  %v2501_v23 = vrot.slane %v2426_v22, 2  ;;  %v2497_v15 = vrot.slane %v2423_v13, 2  ;;  %v2498_v31 = vrot.slane %v2424_v18, 2  ;;  %v2431_v63 = vmul.f32 %v8130_v24, %v6496_v49  ;;  %v4189_v56 = vld [vmem:[%s7906_s0 + $0xf8] sm:$0x3]  ;;  %v8133_v54 = vld [vmem:[#allocation67_spill] sm:$0xff] }
 0x62f   :  { %2521 = vrot.lane.b32.xlu2 %v2478_v8, %s4271_s12  ;;  %v2494_v7 = vrot.slane %v2421_v32, 2  ;;  %v2495_v40 = vrot.slane %v2422_v20, 2  ;;  %v2432_v59 = vmul.f32 %v8131_v3, %v6496_v49  ;;  %v2429_v6 = vmul.f32 %v6014_v53, %v6496_v49  ;;  %v8134_v18 = vld [vmem:[#allocation63_spill] sm:$0xff]  ;;  %v8135_v20 = vld [vmem:[#allocation5_spill] sm:$0xff] }
 0x630   :  { %v2502_v35 = vsel %vm876_vm1, %v2500_v51, %v2501_v23  ;;  %v2499_v39 = vsel %vm876_vm1, %v2497_v15, %v2498_v31  ;;  %v2430_v61 = vmul.f32 %v6227_v28, %v6496_v49  ;;  %v2427_v12 = vmul.f32 %v6344_v41, %v6496_v49  ;;  %v8136_v23 = vld [vmem:[#allocation9_spill] sm:$0xff] }
 0x631   :  { %v2496_v2 = vsel %vm876_vm1, %v2494_v7, %v2495_v40  ;;  %v2428_v5 = vmul.f32 %v4189_v56, %v6496_v49  ;;  %v2509_v53 = vrot.slane %v2431_v63, 2  ;;  %v2510_v17 = vrot.slane %v2432_v59, 2  ;;  %v8137_v63 = vld [vmem:[#allocation24_spill] sm:$0xff]  ;;  %v8139_v56 = vld [vmem:[#allocation55_spill] sm:$0xff] }
 0x632   :  { %v2506_v47 = vrot.slane %v2429_v6, 2  ;;  %v2507_v10 = vrot.slane %v2430_v61, 2  ;;  %v2503_v58 = vrot.slane %v2427_v12, 2  ;;  %v2433_v60 = vmul.f32 %v8132_v26, %v6496_v49  ;;  %v8138_v6 = vld [vmem:[#allocation45_spill] sm:$0xff] }
 0x633   :  { %v2504_v62 = vrot.slane %v2428_v5, 2  ;;  %v2511_v28 = vsel %vm876_vm1, %v2509_v53, %v2510_v17  ;;  %v2434_v43 = vmul.f32 %v6603_v48, %v6496_v49  ;;  %v4191_v49 = vld [vmem:[%s7906_s0 + $0x8] sm:$0x3]  ;;  %v8140_v53 = vld [vmem:[#allocation64_spill] sm:$0xff] }
 0x634   :  { %v2508_v8 = vsel %vm876_vm1, %v2506_v47, %v2507_v10  ;;  %v2512_v37 = vrot.slane %v2433_v60, 2  ;;  %v302_v22 = vmul.f32 %v4191_v49, %v8133_v54  ;;  %v813_v40 = vmul.f32 %v4191_v49, %v6279_v36  ;;  %v4193_v47 = vld [vmem:[%s7906_s0 + $0x10] sm:$0xff] }
 0x635   :  { %v2505_v14 = vsel %vm876_vm1, %v2503_v58, %v2504_v62  ;;  %v2513_v30 = vrot.slane %v2434_v43, 2  ;;  %v1323_v10 = vmul.f32 %v4193_v47, %v6302_v46  ;;  %v1561_v58 = vmul.f32 %v4193_v47, %v6438_v9  ;;  %v4194_v62 = vld [vmem:[%s7906_s0 + $0x18] sm:$0x3] }
 0x636   :  { %2531 = vrot.lane.b32.xlu1 %v2493_v34, %s4271_s12  ;;  %2529 = vrot.lane.b32.xlu0 %v2490_v55, %s4271_s12  ;;  %v4192_v34 = vld [vmem:[%s7906_s0] sm:$0xff]  ;;  %v878_v24 = vrot.slane %v813_v40, 2  ;;  %v8141_v43 = vld [vmem:[#allocation36_spill] sm:$0xff]  ;;  %v310_v49 = vmul.f32 %v6527_v11, %v8133_v54 }
 0x637   :  { %2527 = vrot.lane.b32.xlu2 %v2487_v21, %s4271_s12  ;;  %v2514_v27 = vsel %vm876_vm1, %v2512_v37, %v2513_v30  ;;  %v301_v13 = vmul.f32 %v4192_v34, %v8133_v54  ;;  %v63_v55 = vmul.f32 %v4192_v34, %v8134_v18  ;;  %v367_v21 = vrot.slane %v302_v22, 1 }
 0x638   :  { %v812_v7 = vmul.f32 %v4192_v34, %v6279_v36  ;;  %v309_v30 = vmul.f32 %v8133_v54, %v6118_v52  ;;  %v2071_v34 = vmul.f32 %v4193_v47, %v6287_v57  ;;  %v8145_v54 = vld [vmem:[#allocation33_spill] sm:$0xff] }
 0x639   :  { %v366_v32 = vrot.slane %v301_v13, 1  ;;  %v181_v51 = vadd.f32 %v8135_v20, %v63_v55  ;;  %v2072_v13 = vmul.f32 %v4194_v62, %v6287_v57  ;;  %v67_v55 = vmul.f32 %v8134_v18, %v6118_v52 }
 0x63a   :  { %v379_v20 = vrot.slane %v310_v49, 1  ;;  %v820_v18 = vmul.f32 %v6279_v36, %v6118_v52 }
 0x63b   :  { %v283_v15 = vadd.f32 %v8136_v23, %v181_v51  ;;  %v368_v31 = vsel %vm365_vm0, %v366_v32, %v367_v21  ;;  %v378_v32 = vrot.slane %v309_v30, 1  ;;  %v2135_v51 = vrot.slane %v2071_v34, 2  ;;  %v8150_v30 = vld [vmem:[#allocation20_spill] sm:$0xff] }
 0x63c   :  { %v2136_v23 = vrot.slane %v2072_v13, 2  ;;  %v1570_v34 = vmul.f32 %v6438_v9, %v8127_v1 }
 0x63e   :  { %2537 = vrot.lane.b32.xlu1 %v2502_v35, %s4271_s12  ;;  %2535 = vrot.lane.b32.xlu0 %v2499_v39, %s4271_s12  ;;  %v430_v35 = vadd.f32 %v368_v31, %v283_v15  ;;  %v877_v39 = vrot.slane %v812_v7, 2  ;;  %v8143_v15 = vld [vmem:[#allocation12_spill] sm:$0xff] }
 0x63f   :  { %2533 = vrot.lane.b32.xlu2 %v2496_v2, %s4271_s12  ;;  %v185_v31 = vadd.f32 %v8143_v15, %v67_v55  ;;  %v8144_v7 = vld [vmem:[#allocation44_spill] sm:$0xff]  ;;  %v2364_v15 = vpop.permute.xlu0 %2363 }
 0x640   :  { %v612_v59 = vadd.f32 %v8137_v63, %v430_v35  ;;  %v879_v61 = vsel %vm876_vm1, %v877_v39, %v878_v24  ;;  %v6656_v35 = vpop.permute.xlu2 %2361  ;;  %v8146_v24 = vld [vmem:[#allocation59_spill] sm:$0xff] }
 0x641   :  { %v287_v39 = vadd.f32 %v8145_v54, %v185_v31  ;;  %v8152_v31 = vld [vmem:[#allocation16_spill] sm:$0xff]  ;;  %v2080_v54 = vmul.f32 %v8127_v1, %v6287_v57  ;;  %v6720_v1 = vld [vmem:[%s7906_s0 + $0xd0] sm:$0xff] }
 0x642   :  { %v794_v2 = vadd.f32 %v8138_v6, %v612_v59  ;;  %v380_v59 = vsel %vm365_vm0, %v378_v32, %v379_v20  ;;  %v821_v6 = vmul.f32 %v6527_v11, %v6279_v36  ;;  %v6675_v36 = vld [vmem:[%s7907_s1 + $0x12] ss:$0 sm:$0xff]  ;;  %v8149_v11 = vld [vmem:[#allocation48_spill] sm:$0xff]  ;;  %v1638_v32 = vrot.slane %v1570_v34, 1  ;;  %v8158_v34 = vld [vmem:[#allocation57_spill] sm:$0xff] }
 0x643   :  { %v8151_v20 = vld [vmem:[#allocation31_spill] sm:$0xff] }
 0x644   :  { %v941_v12 = vadd.f32 %v879_v61, %v794_v2  ;;  %v2137_v2 = vsel %vm876_vm1, %v2135_v51, %v2136_v23  ;;  %v434_v61 = vadd.f32 %v380_v59, %v287_v39  ;;  %v2587_v23 = vmul.f32 %v6169_v33, %v6675_v36 }
 0x645   :  { %v2148_v59 = vrot.slane %v2080_v54, 2  ;;  %v2583_v33 = vmul.f32 %v6118_v52, %v6675_v36  ;;  %v8154_v52 = vld [vmem:[#allocation10_spill] sm:$0xff] }
 0x646   :  { %2543 = vrot.lane.b32.xlu1 %v2511_v28, %s4271_s12  ;;  %2541 = vrot.lane.b32.xlu0 %v2508_v8, %s4271_s12  ;;  %v1123_v5 = vadd.f32 %v8139_v56, %v941_v12  ;;  %v1562_v28 = vmul.f32 %v4194_v62, %v6438_v9  ;;  %v889_v56 = vrot.slane %v820_v18, 2  ;;  %v8153_v18 = vld [vmem:[#allocation34_spill] sm:$0xff] }
 0x647   :  { %2539 = vrot.lane.b32.xlu2 %v2505_v14, %s4271_s12  ;;  %v1625_v14 = vrot.slane %v1561_v58, 1  ;;  %v8148_v58 = vld [vmem:[#allocation32_spill] sm:$0xff] }
 0x648   :  { %v1305_v17 = vadd.f32 %v8140_v53, %v1123_v5  ;;  %v1626_v60 = vrot.slane %v1562_v28, 1  ;;  %v890_v5 = vrot.slane %v821_v6, 2  ;;  %v8147_v53 = vld [vmem:[#allocation15_spill] sm:$0xff] }
 0x64a   :  { %v1339_v8 = vadd.f32 %v1323_v10, %v1305_v17  ;;  %v1627_v22 = vsel %vm365_vm0, %v1625_v14, %v1626_v60  ;;  %v616_v17 = vadd.f32 %v8147_v53, %v434_v61 }
 0x64c   :  { %v1441_v37 = vadd.f32 %v8141_v43, %v1339_v8  ;;  %v798_v62 = vadd.f32 %v8148_v58, %v616_v17  ;;  %v891_v8 = vsel %vm876_vm1, %v889_v56, %v890_v5  ;;  %v6681_v43 = vld [vmem:[%s7906_s0 + $0x50] sm:$0xff]  ;;  %v8155_v17 = vld [vmem:[#allocation50_spill] sm:$0xff] }
 0x64e   :  { %2616 = vrot.lane.b32.xlu0 %v4113_v50, %s4268_s22  ;;  %v8142_v50 = vld [vmem:[#allocation22_spill] sm:$0xff]  ;;  %v945_v14 = vadd.f32 %v891_v8, %v798_v62 }
 0x64f   :  { %2545 = vrot.lane.b32.xlu2 %v2514_v27, %s4271_s12  ;;  %v1543_v27 = vadd.f32 %v8142_v50, %v1441_v37 }
 0x650   :  { %v1127_v60 = vadd.f32 %v8149_v11, %v945_v14  ;;  %v2101_v14 = vmul.f32 %v8132_v26, %v6287_v57  ;;  %v2102_v11 = vmul.f32 %v6603_v48, %v6287_v57 }
 0x651   :  { %v1689_v21 = vadd.f32 %v1627_v22, %v1543_v27  ;;  %v1327_v27 = vmul.f32 %v6681_v43, %v6302_v46  ;;  %v1569_v22 = vmul.f32 %v6681_v43, %v6438_v9  ;;  %v2079_v9 = vmul.f32 %v6681_v43, %v6287_v57 }
 0x652   :  { %v1309_v50 = vadd.f32 %v8150_v30, %v1127_v60 }
 0x653   :  { %v1871_v40 = vadd.f32 %v8144_v7, %v1689_v21  ;;  %v1637_v21 = vrot.slane %v1569_v22, 1  ;;  %v8157_v22 = vld [vmem:[#allocation62_spill] sm:$0xff] }
 0x654   :  { %v1343_v55 = vadd.f32 %v1327_v27, %v1309_v50  ;;  %v2180_v50 = vrot.slane %v2101_v14, 2  ;;  %v2181_v27 = vrot.slane %v2102_v11, 2  ;;  %v8163_v14 = vld [vmem:[#allocation38_spill] sm:$0xff] }
 0x655   :  { %v2053_v63 = vadd.f32 %v8146_v24, %v1871_v40  ;;  %v1639_v40 = vsel %vm365_vm0, %v1637_v21, %v1638_v32  ;;  %v8159_v21 = vld [vmem:[#allocation41_spill] sm:$0xff]  ;;  %v8164_v11 = vld [vmem:[#allocation54_spill] sm:$0xff] }
 0x656   :  { %v1445_v51 = vadd.f32 %v8151_v20, %v1343_v55  ;;  %v1886_v55 = vadd.f32 %v8158_v34, %v8157_v22  ;;  %v2182_v54 = vsel %vm876_vm1, %v2180_v50, %v2181_v27  ;;  %v2592_v50 = vmul.f32 %v6344_v41, %v6675_v36 }
 0x657   :  { %v2199_v12 = vadd.f32 %v2137_v2, %v2053_v63  ;;  %v2147_v63 = vrot.slane %v2079_v9, 2 }
 0x659   :  { %v2381_v47 = vadd.f32 %v6398_v29, %v2199_v12  ;;  %v2584_v29 = vmul.f32 %v6681_v43, %v6675_v36  ;;  %v2590_v12 = vmul.f32 %v6720_v1, %v6675_v36  ;;  %v2149_v8 = vsel %vm876_vm1, %v2147_v63, %v2148_v59  ;;  %v6762_v63 = vld [vmem:[%s7906_s0 + $0x90] sm:$0xff] }
 0x65a   :  { %v6767_v59 = vld [vmem:[%s7906_s0 + $0x130] sm:$0xff] }
 0x681   :  { %v2516_v10 = vpop.permute.xlu2 %2515 }
 0x682   :  { %v6669_v28 = vadd.f32 %v2516_v10, %v2381_v47  ;;  %v8156_v10 = vld [vmem:[#allocation14_spill] sm:$0xff] }
 0x689   :  { %v2522_v37 = vpop.permute.xlu2 %2521 }
 0x68a   :  { %v2566_v49 = vadd.f32 %v2522_v37, %v6433_v42  ;;  %v1547_v42 = vadd.f32 %v8152_v31, %v1445_v51  ;;  %v8160_v51 = vld [vmem:[#allocation6_spill] sm:$0xff] }
 0x68c   :  { %v6693_v13 = vadd.f32 %v2584_v29, %v2566_v49  ;;  %v1693_v24 = vadd.f32 %v1639_v40, %v1547_v42  ;;  %v8161_v42 = vld [vmem:[#allocation42_spill] sm:$0xff] }
 0x68e   :  { %v1875_v6 = vadd.f32 %v8153_v18, %v1693_v24 }
 0x690   :  { %v2057_v47 = vadd.f32 %v8155_v17, %v1875_v6 }
 0x691   :  { %v2528_v46 = vpop.permute.xlu2 %2527 }
 0x692   :  { %v2569_v7 = vadd.f32 %v2528_v46, %v6462_v45  ;;  %v6713_v45 = vld [vmem:[%s7906_s0 + $0x30] sm:$0xff]  ;;  %v2203_v30 = vadd.f32 %v2149_v8, %v2057_v47 }
 0x693   :  { %v2582_v61 = vmul.f32 %v6713_v45, %v6675_v36 }
 0x694   :  { %v6705_v39 = vadd.f32 %v2587_v23, %v2569_v7  ;;  %v2385_v32 = vadd.f32 %v8159_v21, %v2203_v30  ;;  %v2068_v7 = vadd.f32 %v8161_v42, %v1886_v55  ;;  %v1885_v30 = vadd.f32 %v8164_v11, %v8163_v14 }
 0x698   :  { %v2520_v2 = vpop.permute.xlu1 %2519  ;;  %v2518_v5 = vpop.permute.xlu0 %2517 }
 0x699   :  { %v2565_v56 = vadd.f32 %v2520_v2, %v8154_v52  ;;  %v2534_v53 = vpop.permute.xlu2 %2533  ;;  %v2564_v58 = vadd.f32 %v2518_v5, %v8156_v10  ;;  %v2596_v2 = vmul.f32 %v6675_v36, %v6767_v59  ;;  %v6779_v5 = vld [vmem:[%s7906_s0 + $0x110] sm:$0xff] }
 0x69a   :  { %v2572_v62 = vadd.f32 %v2534_v53, %v6484_v44  ;;  %v6742_v44 = vld [vmem:[%s7906_s0 + $0x70] sm:$0xff]  ;;  %v2100_v53 = vmul.f32 %v8131_v3, %v6287_v57 }
 0x69b   :  { %v6733_v60 = vadd.f32 %v2583_v33, %v2565_v56  ;;  %v6735_v29 = vadd.f32 %v2582_v61, %v2564_v58  ;;  %v2586_v49 = vmul.f32 %v6742_v44, %v6675_v36  ;;  %v2214_v33 = vadd.f32 %v2182_v54, %v2068_v7  ;;  %v8162_v61 = vld [vmem:[#allocation52_spill] sm:$0xff] }
 0x69c   :  { %v6737_v37 = vadd.f32 %v2590_v12, %v2572_v62  ;;  %v2178_v8 = vrot.slane %v2100_v53, 2 }
 0x69d   :  { %v2396_v18 = vadd.f32 %v2364_v15, %v2214_v33  ;;  %v2099_v15 = vmul.f32 %v6779_v5, %v6287_v57  ;;  %v8165_v57 = vld [vmem:[#allocation21_spill] sm:$0xff] }
 0x69e   :  { %v2067_v3 = vadd.f32 %v8165_v57, %v1885_v30  ;;  %v4116_v57 = vld [vmem:[%s7907_s1 + $0x19] ss:$0 sm:$0xff] }
 0x69f   :  { %v2177_v62 = vrot.slane %v2099_v15, 2  ;;  %v6842_v15 = vld [vmem:[%s7906_s0 + $0xc0] sm:$0xff] }
 0x6a0   :  { %v2526_v20 = vpop.permute.xlu1 %2525  ;;  %v2524_v46 = vpop.permute.xlu0 %2523 }
 0x6a1   :  { %v2568_v23 = vadd.f32 %v2526_v20, %v8160_v51  ;;  %v2540_v31 = vpop.permute.xlu2 %2539  ;;  %v6751_v40 = vadd.f32 %v2524_v46, %v2385_v32  ;;  %v2179_v55 = vsel %vm876_vm1, %v2177_v62, %v2178_v8  ;;  %v2595_v46 = vmul.f32 %v8132_v26, %v6675_v36 }
 0x6a2   :  { %v6754_v9 = vadd.f32 %v2540_v31, %v6492_v4  ;;  %v2588_v4 = vmul.f32 %v6675_v36, %v6762_v63  ;;  %v2213_v51 = vadd.f32 %v2179_v55, %v2067_v3 }
 0x6a3   :  { %v6757_v24 = vadd.f32 %v2586_v49, %v2568_v23  ;;  %v2591_v49 = vmul.f32 %v6332_v38, %v6675_v36 }
 0x6a4   :  { %v2395_v23 = vadd.f32 %v6656_v35, %v2213_v51  ;;  %v6821_v35 = vld [vmem:[%s7906_s0 + $0x20] sm:$0xff] }
 0x6a8   :  { %v2532_v6 = vpop.permute.xlu1 %2531  ;;  %v2530_v52 = vpop.permute.xlu0 %2529 }
 0x6a9   :  { %v6774_v12 = vadd.f32 %v2532_v6, %v8162_v61  ;;  %v2546_v56 = vpop.permute.xlu2 %2545  ;;  %v2570_v17 = vadd.f32 %v2530_v52, %v6464_v0  ;;  %v8166_v0 = vld [vmem:[#allocation56_spill] sm:$0xff]  ;;  %v6833_v52 = vld [vmem:[%s7906_s0 + $0x60] sm:$0xff] }
 0x6aa   :  { %v2578_v47 = vadd.f32 %v2546_v56, %v2396_v18  ;;  %v2585_v55 = vmul.f32 %v6833_v52, %v6675_v36 }
 0x6ab   :  { %v6786_v10 = vadd.f32 %v2588_v4, %v2570_v17  ;;  %v6848_v17 = vld [vmem:[%s7906_s0 + $0x80] sm:$0xff] }
 0x6ac   :  { %v6788_v58 = vadd.f32 %v2596_v2, %v2578_v47 }
 0x6b0   :  { %v2538_v27 = vpop.permute.xlu1 %2537  ;;  %v2536_v34 = vpop.permute.xlu0 %2535 }
 0x6b1   :  { %v2574_v22 = vadd.f32 %v2538_v27, %v8166_v0  ;;  %v2573_v21 = vadd.f32 %v2536_v34, %v6486_v19  ;;  %v6815_v19 = vld [vmem:[%s7906_s0 + $0x40] sm:$0xff]  ;;  %v4119_v34 = vld [vmem:[%s7907_s1 + $0x1a] ss:$0 sm:$0xff] }
 0x6b3   :  { %v6800_v32 = vadd.f32 %v2592_v50, %v2574_v22  ;;  %v6802_v20 = vadd.f32 %v2591_v49, %v2573_v21  ;;  %v6865_v50 = vld [vmem:[%s7906_s0 + $0x100] sm:$0xff]  ;;  %v4117_v49 = vld [vmem:[%s7907_s1 + $0x16] ss:$0 sm:$0xff]  ;;  %v2601_v21 = vadd.f32 %v2585_v55, %v6751_v40  ;;  %v6976_v55 = vld [vmem:[%s7906_s0 + $0x108] sm:$0x3] }
 0x6b8   :  { %v2544_v31 = vpop.permute.xlu1 %2543  ;;  %v2542_v7 = vpop.permute.xlu0 %2541 }
 0x6b9   :  { %v2577_v42 = vadd.f32 %v2544_v31, %v2395_v23  ;;  %v6808_v54 = vadd.f32 %v2542_v7, %v6494_v25 }
 0x6bb   :  { %v6810_v33 = vadd.f32 %v2595_v46, %v2577_v42 }
 0x6c0   :  { %v2617_v18 = vpop.permute.xlu0 %2616 }
 0x6c1   :  { %v2621_v6 = vmul.f32 %v6815_v19, %v2617_v18  ;;  %v2619_v4 = vmul.f32 %v6821_v35, %v2617_v18  ;;  %v2620_v25 = vmul.f32 %v6713_v45, %v2617_v18  ;;  %v2624_v2 = vmul.f32 %v6742_v44, %v2617_v18 }
 0x6c2   :  { %v2622_v61 = vmul.f32 %v6681_v43, %v2617_v18  ;;  %v2623_v56 = vmul.f32 %v6833_v52, %v2617_v18  ;;  %v2627_v53 = vmul.f32 %v6842_v15, %v2617_v18  ;;  %v2625_v47 = vmul.f32 %v6848_v17, %v2617_v18 }
 0x6c3   :  { %2655 = vrot.lane.b32.xlu0 %v2621_v6, %s4270_s7  ;;  %2651 = vrot.lane.b32.xlu1 %v2619_v4, %s4270_s7  ;;  %v2626_v62 = vmul.f32 %v2617_v18, %v6762_v63  ;;  %v2630_v8 = vmul.f32 %v6344_v41, %v2617_v18  ;;  %v2628_v14 = vmul.f32 %v6720_v1, %v2617_v18 }
 0x6c4   :  { %2653 = vrot.lane.b32.xlu2 %v2620_v25, %s4270_s7  ;;  %v2629_v11 = vmul.f32 %v6332_v38, %v2617_v18  ;;  %v2633_v30 = vmul.f32 %v8132_v26, %v2617_v18  ;;  %v2631_v27 = vmul.f32 %v6865_v50, %v2617_v18  ;;  %v2632_v41 = vmul.f32 %v6779_v5, %v2617_v18  ;;  %v4114_v38 = vld [vmem:[%s7907_s1 + $0x17] ss:$0 sm:$0xff]  ;;  %v4115_v26 = vld [vmem:[%s7907_s1 + $0x14] ss:$0 sm:$0xff] }
 0x6c5   :  { %v2634_v3 = vmul.f32 %v2617_v18, %v6767_v59 }
 0x6cb   :  { %2661 = vrot.lane.b32.xlu0 %v2624_v2, %s4270_s7  ;;  %2657 = vrot.lane.b32.xlu1 %v2622_v61, %s4270_s7 }
 0x6cc   :  { %2659 = vrot.lane.b32.xlu2 %v2623_v56, %s4270_s7 }
 0x6d3   :  { %2667 = vrot.lane.b32.xlu0 %v2627_v53, %s4270_s7  ;;  %2663 = vrot.lane.b32.xlu1 %v2625_v47, %s4270_s7 }
 0x6d4   :  { %2665 = vrot.lane.b32.xlu2 %v2626_v62, %s4270_s7 }
 0x6db   :  { %2673 = vrot.lane.b32.xlu0 %v2630_v8, %s4270_s7  ;;  %2669 = vrot.lane.b32.xlu1 %v2628_v14, %s4270_s7 }
 0x6dc   :  { %2671 = vrot.lane.b32.xlu2 %v2629_v11, %s4270_s7 }
 0x6e3   :  { %2679 = vrot.lane.b32.xlu0 %v2633_v30, %s4270_s7  ;;  %2675 = vrot.lane.b32.xlu1 %v2631_v27, %s4270_s7 }
 0x6e4   :  { %2677 = vrot.lane.b32.xlu2 %v2632_v41, %s4270_s7  ;;  %v2593_v41 = vmul.f32 %v6865_v50, %v6675_v36 }
 0x6eb   :  { %3148 = vrot.lane.b32.xlu0 %v4114_v38, %s4269_s25  ;;  %2718 = vrot.lane.b32.xlu1 %v4115_v26, %s4269_s25 }
 0x6ec   :  { %2966 = vrot.lane.b32.xlu2 %v4117_v49, %s4268_s22 }
 0x6f3   :  { %2681 = vrot.lane.b32.xlu0 %v2634_v3, %s4270_s7  ;;  %3476 = vrot.lane.b32.xlu1 %v4116_v57, %s4268_s22 }
 0x6f4   :  { %3658 = vrot.lane.b32.xlu2 %v4119_v34, %s4269_s25 }
 0x71e   :  { %v2654_v0 = vpop.permute.xlu2 %2653 }
 0x71f   :  { %v6891_v22 = vadd.f32 %v2654_v0, %v6735_v29  ;;  %v2581_v29 = vmul.f32 %v6821_v35, %v6675_v36 }
 0x721   :  { %v2597_v42 = vadd.f32 %v2581_v29, %v6669_v28  ;;  %v6989_v29 = vld [vmem:[%s7906_s0 + $0xc8] sm:$0x3] }
 0x726   :  { %v2660_v51 = vpop.permute.xlu2 %2659 }
 0x727   :  { %v6900_v23 = vadd.f32 %v2660_v51, %v2601_v21 }
 0x72e   :  { %v2666_v46 = vpop.permute.xlu2 %2665 }
 0x72f   :  { %v6903_v31 = vadd.f32 %v2666_v46, %v6786_v10  ;;  %v2594_v10 = vmul.f32 %v6779_v5, %v6675_v36 }
 0x731   :  { %v2610_v56 = vadd.f32 %v2594_v10, %v6808_v54 }
 0x735   :  { %v2656_v7 = vpop.permute.xlu0 %2655  ;;  %v2652_v18 = vpop.permute.xlu1 %2651 }
 0x736   :  { %v6909_v6 = vadd.f32 %v2656_v7, %v6733_v60  ;;  %v6911_v4 = vadd.f32 %v2652_v18, %v2597_v42  ;;  %v2672_v40 = vpop.permute.xlu2 %2671 }
 0x737   :  { %v6914_v25 = vadd.f32 %v2672_v40, %v6802_v20  ;;  %v2589_v20 = vmul.f32 %v6842_v15, %v6675_v36 }
 0x739   :  { %v2605_v62 = vadd.f32 %v2589_v20, %v6774_v12  ;;  %v2609_v12 = vadd.f32 %v2593_v41, %v6754_v9 }
 0x73d   :  { %v2662_v2 = vpop.permute.xlu0 %2661  ;;  %v2658_v61 = vpop.permute.xlu1 %2657 }
 0x73e   :  { %v6920_v28 = vadd.f32 %v2662_v2, %v6757_v24  ;;  %v6923_v53 = vadd.f32 %v2658_v61, %v6693_v13  ;;  %v2678_v60 = vpop.permute.xlu2 %2677 }
 0x73f   :  { %v6925_v47 = vadd.f32 %v2678_v60, %v2610_v56 }
 0x745   :  { %v2668_v8 = vpop.permute.xlu0 %2667  ;;  %v2664_v14 = vpop.permute.xlu1 %2663 }
 0x746   :  { %v6930_v11 = vadd.f32 %v2668_v8, %v2605_v62  ;;  %v6933_v54 = vadd.f32 %v2664_v14, %v6705_v39  ;;  %v6969_v0 = vpop.permute.xlu2 %2966 }
 0x747   :  { %v2993_v34 = vmul.f32 %v6865_v50, %v6969_v0  ;;  %v2985_v46 = vmul.f32 %v6842_v15, %v6969_v0  ;;  %v2986_v42 = vmul.f32 %v6989_v29, %v6969_v0 }
 0x749   :  { %v3069_v18 = vrot.slane %v2993_v34, 1  ;;  %v3057_v10 = vrot.slane %v2985_v46, 1  ;;  %v3058_v2 = vrot.slane %v2986_v42, 1 }
 0x74b   :  { %v3059_v62 = vsel %vm365_vm0, %v3057_v10, %v3058_v2 }
 0x74d   :  { %v2674_v24 = vpop.permute.xlu0 %2673  ;;  %v2670_v30 = vpop.permute.xlu1 %2669 }
 0x74e   :  { %v6936_v13 = vadd.f32 %v2674_v24, %v6800_v32  ;;  %v6939_v27 = vadd.f32 %v2670_v30, %v6737_v37 }
 0x755   :  { %v2680_v38 = vpop.permute.xlu0 %2679  ;;  %v2676_v26 = vpop.permute.xlu1 %2675 }
 0x756   :  { %v6945_v49 = vadd.f32 %v2680_v38, %v6810_v33  ;;  %v6947_v39 = vadd.f32 %v2676_v26, %v2609_v12 }
 0x758   :  { %8167 = vst [vmem:[#allocation7_spill] sm:$0xff] %v6945_v49 }
 0x75d   :  { %v6949_v57 = vpop.permute.xlu1 %2718  ;;  %v6998_v61 = vpop.permute.xlu0 %3148 }
 0x75e   :  { %v2723_v32 = vmul.f32 %v6815_v19, %v6949_v57  ;;  %v2721_v37 = vmul.f32 %v6821_v35, %v6949_v57  ;;  %v2722_v36 = vmul.f32 %v6713_v45, %v6949_v57  ;;  %v2726_v9 = vmul.f32 %v6742_v44, %v6949_v57 }
 0x75f   :  { %v2724_v33 = vmul.f32 %v6681_v43, %v6949_v57  ;;  %v2725_v3 = vmul.f32 %v6833_v52, %v6949_v57  ;;  %v2994_v43 = vmul.f32 %v6976_v55, %v6969_v0  ;;  %v2729_v21 = vmul.f32 %v6842_v15, %v6949_v57 }
 0x760   :  { %2757 = vrot.lane.b32.xlu0 %v2723_v32, %s4271_s12  ;;  %2753 = vrot.lane.b32.xlu1 %v2721_v37, %s4271_s12  ;;  %v2727_v51 = vmul.f32 %v6848_v17, %v6949_v57  ;;  %v2728_v7 = vmul.f32 %v6949_v57, %v6762_v63  ;;  %v3167_v60 = vmul.f32 %v6842_v15, %v6998_v61 }
 0x761   :  { %2755 = vrot.lane.b32.xlu2 %v2722_v36, %s4271_s12  ;;  %v3070_v40 = vrot.slane %v2994_v43, 1  ;;  %v3168_v63 = vmul.f32 %v6989_v29, %v6998_v61  ;;  %v2733_v20 = vmul.f32 %v6865_v50, %v6949_v57  ;;  %v3175_v8 = vmul.f32 %v6865_v50, %v6998_v61  ;;  %v7024_v36 = vld [vmem:[%s7906_s0 + $0x68] sm:$0x3] }
 0x762   :  { %v3176_v14 = vmul.f32 %v6976_v55, %v6998_v61  ;;  %v3239_v24 = vrot.slane %v3167_v60, 1  ;;  %v2730_v26 = vmul.f32 %v6720_v1, %v6949_v57  ;;  %v2977_v37 = vmul.f32 %v6833_v52, %v6969_v0 }
 0x763   :  { %v3071_v56 = vsel %vm365_vm0, %v3069_v18, %v3070_v40  ;;  %v3240_v30 = vrot.slane %v3168_v63, 1  ;;  %v3251_v41 = vrot.slane %v3175_v8, 1  ;;  %v2734_v40 = vmul.f32 %v6779_v5, %v6949_v57  ;;  %v7058_v63 = vld [vmem:[%s7906_s0 + $0xd8] sm:$0x3] }
 0x764   :  { %v3252_v12 = vrot.slane %v3176_v14, 1  ;;  %v2987_v60 = vmul.f32 %v6720_v1, %v6969_v0 }
 0x765   :  { %v3241_v38 = vsel %vm365_vm0, %v3239_v24, %v3240_v30  ;;  %v7040_v43 = vpop.permute.xlu1 %3476 }
 0x766   :  { %v3253_v32 = vsel %vm365_vm0, %v3251_v41, %v3252_v12  ;;  %v3496_v18 = vmul.f32 %v6989_v29, %v7040_v43  ;;  %v3503_v10 = vmul.f32 %v6865_v50, %v7040_v43  ;;  %v3504_v2 = vmul.f32 %v6976_v55, %v7040_v43 }
 0x767   :  { %v3060_v41 = vrot.slane %v2987_v60, 1 }
 0x768   :  { %2763 = vrot.lane.b32.xlu0 %v2726_v9, %s4271_s12  ;;  %2759 = vrot.lane.b32.xlu1 %v2724_v33, %s4271_s12  ;;  %v2978_v9 = vmul.f32 %v7024_v36, %v6969_v0  ;;  %v2969_v33 = vmul.f32 %v6821_v35, %v6969_v0  ;;  %v3568_v14 = vrot.slane %v3496_v18, 2  ;;  %v3579_v24 = vrot.slane %v3503_v10, 2 }
 0x769   :  { %2761 = vrot.lane.b32.xlu2 %v2725_v3, %s4271_s12  ;;  %v7035_v3 = vld [vmem:[%s7906_s0 + $0x28] sm:$0x3]  ;;  %v3580_v30 = vrot.slane %v3504_v2, 2 }
 0x76a   :  { %v2970_v34 = vmul.f32 %v7035_v3, %v6969_v0  ;;  %v3033_v46 = vrot.slane %v2969_v33, 1 }
 0x76c   :  { %v3034_v42 = vrot.slane %v2970_v34, 1  ;;  %v3159_v34 = vmul.f32 %v6833_v52, %v6998_v61 }
 0x770   :  { %2769 = vrot.lane.b32.xlu0 %v2729_v21, %s4271_s12  ;;  %2765 = vrot.lane.b32.xlu1 %v2727_v51, %s4271_s12  ;;  %v3045_v21 = vrot.slane %v2977_v37, 1  ;;  %v3046_v51 = vrot.slane %v2978_v9, 1  ;;  %v7074_v9 = vld [vmem:[%s7906_s0 + $0x118] sm:$0x3] }
 0x771   :  { %2767 = vrot.lane.b32.xlu2 %v2728_v7, %s4271_s12  ;;  %v3495_v7 = vmul.f32 %v6842_v15, %v7040_v43  ;;  %v2996_v33 = vmul.f32 %v7074_v9, %v6969_v0 }
 0x773   :  { %v3567_v8 = vrot.slane %v3495_v7, 2  ;;  %v3073_v18 = vrot.slane %v2996_v33, 1 }
 0x778   :  { %2777 = vrot.lane.b32.xlu1 %v2733_v20, %s4271_s12  ;;  %3105 = vrot.lane.b32.xlu0 %v3071_v56, %s4270_s7  ;;  %v3047_v56 = vsel %vm365_vm0, %v3045_v21, %v3046_v51  ;;  %v2988_v20 = vmul.f32 %v7058_v63, %v6969_v0  ;;  %v3160_v21 = vmul.f32 %v7024_v36, %v6998_v61 }
 0x779   :  { %3097 = vrot.lane.b32.xlu2 %v3059_v62, %s4270_s7  ;;  %v3035_v62 = vsel %vm365_vm0, %v3033_v46, %v3034_v42  ;;  %v3151_v51 = vmul.f32 %v6821_v35, %v6998_v61  ;;  %v3152_v46 = vmul.f32 %v7035_v3, %v6998_v61  ;;  %v7089_v42 = vpop.permute.xlu2 %3658 }
 0x77a   :  { %v3061_v12 = vrot.slane %v2988_v20, 1  ;;  %v3228_v10 = vrot.slane %v3160_v21, 1  ;;  %v3677_v60 = vmul.f32 %v6842_v15, %v7089_v42  ;;  %v3678_v20 = vmul.f32 %v6989_v29, %v7089_v42 }
 0x77b   :  { %v3215_v2 = vrot.slane %v3151_v51, 1 }
 0x77c   :  { %v3062_v37 = vsel %vm365_vm0, %v3060_v41, %v3061_v12  ;;  %v3170_v41 = vmul.f32 %v7058_v63, %v6998_v61 }
 0x780   :  { %3279 = vrot.lane.b32.xlu1 %v3241_v38, %s4271_s12  ;;  %2771 = vrot.lane.b32.xlu0 %v2730_v26, %s4271_s12  ;;  %v3569_v38 = vsel %vm876_vm1, %v3567_v8, %v3568_v14  ;;  %v3581_v26 = vsel %vm876_vm1, %v3579_v24, %v3580_v30  ;;  %v3686_v8 = vmul.f32 %v6976_v55, %v7089_v42 }
 0x781   :  { %3287 = vrot.lane.b32.xlu2 %v3253_v32, %s4271_s12  ;;  %v2995_v32 = vmul.f32 %v6779_v5, %v6969_v0  ;;  %v3169_v30 = vmul.f32 %v6720_v1, %v6998_v61 }
 0x783   :  { %v3072_v7 = vrot.slane %v2995_v32, 1  ;;  %v3242_v33 = vrot.slane %v3169_v30, 1  ;;  %v3479_v30 = vmul.f32 %v6821_v35, %v7040_v43 }
 0x785   :  { %v3074_v14 = vsel %vm365_vm0, %v3072_v7, %v3073_v18  ;;  %v3177_v7 = vmul.f32 %v6779_v5, %v6998_v61  ;;  %v3178_v18 = vmul.f32 %v7074_v9, %v6998_v61 }
 0x788   :  { %2779 = vrot.lane.b32.xlu1 %v2734_v40, %s4271_s12  ;;  %3089 = vrot.lane.b32.xlu0 %v3047_v56, %s4270_s7  ;;  %v3227_v40 = vrot.slane %v3159_v34, 1  ;;  %v3216_v56 = vrot.slane %v3152_v46, 1  ;;  %v3243_v34 = vrot.slane %v3170_v41, 1  ;;  %v3480_v41 = vmul.f32 %v7035_v3, %v7040_v43 }
 0x789   :  { %3081 = vrot.lane.b32.xlu2 %v3035_v62, %s4270_s7  ;;  %v3685_v62 = vmul.f32 %v6865_v50, %v7089_v42 }
 0x78a   :  { %v3229_v24 = vsel %vm365_vm0, %v3227_v40, %v3228_v10  ;;  %v3217_v12 = vsel %vm365_vm0, %v3215_v2, %v3216_v56  ;;  %v3244_v46 = vsel %vm365_vm0, %v3242_v33, %v3243_v34  ;;  %v3254_v40 = vrot.slane %v3177_v7, 1  ;;  %v7122_v2 = vld [vmem:[%s7906_s0 + $0x120] sm:$0xff] }
 0x78b   :  { %v3761_v32 = vrot.slane %v3685_v62, 2  ;;  %v3255_v10 = vrot.slane %v3178_v18, 1  ;;  %v2735_v56 = vmul.f32 %v7122_v2, %v6949_v57  ;;  %v2971_v62 = vmul.f32 %v6713_v45, %v6969_v0 }
 0x78c   :  { %v3544_v33 = vrot.slane %v3480_v41, 2 }
 0x790   :  { %3607 = vrot.lane.b32.xlu1 %v3569_v38, %s4270_s7  ;;  %3099 = vrot.lane.b32.xlu0 %v3062_v37, %s4270_s7  ;;  %v3749_v38 = vrot.slane %v3677_v60, 2  ;;  %v3762_v37 = vrot.slane %v3686_v8, 2  ;;  %v7129_v60 = vld [vmem:[%s7906_s0 + $0xe0] sm:$0xff]  ;;  %v3256_v8 = vsel %vm365_vm0, %v3254_v40, %v3255_v10  ;;  %v3505_v10 = vmul.f32 %v6779_v5, %v7040_v43 }
 0x791   :  { %3615 = vrot.lane.b32.xlu2 %v3581_v26, %s4270_s7  ;;  %v3750_v26 = vrot.slane %v3678_v20, 2  ;;  %v2731_v20 = vmul.f32 %v7129_v60, %v6949_v57 }
 0x792   :  { %v3763_v51 = vsel %vm876_vm1, %v3761_v32, %v3762_v37  ;;  %v3543_v37 = vrot.slane %v3479_v30, 2 }
 0x793   :  { %v3751_v21 = vsel %vm876_vm1, %v3749_v38, %v3750_v26  ;;  %v3488_v38 = vmul.f32 %v7024_v36, %v7040_v43  ;;  %v3036_v26 = vrot.slane %v2971_v62, 1  ;;  %v3497_v62 = vmul.f32 %v6720_v1, %v7040_v43 }
 0x794   :  { %v3545_v40 = vsel %vm876_vm1, %v3543_v37, %v3544_v33  ;;  %v2990_v37 = vmul.f32 %v6556_v16, %v6969_v0 }
 0x798   :  { %3107 = vrot.lane.b32.xlu1 %v3074_v14, %s4270_s7  ;;  %3271 = vrot.lane.b32.xlu0 %v3229_v24, %s4271_s12  ;;  %v7139_v14 = vld [vmem:[%s7906_s0 + $0x38] sm:$0x3] }
 0x799   :  { %3263 = vrot.lane.b32.xlu2 %v3217_v12, %s4271_s12  ;;  %v2972_v24 = vmul.f32 %v7139_v14, %v6969_v0  ;;  %v3487_v12 = vmul.f32 %v6833_v52, %v7040_v43 }
 0x79b   :  { %v3037_v32 = vrot.slane %v2972_v24, 1  ;;  %v3555_v34 = vrot.slane %v3487_v12, 2  ;;  %v3582_v24 = vrot.slane %v3505_v10, 2 }
 0x79d   :  { %v3038_v18 = vsel %vm365_vm0, %v3036_v26, %v3037_v32  ;;  %v2989_v32 = vmul.f32 %v7129_v60, %v6969_v0 }
 0x7a0   :  { %3281 = vrot.lane.b32.xlu0 %v3244_v46, %s4271_s12  ;;  %3789 = vrot.lane.b32.xlu1 %v3751_v21, %s4271_s12  ;;  %v3556_v21 = vrot.slane %v3488_v38, 2  ;;  %v7159_v46 = vld [vmem:[%s7906_s0 + $0x78] sm:$0x3]  ;;  %v3570_v38 = vrot.slane %v3497_v62, 2 }
 0x7a1   :  { %3797 = vrot.lane.b32.xlu2 %v3763_v51, %s4271_s12  ;;  %v2979_v51 = vmul.f32 %v6742_v44, %v6969_v0  ;;  %v2980_v7 = vmul.f32 %v7159_v46, %v6969_v0 }
 0x7a3   :  { %v3048_v41 = vrot.slane %v2979_v51, 1  ;;  %v3049_v12 = vrot.slane %v2980_v7, 1  ;;  %v3669_v7 = vmul.f32 %v6833_v52, %v7089_v42  ;;  %v3162_v52 = vmul.f32 %v7159_v46, %v6998_v61 }
 0x7a8   :  { %2781 = vrot.lane.b32.xlu0 %v2735_v56, %s4271_s12  ;;  %3289 = vrot.lane.b32.xlu1 %v3256_v8, %s4271_s12  ;;  %v3506_v56 = vmul.f32 %v7074_v9, %v7040_v43  ;;  %v3498_v8 = vmul.f32 %v7058_v63, %v7040_v43 }
 0x7a9   :  { %2773 = vrot.lane.b32.xlu2 %v2731_v20, %s4271_s12  ;;  %v3557_v20 = vsel %vm876_vm1, %v3555_v34, %v3556_v21  ;;  %v3050_v34 = vsel %vm365_vm0, %v3048_v41, %v3049_v12  ;;  %v3661_v21 = vmul.f32 %v6821_v35, %v7089_v42  ;;  %v3161_v12 = vmul.f32 %v6742_v44, %v6998_v61 }
 0x7aa   :  { %v3583_v30 = vrot.slane %v3506_v56, 2  ;;  %v3571_v26 = vrot.slane %v3498_v8, 2  ;;  %v3063_v56 = vrot.slane %v2989_v32, 1  ;;  %v2997_v32 = vmul.f32 %v7122_v2, %v6969_v0 }
 0x7ab   :  { %v3725_v62 = vrot.slane %v3661_v21, 2  ;;  %v3230_v21 = vrot.slane %v3161_v12, 1  ;;  %v3679_v12 = vmul.f32 %v6720_v1, %v7089_v42 }
 0x7ac   :  { %v3584_v33 = vsel %vm876_vm1, %v3582_v24, %v3583_v30  ;;  %v3572_v51 = vsel %vm876_vm1, %v3570_v38, %v3571_v26  ;;  %v3737_v30 = vrot.slane %v3669_v7, 2  ;;  %v3075_v7 = vrot.slane %v2997_v32, 1 }
 0x7b0   :  { %3083 = vrot.lane.b32.xlu0 %v3038_v18, %s4270_s7  ;;  %3591 = vrot.lane.b32.xlu1 %v3545_v40, %s4270_s7  ;;  %v3662_v18 = vmul.f32 %v7035_v3, %v7089_v42  ;;  %v3670_v40 = vmul.f32 %v7024_v36, %v7089_v42 }
 0x7b1   :  { %3599 = vrot.lane.b32.xlu2 %v3557_v20, %s4270_s7  ;;  %v3064_v20 = vrot.slane %v2990_v37, 1  ;;  %v2998_v37 = vmul.f32 %v6603_v48, %v6969_v0 }
 0x7b2   :  { %v3726_v8 = vrot.slane %v3662_v18, 2  ;;  %v3738_v41 = vrot.slane %v3670_v40, 2  ;;  %v3231_v18 = vrot.slane %v3162_v52, 1  ;;  %v3680_v52 = vmul.f32 %v7058_v63, %v7089_v42 }
 0x7b3   :  { %v3065_v38 = vsel %vm365_vm0, %v3063_v56, %v3064_v20  ;;  %v3076_v40 = vrot.slane %v2998_v37, 1  ;;  %v3752_v63 = vrot.slane %v3679_v12, 2  ;;  %v7265_v12 = vld [vmem:[%s7906_s0 + $0xf0] sm:$0xff] }
 0x7b4   :  { %v3727_v26 = vsel %vm876_vm1, %v3725_v62, %v3726_v8  ;;  %v3232_v62 = vsel %vm365_vm0, %v3230_v21, %v3231_v18  ;;  %v3171_v8 = vmul.f32 %v7129_v60, %v6998_v61 }
 0x7b6   :  { %v3245_v32 = vrot.slane %v3171_v8, 1 }
 0x7b8   :  { %3617 = vrot.lane.b32.xlu0 %v3584_v33, %s4270_s7  ;;  %3091 = vrot.lane.b32.xlu1 %v3050_v34, %s4270_s7  ;;  %v3153_v33 = vmul.f32 %v6713_v45, %v6998_v61  ;;  %v3154_v34 = vmul.f32 %v7139_v14, %v6998_v61 }
 0x7b9   :  { %3609 = vrot.lane.b32.xlu2 %v3572_v51, %s4270_s7 }
 0x7ba   :  { %v3218_v56 = vrot.slane %v3153_v33, 1  ;;  %v3219_v20 = vrot.slane %v3154_v34, 1 }
 0x7bb   :  { %v2756_v10 = vpop.permute.xlu2 %2755 }
 0x7bc   :  { %v7196_v24 = vadd.f32 %v2756_v10, %v6891_v22  ;;  %v3739_v22 = vsel %vm876_vm1, %v3737_v30, %v3738_v41  ;;  %v3077_v30 = vsel %vm365_vm0, %v3075_v7, %v3076_v40  ;;  %v3172_v41 = vmul.f32 %v6556_v16, %v6998_v61  ;;  %v7237_v16 = vpop.permute.xlu0 %2681 }
 0x7bd   :  { %v3180_v7 = vmul.f32 %v6603_v48, %v6998_v61 }
 0x7be   :  { %8168 = vst [vmem:[#allocation17_spill] sm:$0xff] %v7196_v24  ;;  %v3246_v37 = vrot.slane %v3172_v41, 1  ;;  %v2736_v41 = vmul.f32 %v6949_v57, %v6767_v59 }
 0x7bf   :  { %v3258_v48 = vrot.slane %v3180_v7, 1 }
 0x7c0   :  { %3101 = vrot.lane.b32.xlu0 %v3065_v38, %s4270_s7  ;;  %3773 = vrot.lane.b32.xlu1 %v3727_v26, %s4271_s12  ;;  %v3687_v38 = vmul.f32 %v6779_v5, %v7089_v42  ;;  %v3688_v26 = vmul.f32 %v7074_v9, %v7089_v42  ;;  %v3247_v18 = vsel %vm365_vm0, %v3245_v32, %v3246_v37  ;;  %v3879_v32 = vld [vmem:[%s7909_s3 + $0x30] sm:$0xff] }
 0x7c1   :  { %3781 = vrot.lane.b32.xlu2 %v3739_v22, %s4271_s12  ;;  %v3753_v22 = vrot.slane %v3680_v52, 2  ;;  %v2732_v52 = vmul.f32 %v7265_v12, %v6949_v57 }
 0x7c2   :  { %v3764_v34 = vrot.slane %v3687_v38, 2  ;;  %v3765_v21 = vrot.slane %v3688_v26, 2  ;;  %v7282_v38 = vld [vmem:[%s7906_s0 + $0x48] sm:$0x3]  ;;  %v3481_v26 = vmul.f32 %v6713_v45, %v7040_v43 }
 0x7c3   :  { %v2762_v51 = vpop.permute.xlu2 %2761  ;;  %v3754_v5 = vsel %vm876_vm1, %v3752_v63, %v3753_v22  ;;  %v2974_v57 = vmul.f32 %v7282_v38, %v6969_v0 }
 0x7c4   :  { %v7217_v10 = vadd.f32 %v2762_v51, %v6900_v23  ;;  %v3220_v23 = vsel %vm365_vm0, %v3218_v56, %v3219_v20  ;;  %v3179_v51 = vmul.f32 %v7122_v2, %v6998_v61  ;;  %v3766_v40 = vsel %vm876_vm1, %v3764_v34, %v3765_v21 }
 0x7c5   :  { %v3489_v34 = vmul.f32 %v6742_v44, %v7040_v43  ;;  %v3490_v21 = vmul.f32 %v7159_v46, %v7040_v43  ;;  %v3546_v7 = vrot.slane %v3481_v26, 2  ;;  %v7328_v26 = vld [vmem:[%s7906_s0 + $0x128] sm:$0x3] }
 0x7c8   :  { %3273 = vrot.lane.b32.xlu0 %v3232_v62, %s4271_s12  ;;  %3109 = vrot.lane.b32.xlu1 %v3077_v30, %s4270_s7  ;;  %v3257_v30 = vrot.slane %v3179_v51, 1  ;;  %v3040_v51 = vrot.slane %v2974_v57, 1  ;;  %v3876_v57 = vld [vmem:[%s7909_s3 + $0x18] sm:$0xff] }
 0x7c9   :  { %3265 = vrot.lane.b32.xlu2 %v3220_v23, %s4271_s12  ;;  %v3880_v23 = vld [vmem:[%s7909_s3 + $0x38] sm:$0xff] }
 0x7ca   :  { %4067 = vmatpush.msra.mxu3 %v3880_v23  ;;  %4066 = vmatpush.msra.mxu2 %v3880_v23  ;;  %v3259_v37 = vsel %vm365_vm0, %v3257_v30, %v3258_v48 }
 0x7cb   :  { %v2768_v1 = vpop.permute.xlu2 %2767  ;;  %4065 = vmatpush.msra.mxu1 %v3880_v23  ;;  %3942 = vmatpush.msra.mxu0 %v3880_v23  ;;  %v3559_v23 = vrot.slane %v3490_v21, 2 }
 0x7cc   :  { %v7240_v33 = vadd.f32 %v2768_v1, %v6903_v31  ;;  %v3482_v1 = vmul.f32 %v7139_v14, %v7040_v43  ;;  %4070 = vmatpush.msra.mxu3 %v3879_v32  ;;  %4069 = vmatpush.msra.mxu2 %v3879_v32 }
 0x7cd   :  { %4068 = vmatpush.msra.mxu1 %v3879_v32  ;;  %3943 = vmatpush.msra.mxu0 %v3879_v32  ;;  %v2981_v32 = vmul.f32 %v6848_v17, %v6969_v0 }
 0x7ce   :  { %8169 = vst [vmem:[#allocation28_spill] sm:$0xff] %v7240_v33 }
 0x7d0   :  { %3283 = vrot.lane.b32.xlu0 %v3247_v18, %s4271_s12  ;;  %3791 = vrot.lane.b32.xlu1 %v3754_v5, %s4271_s12  ;;  %v3878_v18 = vld [vmem:[%s7909_s3 + $0x28] sm:$0xff] }
 0x7d1   :  { %3799 = vrot.lane.b32.xlu2 %v3766_v40, %s4271_s12  ;;  %v3547_v40 = vrot.slane %v3482_v1, 2  ;;  %4073 = vmatpush.msra.mxu3 %v3878_v18  ;;  %v3508_v1 = vmul.f32 %v7328_v26, %v7040_v43 }
 0x7d2   :  { %v2758_v31 = vpop.permute.xlu0 %2757  ;;  %v2754_v56 = vpop.permute.xlu1 %2753  ;;  %4072 = vmatpush.msra.mxu2 %v3878_v18  ;;  %4071 = vmatpush.msra.mxu1 %v3878_v18 }
 0x7d3   :  { %v7253_v20 = vadd.f32 %v2758_v31, %v6909_v6  ;;  %v7256_v62 = vadd.f32 %v2754_v56, %v6911_v4  ;;  %v7258_v8 = vpop.permute.xlu2 %3097  ;;  %v2973_v6 = vmul.f32 %v6815_v19, %v6969_v0  ;;  %v7274_v4 = vld [vmem:[%s7907_s1 + $0x15] ss:$0 sm:$0xff]  ;;  %v3877_v31 = vld [vmem:[%s7909_s3 + $0x20] sm:$0xff]  ;;  %3944 = vmatpush.msra.mxu0 %v3878_v18  ;;  %v3499_v18 = vmul.f32 %v7129_v60, %v7040_v43 }
 0x7d4   :  { %v2819_v63 = vmul.f32 %v6821_v35, %v7274_v4  ;;  %v2820_v22 = vmul.f32 %v7035_v3, %v7274_v4  ;;  %4076 = vmatpush.msra.mxu3 %v3877_v31  ;;  %4075 = vmatpush.msra.mxu2 %v3877_v31 }
 0x7d5   :  { %8170 = vst [vmem:[#allocation11_spill] sm:$0xff] %v7253_v20  ;;  %v3039_v5 = vrot.slane %v2973_v6, 1  ;;  %v3558_v6 = vrot.slane %v3489_v34, 2  ;;  %4074 = vmatpush.msra.mxu1 %v3877_v31  ;;  %3945 = vmatpush.msra.mxu0 %v3877_v31  ;;  %v2991_v20 = vmul.f32 %v7265_v12, %v6969_v0 }
 0x7d6   :  { %4079 = vmatpush.msra.mxu3 %v3876_v57  ;;  %4078 = vmatpush.msra.mxu2 %v3876_v57 }
 0x7d7   :  { %v3560_v21 = vsel %vm876_vm1, %v3558_v6, %v3559_v23  ;;  %v2844_v6 = vmul.f32 %v6976_v55, %v7274_v4  ;;  %v3873_v23 = vld [vmem:[%s7909_s3] sm:$0xff]  ;;  %4077 = vmatpush.msra.mxu1 %v3876_v57  ;;  %3946 = vmatpush.msra.mxu0 %v3876_v57  ;;  %v7393_v57 = vld [vmem:[%s7907_s1 + $0x18] ss:$0 sm:$0xff] }
 0x7d8   :  { %2783 = vrot.lane.b32.xlu0 %v2736_v41, %s4271_s12  ;;  %3291 = vrot.lane.b32.xlu1 %v3259_v37, %s4271_s12  ;;  %v2883_v41 = vrot.slane %v2819_v63, 1  ;;  %v3548_v37 = vsel %vm876_vm1, %v3546_v7, %v3547_v40 }
 0x7d9   :  { %2775 = vrot.lane.b32.xlu2 %v2732_v52, %s4271_s12  ;;  %v2884_v52 = vrot.slane %v2820_v22, 1  ;;  %v7339_v22 = vld [vmem:[%s7906_s0 + $0x88] sm:$0x3]  ;;  %v2920_v49 = vrot.slane %v2844_v6, 1 }
 0x7da   :  { %v2764_v35 = vpop.permute.xlu0 %2763  ;;  %v2760_v3 = vpop.permute.xlu1 %2759  ;;  %v2982_v34 = vmul.f32 %v7339_v22, %v6969_v0 }
 0x7db   :  { %v7312_v56 = vadd.f32 %v2764_v35, %v6920_v28  ;;  %v7315_v30 = vadd.f32 %v2760_v3, %v6923_v53  ;;  %v7317_v48 = vpop.permute.xlu2 %3287  ;;  %v3507_v28 = vmul.f32 %v7122_v2, %v7040_v43  ;;  %v3041_v53 = vsel %vm365_vm0, %v3039_v5, %v3040_v51  ;;  %v7351_v35 = vld [vmem:[%s7906_s0 + $0xe8] sm:$0x3]  ;;  %v3875_v5 = vld [vmem:[%s7909_s3 + $0x10] sm:$0xff] }
 0x7dc   :  { %v2885_v63 = vsel %vm365_vm0, %v2883_v41, %v2884_v52  ;;  %v3500_v3 = vmul.f32 %v7351_v35, %v7040_v43  ;;  %v3874_v51 = vld [vmem:[%s7909_s3 + $0x8] sm:$0xff]  ;;  %4082 = vmatpush.msra.mxu3 %v3875_v5  ;;  %v2843_v52 = vmul.f32 %v6865_v50, %v7274_v4  ;;  %4081 = vmatpush.msra.mxu2 %v3875_v5 }
 0x7dd   :  { %8171 = vst [vmem:[#allocation39_spill] sm:$0xff] %v7315_v30  ;;  %v2947_v31 = vadd.f32 %v2885_v63, %v7256_v62  ;;  %v3585_v41 = vrot.slane %v3507_v28, 2  ;;  %v3051_v30 = vrot.slane %v2981_v32, 1  ;;  %v3052_v62 = vrot.slane %v2982_v34, 1  ;;  %4080 = vmatpush.msra.mxu1 %v3875_v5  ;;  %3947 = vmatpush.msra.mxu0 %v3875_v5 }
 0x7de   :  { %4085 = vmatpush.msra.mxu3 %v3874_v51  ;;  %v3573_v63 = vrot.slane %v3499_v18, 2  ;;  %v3574_v33 = vrot.slane %v3500_v3, 2  ;;  %v2919_v24 = vrot.slane %v2843_v52, 1  ;;  %v3663_v32 = vmul.f32 %v6713_v45, %v7089_v42  ;;  %4084 = vmatpush.msra.mxu2 %v3874_v51 }
 0x7df   :  { %4083 = vmatpush.msra.mxu1 %v3874_v51  ;;  %v3053_v18 = vsel %vm365_vm0, %v3051_v30, %v3052_v62  ;;  %v3664_v3 = vmul.f32 %v7139_v14, %v7089_v42  ;;  %v3671_v45 = vmul.f32 %v6742_v44, %v7089_v42  ;;  %v3672_v30 = vmul.f32 %v7159_v46, %v7089_v42 }
 0x7e0   :  { %3085 = vrot.lane.b32.xlu0 %v3041_v53, %s4270_s7  ;;  %3593 = vrot.lane.b32.xlu1 %v3548_v37, %s4270_s7  ;;  %v3066_v5 = vrot.slane %v2991_v20, 1  ;;  %v3728_v6 = vrot.slane %v3663_v32, 2  ;;  %v3353_v44 = vmul.f32 %v6865_v50, %v7393_v57  ;;  %v3164_v50 = vmul.f32 %v7339_v22, %v6998_v61 }
 0x7e1   :  { %3601 = vrot.lane.b32.xlu2 %v3560_v21, %s4270_s7  ;;  %v3586_v21 = vrot.slane %v3508_v1, 2  ;;  %4088 = vmatpush.msra.mxu3 %v3873_v23  ;;  %v3729_v62 = vrot.slane %v3664_v3, 2  ;;  %v3741_v20 = vrot.slane %v3672_v30, 2 }
 0x7e2   :  { %v7362_v7 = vpop.permute.xlu0 %2769  ;;  %v2766_v40 = vpop.permute.xlu1 %2765  ;;  %4087 = vmatpush.msra.mxu2 %v3873_v23  ;;  %4086 = vmatpush.msra.mxu1 %v3873_v23 }
 0x7e3   :  { %v7373_v53 = vadd.f32 %v2766_v40, %v6933_v54  ;;  %v3082_v37 = vpop.permute.xlu2 %3081  ;;  %v7382_v54 = vld [vmem:[%s7906_s0 + $0xf8] sm:$0x3]  ;;  %v3587_v34 = vsel %vm876_vm1, %v3585_v41, %v3586_v21  ;;  %v3575_v40 = vsel %vm876_vm1, %v3573_v63, %v3574_v33  ;;  %v2921_v41 = vsel %vm365_vm0, %v2919_v24, %v2920_v49  ;;  %3948 = vmatpush.msra.mxu0 %v3874_v51 }
 0x7e4   :  { %v7375_v28 = vadd.f32 %v3082_v37, %v2947_v31  ;;  %v2992_v1 = vmul.f32 %v7382_v54, %v6969_v0  ;;  %v3354_v37 = vmul.f32 %v6976_v55, %v7393_v57  ;;  %v7414_v49 = vld [vmem:[%s7906_s0 + $0x138] sm:$0x3]  ;;  %v3740_v24 = vrot.slane %v3671_v45, 2 }
 0x7e5   :  { %3949 = vmatpush.msra.mxu0 %v3873_v23  ;;  %v2999_v55 = vmul.f32 %v6969_v0, %v6767_v59  ;;  %v3730_v23 = vsel %vm876_vm1, %v3728_v6, %v3729_v62  ;;  %v3156_v59 = vmul.f32 %v7282_v38, %v6998_v61 }
 0x7e6   :  { %v3067_v52 = vrot.slane %v2992_v1, 1  ;;  %v3000_v1 = vmul.f32 %v6969_v0, %v7414_v49  ;;  %v3742_v3 = vsel %vm876_vm1, %v3740_v24, %v3741_v20  ;;  %v3173_v24 = vmul.f32 %v7265_v12, %v6998_v61 }
 0x7e7   :  { %v3222_v62 = vrot.slane %v3156_v59, 1 }
 0x7e8   :  { %3619 = vrot.lane.b32.xlu0 %v3587_v34, %s4270_s7  ;;  %3093 = vrot.lane.b32.xlu1 %v3053_v18, %s4270_s7  ;;  %v3068_v51 = vsel %vm365_vm0, %v3066_v5, %v3067_v52  ;;  %v3429_v34 = vrot.slane %v3353_v44, 2  ;;  %v3430_v18 = vrot.slane %v3354_v37, 2  ;;  %v3079_v44 = vrot.slane %v3000_v1, 1 }
 0x7e9   :  { %3611 = vrot.lane.b32.xlu2 %v3575_v40, %s4270_s7  ;;  %v3155_v40 = vmul.f32 %v6815_v19, %v6998_v61  ;;  %v3690_v1 = vmul.f32 %v7328_v26, %v7089_v42 }
 0x7ea   :  { %v2778_v31 = vpop.permute.xlu1 %2777  ;;  %v3106_v14 = vpop.permute.xlu0 %3105  ;;  %v3431_v5 = vsel %vm876_vm1, %v3429_v34, %v3430_v18  ;;  %v2836_v18 = vmul.f32 %v6989_v29, %v7274_v4 }
 0x7eb   :  { %v2813_v33 = vadd.f32 %v2778_v31, %v6947_v39  ;;  %v3616_v21 = vpop.permute.xlu2 %3615  ;;  %v3163_v39 = vmul.f32 %v6848_v17, %v6998_v61  ;;  %v3221_v37 = vrot.slane %v3155_v40, 1 }
 0x7ed   :  { %v2959_v63 = vadd.f32 %v2921_v41, %v2813_v33  ;;  %v3233_v41 = vrot.slane %v3163_v39, 1  ;;  %v3078_v33 = vrot.slane %v2999_v55, 1  ;;  %v3689_v55 = vmul.f32 %v7122_v2, %v7089_v42  ;;  %v7472_v2 = vld [vmem:[%s7908_s2] ss:$0 sm:$0xff] }
 0x7ef   :  { %v3141_v32 = vadd.f32 %v3106_v14, %v2959_v63  ;;  %v3234_v14 = vrot.slane %v3164_v50, 1  ;;  %v3080_v39 = vsel %vm365_vm0, %v3078_v33, %v3079_v44  ;;  %v3223_v50 = vsel %vm365_vm0, %v3221_v37, %v3222_v62 }
 0x7f0   :  { %3103 = vrot.lane.b32.xlu0 %v3068_v51, %s4270_s7  ;;  %3775 = vrot.lane.b32.xlu1 %v3730_v23, %s4271_s12  ;;  %v3682_v51 = vmul.f32 %v7351_v35, %v7089_v42  ;;  %v3492_v33 = vmul.f32 %v7339_v22, %v7040_v43  ;;  %v2908_v37 = vrot.slane %v2836_v18, 1  ;;  %v4223_v18 = vld [vmem:[%s7906_s0 + $0x60] sm:$0xff] }
 0x7f1   :  { %3783 = vrot.lane.b32.xlu2 %v3742_v3, %s4271_s12  ;;  %v3323_v45 = vadd.f32 %v7317_v48, %v3141_v32  ;;  %v3174_v48 = vmul.f32 %v7382_v54, %v6998_v61  ;;  %v3235_v63 = vsel %vm365_vm0, %v3233_v41, %v3234_v14  ;;  %v3248_v32 = vrot.slane %v3173_v24, 1 }
 0x7f2   :  { %v7435_v30 = vpop.permute.xlu1 %3279  ;;  %v2772_v31 = vpop.permute.xlu0 %2771  ;;  %v3767_v14 = vrot.slane %v3689_v55, 2  ;;  %v3483_v24 = vmul.f32 %v6815_v19, %v7040_v43  ;;  %v3484_v19 = vmul.f32 %v7282_v38, %v7040_v43 }
 0x7f3   :  { %v7439_v52 = vadd.f32 %v2772_v31, %v6939_v27  ;;  %v7441_v6 = vpop.permute.xlu2 %3263  ;;  %v3469_v20 = vadd.f32 %v3431_v5, %v3323_v45  ;;  %v3681_v27 = vmul.f32 %v7129_v60, %v7089_v42  ;;  %v3249_v34 = vrot.slane %v3174_v48, 1 }
 0x7f4   :  { %v2835_v60 = vmul.f32 %v6842_v15, %v7274_v4  ;;  %v3756_v31 = vrot.slane %v3682_v51, 2  ;;  %v3768_v5 = vrot.slane %v3690_v1, 2  ;;  %v2809_v51 = vadd.f32 %v7362_v7, %v6930_v11 }
 0x7f5   :  { %v3651_v23 = vadd.f32 %v3616_v21, %v3469_v20  ;;  %v3755_v45 = vrot.slane %v3681_v27, 2  ;;  %v3250_v15 = vsel %vm365_vm0, %v3248_v32, %v3249_v34  ;;  %v3491_v21 = vmul.f32 %v6848_v17, %v7040_v43  ;;  %v7486_v20 = vld [vmem:[%s7906_s0 + $0x130] sm:$0xff] }
 0x7f6   :  { %v2907_v44 = vrot.slane %v2835_v60, 1  ;;  %v3181_v17 = vmul.f32 %v7486_v20, %v6998_v61  ;;  %v3769_v27 = vsel %vm876_vm1, %v3767_v14, %v3768_v5  ;;  %v3562_v34 = vrot.slane %v3492_v33, 2 }
 0x7f7   :  { %v3757_v48 = vsel %vm876_vm1, %v3755_v45, %v3756_v31  ;;  %v3561_v32 = vrot.slane %v3491_v21, 2  ;;  %v3549_v60 = vrot.slane %v3483_v24, 2  ;;  %v2828_v11 = vmul.f32 %v7024_v36, %v7274_v4  ;;  %v4224_v31 = vld [vmem:[%s7906_s0 + $0xc0] sm:$0xff]  ;;  %v7541_v24 = vld [vmem:[%s7906_s0 + $0x58] sm:$0x3] }
 0x7f8   :  { %3275 = vrot.lane.b32.xlu0 %v3235_v63, %s4271_s12  ;;  %3111 = vrot.lane.b32.xlu1 %v3080_v39, %s4270_s7  ;;  %v3182_v63 = vmul.f32 %v6998_v61, %v7414_v49  ;;  %v3346_v14 = vmul.f32 %v6989_v29, %v7393_v57  ;;  %v3501_v33 = vmul.f32 %v7265_v12, %v7040_v43 }
 0x7f9   :  { %3267 = vrot.lane.b32.xlu2 %v3223_v50, %s4271_s12  ;;  %v2909_v50 = vsel %vm365_vm0, %v2907_v44, %v2908_v37  ;;  %v3502_v44 = vmul.f32 %v7382_v54, %v7040_v43  ;;  %v7528_v37 = vld [vmem:[%s7906_s0 + $0x98] sm:$0x3] }
 0x7fa   :  { %v7465_v3 = vpop.permute.xlu1 %2779  ;;  %v7467_v40 = vpop.permute.xlu0 %3089  ;;  %v3261_v45 = vrot.slane %v3182_v63, 1  ;;  %v2955_v21 = vadd.f32 %v2909_v50, %v2809_v51  ;;  %v2896_v63 = vrot.slane %v2828_v11, 1  ;;  %v3418_v50 = vrot.slane %v3346_v14, 2 }
 0x7fb   :  { %v3798_v59 = vpop.permute.xlu2 %3797  ;;  %v3576_v11 = vrot.slane %v3501_v33, 2 }
 0x7fc   :  { %v3833_v41 = vadd.f32 %v3798_v59, %v3651_v23  ;;  %v2827_v23 = vmul.f32 %v4223_v18, %v7274_v4  ;;  %v3260_v59 = vrot.slane %v3181_v17, 1 }
 0x7fe   :  { %v3853_v62 = vadd.f32 %v7472_v2, %v3833_v41  ;;  %v3345_v41 = vmul.f32 %v4224_v31, %v7393_v57  ;;  %v2895_v17 = vrot.slane %v2827_v23, 1  ;;  %v3137_v23 = vadd.f32 %v7258_v8, %v2955_v21 }
 0x800   :  { %v3869_v39 = vmax.f32 %v3853_v62, 0.0  ;;  %3285 = vrot.lane.b32.xlu0 %v3250_v15, %s4271_s12  ;;  %3793 = vrot.lane.b32.xlu1 %v3757_v48, %s4271_s12  ;;  %v3550_v15 = vrot.slane %v3484_v19, 2  ;;  %v3563_v62 = vsel %vm876_vm1, %v3561_v32, %v3562_v34  ;;  %v2976_v48 = vmul.f32 %v7541_v24, %v6969_v0 }
 0x801   :  { %3801 = vrot.lane.b32.xlu2 %v3769_v27, %s4271_s12  ;;  %v7549_v27 = vld [vmem:[%s7906_s0 + $0x90] sm:$0xff]  ;;  %v3417_v51 = vrot.slane %v3345_v41, 2  ;;  %v2984_v34 = vmul.f32 %v6969_v0, %v7528_v37  ;;  %v3319_v14 = vadd.f32 %v7435_v30, %v3137_v23  ;;  %v3666_v23 = vmul.f32 %v7282_v38, %v7089_v42 }
 0x802   :  { %4061 = vmatmul.msk.f32.vlgmr.msra.gmra.mxu3 %vm3885_vm2, %v3869_v39  ;;  %v7502_v55 = vpop.permute.xlu1 %3607  ;;  %v7504_v1 = vpop.permute.xlu0 %3099  ;;  %v3262_v39 = vsel %vm365_vm0, %v3260_v59, %v3261_v45  ;;  %v2983_v19 = vmul.f32 %v7549_v27, %v6969_v0  ;;  %v3551_v32 = vsel %vm876_vm1, %v3549_v60, %v3550_v15  ;;  %v3043_v41 = vrot.slane %v2976_v48, 1 }
 0x803   :  { %v2774_v7 = vpop.permute.xlu2 %2773  ;;  %v2897_v60 = vsel %vm365_vm0, %v2895_v17, %v2896_v63  ;;  %v3337_v15 = vmul.f32 %v4223_v18, %v7393_v57  ;;  %v3419_v8 = vsel %vm876_vm1, %v3417_v51, %v3418_v50  ;;  %v3055_v33 = vrot.slane %v2984_v34, 1  ;;  %v7583_v17 = vld [vmem:[%s7906_s0 + $0x40] sm:$0xff] }
 0x804   :  { %v7519_v5 = vadd.f32 %v2774_v7, %v6914_v25  ;;  %v7534_v25 = vld [vmem:[%s7906_s0 + $0x50] sm:$0xff]  ;;  %v3577_v7 = vrot.slane %v3502_v44, 2  ;;  %v3054_v21 = vrot.slane %v2983_v19, 1  ;;  %v3674_v18 = vmul.f32 %v7339_v22, %v7089_v42 }
 0x805   :  { %v2975_v29 = vmul.f32 %v7534_v25, %v6969_v0  ;;  %v3338_v0 = vmul.f32 %v7024_v36, %v7393_v57  ;;  %v2951_v36 = vadd.f32 %v2897_v60, %v7217_v10  ;;  %v3665_v63 = vmul.f32 %v7583_v17, %v7089_v42 }
 0x806   :  { %v3578_v44 = vsel %vm876_vm1, %v3576_v11, %v3577_v7  ;;  %v3465_v19 = vadd.f32 %v3419_v8, %v3319_v14  ;;  %v3405_v51 = vrot.slane %v3337_v15, 2  ;;  %v3056_v34 = vsel %vm365_vm0, %v3054_v21, %v3055_v33 }
 0x807   :  { %v3042_v31 = vrot.slane %v2975_v29, 1  ;;  %v7572_v29 = vld [vmem:[%s7906_s0 + $0x80] sm:$0xff]  ;;  %v3406_v50 = vrot.slane %v3338_v0, 2  ;;  %v3133_v10 = vadd.f32 %v7467_v40, %v2951_v36  ;;  %v3744_v60 = vrot.slane %v3674_v18, 2 }
 0x808   :  { %3603 = vrot.lane.b32.xlu0 %v3563_v62, %s4270_s7  ;;  %3293 = vrot.lane.b32.xlu1 %v3262_v39, %s4271_s12  ;;  %v3673_v30 = vmul.f32 %v7572_v29, %v7089_v42  ;;  %v3509_v39 = vmul.f32 %v7486_v20, %v7040_v43  ;;  %v3647_v11 = vadd.f32 %v7502_v55, %v3465_v19  ;;  %v3731_v33 = vrot.slane %v3665_v63, 2 }
 0x809   :  { %3595 = vrot.lane.b32.xlu2 %v3551_v32, %s4270_s7  ;;  %v3044_v48 = vsel %vm365_vm0, %v3042_v31, %v3043_v41  ;;  %v3510_v32 = vmul.f32 %v7040_v43, %v7414_v49  ;;  %v3407_v40 = vsel %vm876_vm1, %v3405_v51, %v3406_v50  ;;  %v3683_v55 = vmul.f32 %v7265_v12, %v7089_v42 }
 0x80a   :  { %v7560_v59 = vpop.permute.xlu1 %3107  ;;  %v3272_v45 = vpop.permute.xlu0 %3271  ;;  %v3743_v14 = vrot.slane %v3673_v30, 2  ;;  %v3588_v8 = vrot.slane %v3509_v39, 2  ;;  %v4230_v30 = vld [vmem:[%s7906_s0 + $0x110] sm:$0xff]  ;;  %v3157_v12 = vmul.f32 %v7534_v25, %v6998_v61  ;;  %v3158_v50 = vmul.f32 %v7541_v24, %v6998_v61 }
 0x80b   :  { %v3600_v62 = vpop.permute.xlu2 %3599  ;;  %v3315_v7 = vadd.f32 %v3272_v45, %v3133_v10  ;;  %v3589_v21 = vrot.slane %v3510_v32, 2  ;;  %v3684_v45 = vmul.f32 %v7382_v54, %v7089_v42  ;;  %v2845_v18 = vmul.f32 %v4230_v30, %v7274_v4 }
 0x80c   :  { %v3745_v63 = vsel %vm876_vm1, %v3743_v14, %v3744_v60  ;;  %v3165_v10 = vmul.f32 %v7549_v27, %v6998_v61 }
 0x80d   :  { %v3461_v39 = vadd.f32 %v3407_v40, %v3315_v7  ;;  %v3590_v51 = vsel %vm876_vm1, %v3588_v8, %v3589_v21  ;;  %v2922_v7 = vrot.slane %v2845_v18, 1  ;;  %v3224_v8 = vrot.slane %v3157_v12, 1 }
 0x80e   :  { %v3225_v21 = vrot.slane %v3158_v50, 1  ;;  %v3355_v18 = vmul.f32 %v4230_v30, %v7393_v57  ;;  %v3486_v30 = vmul.f32 %v7541_v24, %v7040_v43 }
 0x80f   :  { %v3643_v14 = vadd.f32 %v3600_v62, %v3461_v39 }
 0x810   :  { %3613 = vrot.lane.b32.xlu0 %v3578_v44, %s4270_s7  ;;  %3087 = vrot.lane.b32.xlu1 %v3044_v48, %s4270_s7  ;;  %v3732_v44 = vrot.slane %v3666_v23, 2  ;;  %v2846_v48 = vmul.f32 %v7074_v9, %v7274_v4  ;;  %v3758_v23 = vrot.slane %v3683_v55, 2  ;;  %v3493_v55 = vmul.f32 %v7549_v27, %v7040_v43 }
 0x811   :  { %3095 = vrot.lane.b32.xlu2 %v3056_v34, %s4270_s7  ;;  %v3166_v34 = vmul.f32 %v6998_v61, %v7528_v37  ;;  %v2814_v61 = vadd.f32 %v7465_v3, %v6925_v47  ;;  %v3226_v39 = vsel %vm365_vm0, %v3224_v8, %v3225_v21  ;;  %v3691_v47 = vmul.f32 %v7486_v20, %v7089_v42 }
 0x812   :  { %v7599_v31 = vpop.permute.xlu0 %3281  ;;  %v3790_v41 = vpop.permute.xlu1 %3789  ;;  %v3733_v32 = vsel %vm876_vm1, %v3731_v33, %v3732_v44  ;;  %v3236_v44 = vrot.slane %v3165_v10, 1  ;;  %v3692_v3 = vmul.f32 %v7089_v42, %v7414_v49 }
 0x813   :  { %v3829_v15 = vadd.f32 %v3790_v41, %v3647_v11  ;;  %v7602_v0 = vpop.permute.xlu2 %3609  ;;  %v3759_v11 = vrot.slane %v3684_v45, 2  ;;  %v2923_v41 = vrot.slane %v2846_v48, 1  ;;  %v3356_v48 = vmul.f32 %v7074_v9, %v7393_v57 }
 0x814   :  { %v3485_v9 = vmul.f32 %v7534_v25, %v7040_v43  ;;  %v3771_v8 = vrot.slane %v3692_v3, 2 }
 0x815   :  { %v3849_v36 = vadd.f32 %v7472_v2, %v3829_v15  ;;  %v2924_v45 = vsel %vm365_vm0, %v2922_v7, %v2923_v41 }
 0x816   :  { %v2960_v50 = vadd.f32 %v2924_v45, %v2814_v61  ;;  %v3553_v61 = vrot.slane %v3486_v30, 2 }
 0x817   :  { %v3865_v19 = vmax.f32 %v3849_v36, 0.0  ;;  %v3237_v36 = vrot.slane %v3166_v34, 1  ;;  %v3564_v34 = vrot.slane %v3493_v55, 2  ;;  %v3675_v55 = vmul.f32 %v7549_v27, %v7089_v42 }
 0x818   :  { %3785 = vrot.lane.b32.xlu0 %v3745_v63, %s4271_s12  ;;  %3621 = vrot.lane.b32.xlu1 %v3590_v51, %s4270_s7  ;;  %v3760_v63 = vsel %vm876_vm1, %v3758_v23, %v3759_v11  ;;  %v3432_v23 = vrot.slane %v3355_v18, 2  ;;  %v3433_v11 = vrot.slane %v3356_v48, 2  ;;  %v3142_v7 = vadd.f32 %v7560_v59, %v2960_v50 }
 0x819   :  { %3777 = vrot.lane.b32.xlu2 %v3733_v32, %s4271_s12  ;;  %4057 = vmatmul.msk.f32.vlgmr.msra.gmra.mxu2 %vm3885_vm2, %v3865_v19  ;;  %v3494_v19 = vmul.f32 %v7040_v43, %v7528_v37  ;;  %v3238_v12 = vsel %vm365_vm0, %v3236_v44, %v3237_v36  ;;  %v4231_v43 = vld [vmem:[%s7906_s0 + $0x20] sm:$0xff]  ;;  %v3552_v36 = vrot.slane %v3485_v9, 2  ;;  %v3667_v18 = vmul.f32 %v7534_v25, %v7089_v42  ;;  %v4234_v9 = vld [vmem:[%s7906_s0 + $0xd8] sm:$0x3] }
 0x81a   :  { %v7630_v60 = vpop.permute.xlu0 %2781  ;;  %v3290_v40 = vpop.permute.xlu1 %3289  ;;  %v3329_v21 = vmul.f32 %v4231_v43, %v7393_v57  ;;  %v3668_v48 = vmul.f32 %v7541_v24, %v7089_v42  ;;  %v2838_v30 = vmul.f32 %v4234_v9, %v7274_v4 }
 0x81b   :  { %v3782_v15 = vpop.permute.xlu2 %3781  ;;  %v3324_v59 = vadd.f32 %v3290_v40, %v3142_v7  ;;  %v3554_v40 = vsel %vm876_vm1, %v3552_v36, %v3553_v61  ;;  %v3734_v7 = vrot.slane %v3667_v18, 2 }
 0x81c   :  { %v3825_v33 = vadd.f32 %v3782_v15, %v3643_v14  ;;  %v3565_v14 = vrot.slane %v3494_v19, 2  ;;  %v3770_v15 = vrot.slane %v3691_v47, 2  ;;  %v3676_v47 = vmul.f32 %v7089_v42, %v7528_v37 }
 0x81d   :  { %v3311_v42 = vadd.f32 %v7441_v6, %v7375_v28 }
 0x81e   :  { %v3845_v62 = vadd.f32 %v7472_v2, %v3825_v33  ;;  %v4232_v33 = vld [vmem:[%s7906_s0 + $0x28] sm:$0x3]  ;;  %v3566_v45 = vsel %vm876_vm1, %v3564_v34, %v3565_v14  ;;  %v3735_v14 = vrot.slane %v3668_v48, 2  ;;  %v3747_v43 = vrot.slane %v3676_v47, 2 }
 0x81f   :  { %v3330_v44 = vmul.f32 %v4232_v33, %v7393_v57 }
 0x820   :  { %v3861_v51 = vmax.f32 %v3845_v62, 0.0  ;;  %3795 = vrot.lane.b32.xlu0 %v3760_v63, %s4271_s12  ;;  %3269 = vrot.lane.b32.xlu1 %v3226_v39, %s4271_s12  ;;  %v3434_v63 = vsel %vm876_vm1, %v3432_v23, %v3433_v11  ;;  %v3772_v62 = vsel %vm876_vm1, %v3770_v15, %v3771_v8  ;;  %v3393_v39 = vrot.slane %v3329_v21, 2 }
 0x821   :  { %3277 = vrot.lane.b32.xlu2 %v3238_v12, %s4271_s12  ;;  %v3394_v19 = vrot.slane %v3330_v44, 2  ;;  %v3470_v3 = vadd.f32 %v3434_v63, %v3324_v59  ;;  %v3746_v8 = vrot.slane %v3675_v55, 2  ;;  %v2911_v44 = vrot.slane %v2838_v30, 1 }
 0x822   :  { %4053 = vmatmul.msk.f32.vlgmr.msra.gmra.mxu1 %vm3885_vm2, %v3861_v51  ;;  %v7658_v32 = vpop.permute.xlu0 %3083  ;;  %v3592_v10 = vpop.permute.xlu1 %3591  ;;  %v4233_v51 = vld [vmem:[%s7906_s0 + $0xd0] sm:$0xff]  ;;  %v3736_v59 = vsel %vm876_vm1, %v3734_v7, %v3735_v14 }
 0x823   :  { %v7661_v41 = vpop.permute.xlu2 %3265  ;;  %v2837_v12 = vmul.f32 %v4233_v51, %v7274_v4  ;;  %v3395_v15 = vsel %vm876_vm1, %v3393_v39, %v3394_v19  ;;  %v3748_v63 = vsel %vm876_vm1, %v3746_v8, %v3747_v43  ;;  %v3347_v55 = vmul.f32 %v4233_v51, %v7393_v57  ;;  %v4235_v39 = vld [vmem:[%s7906_s0 + $0x70] sm:$0xff] }
 0x824   :  { %v3457_v36 = vadd.f32 %v3395_v15, %v3311_v42  ;;  %v2829_v19 = vmul.f32 %v4235_v39, %v7274_v4  ;;  %v3340_v43 = vmul.f32 %v7159_v46, %v7393_v57 }
 0x825   :  { %v2910_v33 = vrot.slane %v2837_v12, 1 }
 0x826   :  { %v3639_v28 = vadd.f32 %v3592_v10, %v3457_v36  ;;  %v2830_v10 = vmul.f32 %v7159_v46, %v7274_v4  ;;  %v2898_v42 = vrot.slane %v2829_v19, 1  ;;  %v3409_v36 = vrot.slane %v3340_v43, 2  ;;  %v4237_v19 = vld [vmem:[%s7906_s0 + $0x30] sm:$0xff] }
 0x827   :  { %v3358_v43 = vmul.f32 %v7328_v26, %v7393_v57 }
 0x828   :  { %3605 = vrot.lane.b32.xlu0 %v3566_v45, %s4270_s7  ;;  %3803 = vrot.lane.b32.xlu1 %v3772_v62, %s4271_s12  ;;  %v2912_v45 = vsel %vm365_vm0, %v2910_v33, %v2911_v44  ;;  %v3348_v62 = vmul.f32 %v4234_v9, %v7393_v57  ;;  %v3420_v9 = vrot.slane %v3347_v55, 2 }
 0x829   :  { %3597 = vrot.lane.b32.xlu2 %v3554_v40, %s4270_s7  ;;  %v2956_v51 = vadd.f32 %v2912_v45, %v7439_v52  ;;  %v3339_v52 = vmul.f32 %v4235_v39, %v7393_v57  ;;  %v2714_v39 = vadd.f32 %v7237_v16, %v6788_v58 }
 0x82a   :  { %v3618_v50 = vpop.permute.xlu0 %3617  ;;  %v3092_v34 = vpop.permute.xlu1 %3091  ;;  %v3421_v30 = vrot.slane %v3348_v62, 2 }
 0x82b   :  { %v3652_v23 = vadd.f32 %v3618_v50, %v3470_v3  ;;  %v3800_v11 = vpop.permute.xlu2 %3799  ;;  %v3138_v50 = vadd.f32 %v7504_v1, %v2956_v51  ;;  %v3408_v44 = vrot.slane %v3339_v52, 2 }
 0x82c   :  { %v3422_v14 = vsel %vm876_vm1, %v3420_v9, %v3421_v30 }
 0x82d   :  { %v3834_v21 = vadd.f32 %v3800_v11, %v3652_v23  ;;  %v2899_v23 = vrot.slane %v2830_v10, 1  ;;  %v3320_v7 = vadd.f32 %v7599_v31, %v3138_v50  ;;  %v2821_v10 = vmul.f32 %v4237_v19, %v7274_v4 }
 0x82f   :  { %v3854_v61 = vadd.f32 %v7472_v2, %v3834_v21  ;;  %v2900_v8 = vsel %vm365_vm0, %v2898_v42, %v2899_v23  ;;  %v3466_v1 = vadd.f32 %v3422_v14, %v3320_v7  ;;  %v8172_v23 = vld [vmem:[#allocation7_spill] sm:$0xff]  ;;  %v2886_v7 = vrot.slane %v2821_v10, 1 }
 0x830   :  { %3779 = vrot.lane.b32.xlu1 %v3736_v59, %s4271_s12  ;;  %v2952_v33 = vadd.f32 %v2900_v8, %v7312_v56  ;;  %v4236_v56 = vld [vmem:[%s7906_s0 + $0x120] sm:$0xff] }
 0x831   :  { %v3870_v6 = vmax.f32 %v3854_v61, 0.0  ;;  %3787 = vrot.lane.b32.xlu2 %v3748_v63, %s4271_s12  ;;  %v3648_v61 = vadd.f32 %v7602_v0, %v3466_v1  ;;  %v2847_v62 = vmul.f32 %v4236_v56, %v7274_v4  ;;  %v2848_v0 = vmul.f32 %v7328_v26, %v7274_v4 }
 0x832   :  { %v7705_v18 = vpop.permute.xlu0 %3101  ;;  %v3774_v48 = vpop.permute.xlu1 %3773  ;;  %v3134_v31 = vadd.f32 %v3092_v34, %v2952_v33  ;;  %v3357_v52 = vmul.f32 %v4236_v56, %v7393_v57 }
 0x833   :  { %v3821_v40 = vadd.f32 %v3774_v48, %v3639_v28  ;;  %v2776_v47 = vpop.permute.xlu2 %2775  ;;  %4062 = vmatmul.msk.f32.gmra.mxu3 %vm3885_vm2, %v3870_v6  ;;  %v3410_v6 = vsel %vm876_vm1, %v3408_v44, %v3409_v36  ;;  %v2925_v51 = vrot.slane %v2847_v62, 1 }
 0x834   :  { %v7715_v3 = vadd.f32 %v2776_v47, %v6936_v13 }
 0x835   :  { %v3841_v12 = vadd.f32 %v7472_v2, %v3821_v40  ;;  %v4238_v40 = vld [vmem:[%s7906_s0 + $0x38] sm:$0x3] }
 0x836   :  { %v2822_v47 = vmul.f32 %v4238_v40, %v7274_v4 }
 0x837   :  { %v3857_v11 = vmax.f32 %v3841_v12, 0.0  ;;  %v2926_v12 = vrot.slane %v2848_v0, 1 }
 0x838   :  { %v2887_v14 = vrot.slane %v2822_v47, 1 }
 0x839   :  { %4049 = vmatmul.msk.f32.vlgmr.msra.gmra.mxu0 %vm3885_vm2, %v3857_v11  ;;  %v2815_v11 = vadd.f32 %v7630_v60, %v8172_v23  ;;  %v3435_v60 = vrot.slane %v3357_v52, 2 }
 0x83a   :  { %v3274_v15 = vpop.permute.xlu0 %3273  ;;  %v3110_v13 = vpop.permute.xlu1 %3109  ;;  %v2888_v33 = vsel %vm365_vm0, %v2886_v7, %v2887_v14 }
 0x83b   :  { %v3602_v21 = vpop.permute.xlu2 %3601  ;;  %v3316_v59 = vadd.f32 %v3274_v15, %v3134_v31  ;;  %v2927_v15 = vsel %vm365_vm0, %v2925_v51, %v2926_v12  ;;  %v3436_v31 = vrot.slane %v3358_v43, 2  ;;  %v2824_v51 = vmul.f32 %v7282_v38, %v7274_v4 }
 0x83c   :  { %v2961_v1 = vadd.f32 %v2927_v15, %v2815_v11 }
 0x83d   :  { %v3462_v34 = vadd.f32 %v3410_v6, %v3316_v59  ;;  %v3332_v6 = vmul.f32 %v4238_v40, %v7393_v57  ;;  %v3437_v26 = vsel %vm876_vm1, %v3435_v60, %v3436_v31  ;;  %v2890_v11 = vrot.slane %v2824_v51, 1 }
 0x83f   :  { %v3644_v9 = vadd.f32 %v3602_v21, %v3462_v34  ;;  %v3397_v34 = vrot.slane %v3332_v6, 2 }
 0x842   :  { %v7729_v63 = vpop.permute.xlu0 %3283  ;;  %v3792_v28 = vpop.permute.xlu1 %3791 }
 0x843   :  { %v3830_v45 = vadd.f32 %v3792_v28, %v3648_v61  ;;  %v7732_v55 = vpop.permute.xlu2 %3611  ;;  %v3143_v61 = vadd.f32 %v3110_v13, %v2961_v1  ;;  %v3331_v28 = vmul.f32 %v4237_v19, %v7393_v57  ;;  %v2840_v19 = vmul.f32 %v7351_v35, %v7274_v4 }
 0x845   :  { %v3850_v46 = vadd.f32 %v7472_v2, %v3830_v45  ;;  %v8173_v45 = vld [vmem:[#allocation17_spill] sm:$0xff]  ;;  %v3396_v0 = vrot.slane %v3331_v28, 2  ;;  %v3334_v28 = vmul.f32 %v7282_v38, %v7393_v57 }
 0x847   :  { %v3866_v48 = vmax.f32 %v3850_v46, 0.0  ;;  %v2948_v46 = vadd.f32 %v2888_v33, %v8173_v45  ;;  %v8174_v45 = vld [vmem:[#allocation11_spill] sm:$0xff] }
 0x849   :  { %4058 = vmatmul.msk.f32.gmra.mxu2 %vm3885_vm2, %v3866_v48  ;;  %v3130_v62 = vadd.f32 %v7658_v32, %v2948_v46  ;;  %v2823_v32 = vmul.f32 %v7583_v17, %v7274_v4 }
 0x84a   :  { %v2784_v30 = vpop.permute.xlu0 %2783  ;;  %v3292_v50 = vpop.permute.xlu1 %3291 }
 0x84b   :  { %v7752_v58 = vadd.f32 %v2784_v30, %v2714_v39  ;;  %v3784_v16 = vpop.permute.xlu2 %3783  ;;  %v3325_v56 = vadd.f32 %v3292_v50, %v3143_v61  ;;  %v4239_v39 = vld [vmem:[%s7906_s0 + $0xe0] sm:$0xff]  ;;  %v3312_v47 = vadd.f32 %v7661_v41, %v3130_v62  ;;  %v3398_v30 = vsel %vm876_vm1, %v3396_v0, %v3397_v34 }
 0x84c   :  { %v3826_v42 = vadd.f32 %v3784_v16, %v3644_v9  ;;  %v2839_v13 = vmul.f32 %v4239_v39, %v7274_v4  ;;  %v2889_v23 = vrot.slane %v2823_v32, 1  ;;  %v3349_v52 = vmul.f32 %v4239_v39, %v7393_v57 }
 0x84d   :  { %v3471_v48 = vadd.f32 %v3437_v26, %v3325_v56  ;;  %v3458_v7 = vadd.f32 %v3398_v30, %v3312_v47  ;;  %v3350_v4 = vmul.f32 %v7351_v35, %v7393_v57  ;;  %v3333_v61 = vmul.f32 %v7583_v17, %v7393_v57 }
 0x84e   :  { %v3846_v8 = vadd.f32 %v7472_v2, %v3826_v42  ;;  %v2913_v16 = vrot.slane %v2839_v13, 1  ;;  %v2914_v42 = vrot.slane %v2840_v19, 1  ;;  %v2891_v1 = vsel %vm365_vm0, %v2889_v23, %v2890_v11 }
 0x84f   :  { %v3423_v35 = vrot.slane %v3349_v52, 2  ;;  %v3424_v6 = vrot.slane %v3350_v4, 2  ;;  %v2949_v46 = vadd.f32 %v2891_v1, %v8174_v45  ;;  %v3399_v34 = vrot.slane %v3333_v61, 2  ;;  %v7835_v45 = vld [vmem:[%s7910_s4] ss:$0 sm:$0xff] }
 0x850   :  { %v3862_v21 = vmax.f32 %v3846_v8, 0.0  ;;  %v2915_v8 = vsel %vm365_vm0, %v2913_v16, %v2914_v42  ;;  %v3342_v1 = vmul.f32 %v7339_v22, %v7393_v57 }
 0x851   :  { %v2957_v31 = vadd.f32 %v2915_v8, %v7519_v5  ;;  %v3400_v5 = vrot.slane %v3334_v28, 2 }
 0x852   :  { %4054 = vmatmul.msk.f32.gmra.mxu1 %vm3885_vm2, %v3862_v21  ;;  %v3086_v44 = vpop.permute.xlu0 %3085  ;;  %v3594_v36 = vpop.permute.xlu1 %3593  ;;  %v3412_v61 = vrot.slane %v3342_v1, 2 }
 0x853   :  { %v3268_v59 = vpop.permute.xlu2 %3267  ;;  %v3640_v15 = vadd.f32 %v3594_v36, %v3458_v7  ;;  %v3139_v56 = vadd.f32 %v7705_v18, %v2957_v31  ;;  %v3131_v62 = vadd.f32 %v3086_v44, %v2949_v46 }
 0x855   :  { %v3321_v0 = vadd.f32 %v7729_v63, %v3139_v56  ;;  %v3313_v13 = vadd.f32 %v3268_v59, %v3131_v62 }
 0x85a   :  { %v3620_v10 = vpop.permute.xlu0 %3619  ;;  %v7774_v40 = vpop.permute.xlu1 %3093 }
 0x85b   :  { %v3653_v12 = vadd.f32 %v3620_v10, %v3471_v48  ;;  %v3802_v9 = vpop.permute.xlu2 %3801  ;;  %v3425_v48 = vsel %vm876_vm1, %v3423_v35, %v3424_v6  ;;  %v3401_v10 = vsel %vm876_vm1, %v3399_v34, %v3400_v5 }
 0x85c   :  { %v3467_v19 = vadd.f32 %v3425_v48, %v3321_v0  ;;  %v3459_v18 = vadd.f32 %v3401_v10, %v3313_v13 }
 0x85d   :  { %v3835_v50 = vadd.f32 %v3802_v9, %v3653_v12  ;;  %v4240_v9 = vld [vmem:[%s7907_s1 + $0x15] ss:$0 sm:$0xff] }
 0x85e   :  { %v3649_v44 = vadd.f32 %v7732_v55, %v3467_v19  ;;  %v2831_v30 = vmul.f32 %v4240_v9, %v7572_v29  ;;  %v2842_v52 = vmul.f32 %v4240_v9, %v7382_v54  ;;  %v2833_v0 = vmul.f32 %v4240_v9, %v7549_v27 }
 0x85f   :  { %v3855_v14 = vadd.f32 %v7472_v2, %v3835_v50  ;;  %v2832_v50 = vmul.f32 %v4240_v9, %v7339_v22  ;;  %v2849_v22 = vmul.f32 %v4240_v9, %v7486_v20  ;;  %v2834_v34 = vmul.f32 %v4240_v9, %v7528_v37 }
 0x860   :  { %v2901_v55 = vrot.slane %v2831_v30, 1  ;;  %v2917_v31 = vrot.slane %v2842_v52, 1  ;;  %v2904_v30 = vrot.slane %v2833_v0, 1 }
 0x861   :  { %v3871_v41 = vmax.f32 %v3855_v14, 0.0  ;;  %v2902_v11 = vrot.slane %v2832_v50, 1  ;;  %v2905_v50 = vrot.slane %v2834_v34, 1 }
 0x862   :  { %v7787_v43 = vpop.permute.xlu0 %3103  ;;  %v3776_v21 = vpop.permute.xlu1 %3775 }
 0x863   :  { %v3822_v33 = vadd.f32 %v3776_v21, %v3640_v15  ;;  %v3596_v60 = vpop.permute.xlu2 %3595  ;;  %4063 = vmatmul.msk.f32.gmra.mxu3 %vm3885_vm2, %v3871_v41  ;;  %v4241_v41 = vld [vmem:[%s7906_s0 + $0xf0] sm:$0xff]  ;;  %v2903_v4 = vsel %vm365_vm0, %v2901_v55, %v2902_v11  ;;  %v3341_v21 = vmul.f32 %v7572_v29, %v7393_v57  ;;  %v3359_v11 = vmul.f32 %v7486_v20, %v7393_v57 }
 0x864   :  { %v3641_v47 = vadd.f32 %v3596_v60, %v3459_v18  ;;  %v2841_v8 = vmul.f32 %v4241_v41, %v4240_v9 }
 0x865   :  { %v3842_v36 = vadd.f32 %v7472_v2, %v3822_v33  ;;  %v2953_v33 = vadd.f32 %v2903_v4, %v7373_v53  ;;  %v2850_v53 = vmul.f32 %v4240_v9, %v7414_v49  ;;  %v3438_v20 = vrot.slane %v3359_v11, 2 }
 0x866   :  { %v2916_v60 = vrot.slane %v2841_v8, 1  ;;  %v3344_v8 = vmul.f32 %v7393_v57, %v7528_v37  ;;  %v3335_v37 = vmul.f32 %v7534_v25, %v7393_v57 }
 0x867   :  { %v3858_v26 = vmax.f32 %v3842_v36, 0.0  ;;  %v3411_v36 = vrot.slane %v3341_v21, 2  ;;  %v3135_v28 = vadd.f32 %v7774_v40, %v2953_v33  ;;  %v3352_v40 = vmul.f32 %v7382_v54, %v7393_v57  ;;  %v8175_v33 = vld [vmem:[#allocation28_spill] sm:$0xff] }
 0x868   :  { %v2918_v29 = vsel %vm365_vm0, %v2916_v60, %v2917_v31  ;;  %v2929_v10 = vrot.slane %v2850_v53, 1  ;;  %v2825_v54 = vmul.f32 %v4240_v9, %v7534_v25  ;;  %v3402_v0 = vrot.slane %v3335_v37, 2 }
 0x869   :  { %4050 = vmatmul.msk.f32.gmra.mxu0 %vm3885_vm2, %v3858_v26  ;;  %v3413_v56 = vsel %vm876_vm1, %v3411_v36, %v3412_v61  ;;  %v3351_v26 = vmul.f32 %v4241_v41, %v7393_v57  ;;  %v2958_v48 = vadd.f32 %v2918_v29, %v7715_v3  ;;  %v2906_v41 = vsel %vm365_vm0, %v2904_v30, %v2905_v50 }
 0x86a   :  { %v3276_v17 = vpop.permute.xlu0 %3275  ;;  %v7802_v39 = vpop.permute.xlu1 %3111  ;;  %v2954_v60 = vadd.f32 %v2906_v41, %v8175_v33 }
 0x86b   :  { %v7804_v38 = vpop.permute.xlu2 %3095  ;;  %v3317_v46 = vadd.f32 %v3276_v17, %v3135_v28  ;;  %v2928_v17 = vrot.slane %v2849_v22, 1  ;;  %v3426_v18 = vrot.slane %v3351_v26, 2  ;;  %v8176_v26 = vld [vmem:[#allocation39_spill] sm:$0xff] }
 0x86d   :  { %v3463_v13 = vadd.f32 %v3413_v56, %v3317_v46  ;;  %v3415_v46 = vrot.slane %v3344_v8, 2 }
 0x872   :  { %v3286_v63 = vpop.permute.xlu0 %3285  ;;  %v3794_v32 = vpop.permute.xlu1 %3793 }
 0x873   :  { %v3831_v51 = vadd.f32 %v3794_v32, %v3649_v44  ;;  %v3778_v12 = vpop.permute.xlu2 %3777  ;;  %v3427_v44 = vrot.slane %v3352_v40, 2  ;;  %v3140_v32 = vadd.f32 %v7787_v43, %v2958_v48  ;;  %v3360_v43 = vmul.f32 %v7393_v57, %v7414_v49 }
 0x874   :  { %v3823_v59 = vadd.f32 %v3778_v12, %v3641_v47  ;;  %v2826_v12 = vmul.f32 %v4240_v9, %v7541_v24 }
 0x875   :  { %v3851_v16 = vadd.f32 %v7472_v2, %v3831_v51  ;;  %v3322_v3 = vadd.f32 %v3286_v63, %v3140_v32  ;;  %v3428_v55 = vsel %vm876_vm1, %v3426_v18, %v3427_v44  ;;  %v3343_v63 = vmul.f32 %v7549_v27, %v7393_v57 }
 0x876   :  { %v3843_v42 = vadd.f32 %v7472_v2, %v3823_v59  ;;  %v3439_v1 = vrot.slane %v3360_v43, 2 }
 0x877   :  { %v3867_v23 = vmax.f32 %v3851_v16, 0.0  ;;  %v3468_v4 = vadd.f32 %v3428_v55, %v3322_v3  ;;  %v3414_v29 = vrot.slane %v3343_v63, 2 }
 0x878   :  { %v3859_v7 = vmax.f32 %v3843_v42, 0.0  ;;  %v3440_v53 = vsel %vm876_vm1, %v3438_v20, %v3439_v1 }
 0x879   :  { %4059 = vmatmul.msk.f32.gmra.mxu2 %vm3885_vm2, %v3867_v23  ;;  %v2930_v23 = vsel %vm365_vm0, %v2928_v17, %v2929_v10  ;;  %v3416_v34 = vsel %vm876_vm1, %v3414_v29, %v3415_v46 }
 0x87a   :  { %4051 = vmatmul.msk.f32.gmra.mxu0 %vm3885_vm2, %v3859_v7  ;;  %v3604_v14 = vpop.permute.xlu0 %3603  ;;  %v7817_v15 = vpop.permute.xlu1 %3293  ;;  %v2892_v7 = vrot.slane %v2825_v54, 1  ;;  %v2962_v52 = vadd.f32 %v2930_v23, %v7752_v58  ;;  %v3336_v58 = vmul.f32 %v7541_v24, %v7393_v57 }
 0x87b   :  { %v3278_v19 = vpop.permute.xlu2 %3277  ;;  %v3645_v51 = vadd.f32 %v3604_v14, %v3463_v13  ;;  %v2893_v14 = vrot.slane %v2826_v12, 1 }
 0x87c   :  { %v3144_v49 = vadd.f32 %v7802_v39, %v2962_v52  ;;  %v3136_v39 = vadd.f32 %v7804_v38, %v2954_v60  ;;  %v3403_v25 = vrot.slane %v3336_v58, 2 }
 0x87d   :  { %v2894_v36 = vsel %vm365_vm0, %v2892_v7, %v2893_v14 }
 0x87e   :  { %v3326_v22 = vadd.f32 %v7817_v15, %v3144_v49  ;;  %v3318_v56 = vadd.f32 %v3278_v19, %v3136_v39  ;;  %v2950_v40 = vadd.f32 %v2894_v36, %v8176_v26  ;;  %v3404_v17 = vsel %vm876_vm1, %v3402_v0, %v3403_v25 }
 0x880   :  { %v3472_v24 = vadd.f32 %v3440_v53, %v3326_v22  ;;  %v3464_v15 = vadd.f32 %v3416_v34, %v3318_v56 }
 0x882   :  { %v3614_v35 = vpop.permute.xlu0 %3613  ;;  %v7830_v6 = vpop.permute.xlu1 %3087 }
 0x883   :  { %v3650_v31 = vadd.f32 %v3614_v35, %v3468_v4  ;;  %v3598_v61 = vpop.permute.xlu2 %3597  ;;  %v3132_v57 = vadd.f32 %v7830_v6, %v2950_v40 }
 0x885   :  { %v3987_v62 = vpop.f32.mrf.mxu3 }
 0x886   :  { %v3988_v5 = vadd.f32 %v7835_v45, %v3987_v62 }
 0x888   :  { %v4011_v47 = vmax.f32 %v3988_v5, 0.0 }
 0x88a   :  { %4027 = vst [vmem:[#allocation2 + $0x60] sm:$0xff] %v4011_v47  ;;  %v3786_v59 = vpop.permute.xlu0 %3785  ;;  %v3622_v16 = vpop.permute.xlu1 %3621 }
 0x88b   :  { %v3827_v42 = vadd.f32 %v3786_v59, %v3645_v51  ;;  %v3654_v48 = vadd.f32 %v3622_v16, %v3472_v24  ;;  %v3788_v44 = vpop.permute.xlu2 %3787 }
 0x88d   :  { %v3847_v9 = vadd.f32 %v7472_v2, %v3827_v42 }
 0x88f   :  { %v3863_v21 = vmax.f32 %v3847_v9, 0.0 }
 0x891   :  { %4055 = vmatmul.msk.f32.gmra.mxu1 %vm3885_vm2, %v3863_v21 }
 0x892   :  { %v3796_v27 = vpop.permute.xlu0 %3795  ;;  %v3270_v28 = vpop.permute.xlu1 %3269 }
 0x893   :  { %v3832_v35 = vadd.f32 %v3796_v27, %v3650_v31  ;;  %v3314_v38 = vadd.f32 %v3270_v28, %v3132_v57 }
 0x895   :  { %v3852_v62 = vadd.f32 %v7472_v2, %v3832_v35  ;;  %v3460_v32 = vadd.f32 %v3404_v17, %v3314_v38 }
 0x897   :  { %v3868_v5 = vmax.f32 %v3852_v62, 0.0  ;;  %v3642_v3 = vadd.f32 %v3598_v61, %v3460_v32 }
 0x899   :  { %4060 = vmatmul.msk.f32.gmra.mxu2 %vm3885_vm2, %v3868_v5 }
 0x89a   :  { %v3606_v13 = vpop.permute.xlu0 %3605  ;;  %v3804_v19 = vpop.permute.xlu1 %3803 }
 0x89b   :  { %v3646_v10 = vadd.f32 %v3606_v13, %v3464_v15  ;;  %v3836_v18 = vadd.f32 %v3804_v19, %v3654_v48 }
 0x89c   :  { %v3975_v47 = vpop.f32.mrf.mxu2 }
 0x89d   :  { %v3828_v51 = vadd.f32 %v3788_v44, %v3646_v10  ;;  %v3856_v54 = vadd.f32 %v7472_v2, %v3836_v18  ;;  %v3976_v6 = vadd.f32 %v7835_v45, %v3975_v47 }
 0x89f   :  { %v3872_v12 = vmax.f32 %v3856_v54, 0.0  ;;  %v4007_v30 = vmax.f32 %v3976_v6, 0.0  ;;  %v3963_v50 = vpop.f32.mrf.mxu1  ;;  %v3848_v59 = vadd.f32 %v7472_v2, %v3828_v51 }
 0x8a0   :  { %v3964_v16 = vadd.f32 %v7835_v45, %v3963_v50 }
 0x8a1   :  { %4023 = vst [vmem:[#allocation2 + $0x40] sm:$0xff] %v4007_v30  ;;  %4064 = vmatmul.msk.f32.gmra.mxu3 %vm3885_vm2, %v3872_v12  ;;  %v3864_v42 = vmax.f32 %v3848_v59, 0.0 }
 0x8a2   :  { %v4003_v23 = vmax.f32 %v3964_v16, 0.0  ;;  %v3780_v55 = vpop.permute.xlu1 %3779 }
 0x8a3   :  { %v3824_v11 = vadd.f32 %v3780_v55, %v3642_v3  ;;  %4056 = vmatmul.msk.f32.gmra.mxu1 %vm3885_vm2, %v3864_v42 }
 0x8a4   :  { %4019 = vst [vmem:[#allocation2 + $0x20] sm:$0xff] %v4003_v23 }
 0x8a5   :  { %v3844_v43 = vadd.f32 %v7472_v2, %v3824_v11 }
 0x8a7   :  { %v3860_v7 = vmax.f32 %v3844_v43, 0.0 }
 0x8a9   :  { %4052 = vmatmul.msk.f32.gmra.mxu0 %vm3885_vm2, %v3860_v7 }
 0x8b6   :  { %v3951_v14 = vpop.f32.mrf.mxu0  ;;  %v3990_v9 = vpop.f32.mrf.mxu3 }
 0x8b7   :  { %v3952_v41 = vadd.f32 %v7835_v45, %v3951_v14  ;;  %v3991_v63 = vadd.f32 %v7835_v45, %v3990_v9 }
 0x8b9   :  { %v3999_v8 = vmax.f32 %v3952_v41, 0.0  ;;  %v4012_v52 = vmax.f32 %v3991_v63, 0.0 }
 0x8bb   :  { %4015 = vst [vmem:[#allocation2] sm:$0xff] %v3999_v8 }
 0x8bc   :  { %4028 = vst [vmem:[#allocation2 + $0x68] sm:$0xff] %v4012_v52 }
 0x8cc   :  { %v3978_v4 = vpop.f32.mrf.mxu2 }
 0x8cd   :  { %v3979_v21 = vadd.f32 %v7835_v45, %v3978_v4 }
 0x8cf   :  { %v4008_v20 = vmax.f32 %v3979_v21, 0.0  ;;  %v3966_v1 = vpop.f32.mrf.mxu1 }
 0x8d0   :  { %v3967_v2 = vadd.f32 %v7835_v45, %v3966_v1 }
 0x8d1   :  { %4024 = vst [vmem:[#allocation2 + $0x48] sm:$0xff] %v4008_v20 }
 0x8d2   :  { %v4004_v49 = vmax.f32 %v3967_v2, 0.0 }
 0x8d4   :  { %4020 = vst [vmem:[#allocation2 + $0x28] sm:$0xff] %v4004_v49 }
 0x8e6   :  { %v3954_v33 = vpop.f32.mrf.mxu0  ;;  %v3993_v60 = vpop.f32.mrf.mxu3 }
 0x8e7   :  { %v3955_v31 = vadd.f32 %v7835_v45, %v3954_v33  ;;  %v3994_v36 = vadd.f32 %v7835_v45, %v3993_v60 }
 0x8e9   :  { %v4000_v61 = vmax.f32 %v3955_v31, 0.0  ;;  %v4013_v27 = vmax.f32 %v3994_v36, 0.0 }
 0x8eb   :  { %4016 = vst [vmem:[#allocation2 + $0x8] sm:$0xff] %v4000_v61 }
 0x8ec   :  { %4029 = vst [vmem:[#allocation2 + $0x70] sm:$0xff] %v4013_v27 }
 0x8f7   :  { %v3957_v37 = vpop.f32.mrf.mxu0 }
 0x8f8   :  { %v3958_v58 = vadd.f32 %v7835_v45, %v3957_v37 }
 0x8fa   :  { %v4001_v28 = vmax.f32 %v3958_v58, 0.0 }
 0x8fc   :  { %4017 = vst [vmem:[#allocation2 + $0x10] sm:$0xff] %v4001_v28  ;;  %v3981_v29 = vpop.f32.mrf.mxu2 }
 0x8fd   :  { %v3982_v46 = vadd.f32 %v7835_v45, %v3981_v29 }
 0x8ff   :  { %v4009_v39 = vmax.f32 %v3982_v46, 0.0 }
 0x901   :  { %4025 = vst [vmem:[#allocation2 + $0x50] sm:$0xff] %v4009_v39 }
 0x90e   :  { %v3969_v22 = vpop.f32.mrf.mxu1 }
 0x90f   :  { %v3970_v35 = vadd.f32 %v7835_v45, %v3969_v22 }
 0x911   :  { %v4005_v53 = vmax.f32 %v3970_v35, 0.0 }
 0x913   :  { %4021 = vst [vmem:[#allocation2 + $0x30] sm:$0xff] %v4005_v53 }
 0x91c   :  { %v3984_v56 = vpop.f32.mrf.mxu2 }
 0x91d   :  { %v3985_v26 = vadd.f32 %v7835_v45, %v3984_v56 }
 0x91f   :  { %v4010_v40 = vmax.f32 %v3985_v26, 0.0 }
 0x920   :  { %v3972_v62 = vpop.f32.mrf.mxu1 }
 0x921   :  { %4026 = vst [vmem:[#allocation2 + $0x58] sm:$0xff] %v4010_v40  ;;  %v3973_v0 = vadd.f32 %v7835_v45, %v3972_v62 }
 0x923   :  { %v4006_v25 = vmax.f32 %v3973_v0, 0.0 }
 0x924   :  { %v3996_v34 = vpop.f32.mrf.mxu3 }
 0x925   :  { %4022 = vst [vmem:[#allocation2 + $0x38] sm:$0xff] %v4006_v25  ;;  %v3997_v57 = vadd.f32 %v7835_v45, %v3996_v34 }
 0x926   :  { %v3960_v24 = vpop.f32.mrf.mxu0 }
 0x927   :  { %v4014_v5 = vmax.f32 %v3997_v57, 0.0  ;;  %v3961_v48 = vadd.f32 %v7835_v45, %v3960_v24 }
 0x929   :  { %4030 = vst [vmem:[#allocation2 + $0x78] sm:$0xff] %v4014_v5  ;;  %v4002_v38 = vmax.f32 %v3961_v48, 0.0 }
 0x92b   :  { %4018 = vst [vmem:[#allocation2 + $0x18] sm:$0xff] %v4002_v38 }
 0x92c   :  { %4043 = dma.vmem_to_hbm [thread:$0]  %s4036_s18, 2048, %s4038_s16, [#allocation3], %s4273_s19, %s4273_s19, %s4268_s22  }
 0x92d   :  { %4266 = dma.done.wait [#allocation3], 2048  }
 0x92e   :  { %4267 = vsyncadd [#allocation3], 4294965248 }
 0x92f   :  { %4048 = vsyncpa [#allocation3], 1 }

</bundles_post_ra>
